<compile_context>
chip_gen: v7x
topology: tpu7x:2x2x1
jax: 0.10.0
libtpu: 0.0.40
codegen_flags: <defaults>
</compile_context>

<pallas_src>
import math
import numpy as np
import jax
import jax.numpy as jnp
from jax.experimental import pallas as pl
from jax.experimental.pallas import tpu as pltpu


# ----------------------------------------------------------------------------
# Deterministic parameter construction (mirrors torchaudio / torchvision math)
# ----------------------------------------------------------------------------
def build_dft_matrices(n_fft: int, win_length: int):
    """Windowed real-DFT matrices C, S of shape (n_fft, n_fft//2+1), float32."""
    n = np.arange(win_length, dtype=np.float64)
    win = 0.5 - 0.5 * np.cos(2.0 * np.pi * n / win_length)       # periodic Hann
    w = np.zeros(n_fft, dtype=np.float64)                        # centered inside n_fft taps
    left = (n_fft - win_length) // 2
    w[left:left + win_length] = win

    k = np.arange(n_fft, dtype=np.float64)[:, None]
    f = np.arange(n_fft // 2 + 1, dtype=np.float64)[None, :]
    ang = 2.0 * np.pi * k * f / n_fft
    C = (w[:, None] * np.cos(ang)).astype(np.float32)
    S = (w[:, None] * np.sin(ang)).astype(np.float32)            # sign irrelevant for |.|^2
    return C, S


def build_mel_filterbank(sample_rate: int, n_fft: int, n_mels: int):
    """torchaudio.functional.melscale_fbanks (htk scale, norm=None): (n_freqs, n_mels)."""
    n_freqs = n_fft // 2 + 1
    all_freqs = np.linspace(0.0, sample_rate // 2, n_freqs)
    f_min, f_max = 0.0, float(sample_rate // 2)
    m_min = 2595.0 * np.log10(1.0 + f_min / 700.0)
    m_max = 2595.0 * np.log10(1.0 + f_max / 700.0)
    m_pts = np.linspace(m_min, m_max, n_mels + 2)
    f_pts = 700.0 * (10.0 ** (m_pts / 2595.0) - 1.0)
    f_diff = f_pts[1:] - f_pts[:-1]
    slopes = f_pts[None, :] - all_freqs[:, None]                 # (n_freqs, n_mels+2)
    down = (-1.0 * slopes[:, :-2]) / f_diff[:-1]
    up = slopes[:, 2:] / f_diff[1:]
    fb = np.maximum(0.0, np.minimum(down, up))
    return fb.astype(np.float32)


def build_resize_matrix(t_in: int, t_out: int):
    """Bilinear (align_corners=False, antialias=False) 1-D resize weights: (t_out, t_in)."""
    W = np.zeros((t_out, t_in), dtype=np.float32)
    scale = t_in / t_out
    for j in range(t_out):
        src = max(scale * (j + 0.5) - 0.5, 0.0)
        i0 = min(int(math.floor(src)), t_in - 1)
        i1 = min(i0 + 1, t_in - 1)
        l1 = min(max(src - i0, 0.0), 1.0)
        W[j, i0] += 1.0 - l1
        W[j, i1] += l1
    return W


def _round_up(x: int, m: int) -> int:
    return ((x + m - 1) // m) * m


# ----------------------------------------------------------------------------
# Pallas kernel: one (batch-tile) per grid step, specialized per channel
# ----------------------------------------------------------------------------
def _make_channel_kernel(n_blocks: int, hop8: int, b_blk: int, t_pad: int, len_pad: int):
    """Channel kernel fully specialized on the channel's static geometry."""

    def kernel(x_ref, cs_ref, fb2_ref, w_ref, out_ref, frames_ref):
        # x_ref:      (b_blk, hop8, m)             f32  hop-reshaped signal
        # cs_ref:     (2*f_pad, K)                 bf16 windowed DFT (cos | sin stacked rows)
        # fb2_ref:    (n_mels_pad, 2*f_pad)        bf16 mel filterbank tiled over both halves
        # w_ref:      (t_pad, len_pad)             bf16 bilinear resize, pre-scaled by 0.2
        # out_ref:    (b_blk, n_mels_pad, len_pad) f32
        # frames_ref: (K, b_blk*t_pad)             f32  VMEM scratch: Hankel frame matrix
        #
        # Build the overlapped frame matrix on-chip:
        #   frames[j*hop8 + r, t] = padded[(t + j)*hop + r] = X[r, t + j]
        # so row block j is just the signal shifted by j hops.  Stores are (8,128)-tile
        # aligned (hop8 % 8 == 0, t_pad % 128 == 0); only the X reads carry a lane offset.
        for b in range(b_blk):
            col0 = b * t_pad
            for j in range(n_blocks):
                frames_ref[j * hop8:(j + 1) * hop8, col0:col0 + t_pad] = \
                    x_ref[b, :, j:j + t_pad]

        # The signal stays f32 until the MXU feed; weights are bf16 with f32 accumulation.
        frames = frames_ref[...].astype(jnp.bfloat16)
        y = jnp.dot(cs_ref[...], frames, preferred_element_type=jnp.float32)
        power = (y * y).astype(jnp.bfloat16)                   # re^2 rows | im^2 rows
        mel = jnp.dot(fb2_ref[...], power, preferred_element_type=jnp.float32)
        logmel = jnp.log(mel + 1e-6).astype(jnp.bfloat16)      # EUP, effectively free

        # TODO(synk): for very long signals add a time-tile grid axis ("arbitrary") with the
        # resize matmul accumulated across tiles, so y/power stay within v7x's 64 MiB VMEM.
        w = w_ref[...]
        for b in range(b_blk):
            seg = logmel[:, b * t_pad:(b + 1) * t_pad]          # (n_mels_pad, t_pad)
            out = jnp.dot(seg, w, preferred_element_type=jnp.float32)
            out_ref[b, :, :] = out + 0.9                        # (x + 4.5)/5 == 0.2*x + 0.9

    return kernel


def _single_buffered_spec(block_shape, index_map):
    """Grid-invariant weight: request a single VMEM buffer (no double buffering)."""
    try:
        return pl.BlockSpec(block_shape, index_map,
                            pipeline_mode=pl.Buffered(buffer_count=1))
    except (AttributeError, TypeError, ValueError):
        # Older JAX without pipeline_mode support: fall back to the default.
        return pl.BlockSpec(block_shape, index_map)


# ----------------------------------------------------------------------------
# Module equivalent
# ----------------------------------------------------------------------------
class LogMelSpectrogramExtractor:
    def __init__(self, sample_rate, n_mels, length, duration,
                 hop_sizes=(10, 25, 50), window_sizes=(25, 50, 100),
                 max_batch_block=8):
        self.num_channels = 3
        self.sample_rate = sample_rate
        self.n_mels = n_mels
        self.length = length
        self.n_fft = int(sample_rate / duration)
        self.n_freq = self.n_fft // 2 + 1
        self.f_pad = _round_up(self.n_freq, 128)       # lane-align the frequency axis
        self.two_f = 2 * self.f_pad
        self.len_pad = _round_up(length, 128)          # lane-dense output stores
        self.n_mels_pad = _round_up(n_mels, 8)         # sublane-align the mel axis
        self.max_batch_block = max_batch_block
        self.hops = [int(round(h * sample_rate / 1000)) for h in hop_sizes]
        self.wins = [int(round(w * sample_rate / 1000)) for w in window_sizes]

        # Mel filterbank, transposed and tiled over the [cos | sin] halves so that
        # FB2_T @ (y*y) folds re^2 + im^2 into one matmul: (n_mels_pad, 2*f_pad), bf16.
        fb = build_mel_filterbank(sample_rate, self.n_fft, n_mels)       # (n_freq, n_mels)
        fb2 = np.zeros((self.n_mels_pad, self.two_f), np.float32)
        fb2[:n_mels, :self.n_freq] = fb.T
        fb2[:n_mels, self.f_pad:self.f_pad + self.n_freq] = fb.T
        self.fb2_t = jnp.asarray(fb2).astype(jnp.bfloat16)
        self._fb_f32 = jnp.asarray(fb)

        # Per-channel static geometry + DFT matrix laid out to match the in-kernel
        # Hankel frame build: CS column  j*hop8 + r  <->  window tap  k = j*hop + r
        # (zero column if r >= hop or k >= n_fft).
        self.chan = []
        self._cs_f32 = []
        for c in range(self.num_channels):
            hop = self.hops[c]
            hop8 = _round_up(hop, 8)
            n_blocks = -(-self.n_fft // hop)           # ceil(n_fft / hop)
            K = n_blocks * hop8
            C, S = build_dft_matrices(self.n_fft, self.wins[c])
            self._cs_f32.append((jnp.asarray(C), jnp.asarray(S)))
            k_of_col = np.full((K,), -1, dtype=np.int64)
            for j in range(n_blocks):
                for r in range(hop):
                    k = j * hop + r
                    if k < self.n_fft:
                        k_of_col[j * hop8 + r] = k
            valid = k_of_col >= 0
            cs = np.zeros((self.two_f, K), np.float32)
            cs[:self.n_freq, valid] = C[k_of_col[valid], :].T
            cs[self.f_pad:self.f_pad + self.n_freq, valid] = S[k_of_col[valid], :].T
            self.chan.append(dict(hop=hop, hop8=hop8, n_blocks=n_blocks, K=K,
                                  cs_t=jnp.asarray(cs).astype(jnp.bfloat16)))

    # ------------------------------------------------------------------ glue
    def _padded(self, signal):
        pad = self.n_fft // 2
        return jnp.pad(signal.astype(jnp.float32), ((0, 0), (pad, pad)), mode="reflect")

    def _frame_count(self, sig_len, hop):
        total = sig_len + 2 * (self.n_fft // 2)
        return 1 + (total - self.n_fft) // hop

    def _prepare_channel(self, padded, c, sig_len):
        """Hop-reshaped signal X (N, hop8, m) f32 + resize weights (t_pad, len_pad) bf16."""
        ch = self.chan[c]
        hop, hop8, n_blocks = ch["hop"], ch["hop8"], ch["n_blocks"]
        t_c = self._frame_count(sig_len, hop)
        t_pad = _round_up(t_c, 128)                    # per-channel time padding only
        m = t_pad + n_blocks                           # kernel slices x[:, j:j+t_pad], j < n_blocks
        n, lp = padded.shape
        need = m * hop
        sig = padded
        if need > lp:
            sig = jnp.pad(sig, ((0, 0), (0, need - lp)))
        sig = sig[:, :need]
        # X[b, r, t] = padded[b, t*hop + r]  -- same bytes as the signal, no im2col blow-up.
        x = sig.reshape(n, m, hop).transpose(0, 2, 1)
        if hop8 > hop:
            x = jnp.pad(x, ((0, 0), (0, hop8 - hop), (0, 0)))

        w = build_resize_matrix(t_c, self.length) * 0.2            # fold /5 into W
        wt = np.zeros((t_pad, self.len_pad), np.float32)
        wt[:t_c, :self.length] = w.T                               # zero rows kill padded frames,
        return x, jnp.asarray(wt).astype(jnp.bfloat16), t_pad, m   # zero cols keep store dense

    def _pick_batch_block(self, n, per_batch_bytes):
        """Largest divisor of n (<= cap) whose VMEM footprint stays within budget."""
        budget = 40 << 20
        best = 1
        for b in range(1, min(n, self.max_batch_block) + 1):
            if n % b == 0 and b * per_batch_bytes <= budget:
                best = b
        return best

    def _channel_call(self, c, x, w_t, t_pad, m):
        ch = self.chan[c]
        n = x.shape[0]
        hop8, n_blocks, K = ch["hop8"], ch["n_blocks"], ch["K"]
        two_f, n_mels_pad, len_pad = self.two_f, self.n_mels_pad, self.len_pad

        # Rough per-batch VMEM footprint: frame scratch + y/power/mel intermediates + input.
        per_batch = (K + 2 * two_f + n_mels_pad) * t_pad * 4 + 2 * hop8 * m * 4
        b_blk = self._pick_batch_block(n, per_batch)

        weights = (two_f * K + n_mels_pad * two_f + t_pad * len_pad) * 2 * 2
        est = b_blk * per_batch + weights + 2 * b_blk * n_mels_pad * len_pad * 4
        vmem_limit = int(min(64 << 20, max(int(1.5 * est) + (4 << 20), 24 << 20)))

        kernel = _make_channel_kernel(n_blocks, hop8, b_blk, t_pad, len_pad)
        return pl.pallas_call(
            kernel,
            out_shape=jax.ShapeDtypeStruct((n, n_mels_pad, len_pad), jnp.float32),
            grid=(n // b_blk,),
            in_specs=[
                # Streaming input: hop-reshaped signal for this batch tile.
                pl.BlockSpec((b_blk, hop8, m), lambda i: (i, 0, 0)),
                # Grid-invariant weights: single VMEM buffer (frees VMEM, esp. on v7x).
                _single_buffered_spec((two_f, K), lambda i: (0, 0)),
                _single_buffered_spec((n_mels_pad, two_f), lambda i: (0, 0)),
                _single_buffered_spec((t_pad, len_pad), lambda i: (0, 0)),
            ],
            out_specs=pl.BlockSpec((b_blk, n_mels_pad, len_pad), lambda i: (i, 0, 0)),
            scratch_shapes=[pltpu.VMEM((K, b_blk * t_pad), jnp.float32)],
            compiler_params=pltpu.CompilerParams(
                dimension_semantics=("parallel",),      # batch-tile axis, megacore-shardable
                vmem_limit_bytes=vmem_limit),
        )(x, ch["cs_t"], self.fb2_t, w_t)

    # --------------------------------------------------------------- forward
    def __call__(self, signal):
        no_batch = signal.ndim == 1
        if no_batch:
            signal = signal[None, :]
        _, sig_len = signal.shape
        padded = self._padded(signal)
        chans = []
        for c in range(self.num_channels):
            # TODO(synk): share one copy of the padded signal across all 3 channels and do
            # the hop-reshape in-kernel (sublane-strided DMA) to cut the remaining 3x copy.
            x, w_t, t_pad, m = self._prepare_channel(padded, c, sig_len)
            out = self._channel_call(c, x, w_t, t_pad, m)
            chans.append(out[:, :self.n_mels, :self.length])
        out = jnp.stack(chans, axis=1)                             # (N, 3, n_mels, length)
        if no_batch:
            out = out[0]
        return out

    # Pure-JAX f32 reference of the identical math (numeric sanity check).
    def reference(self, signal):
        if signal.ndim == 1:
            signal = signal[None, :]
        _, sig_len = signal.shape
        padded = self._padded(signal)
        chans = []
        for c in range(self.num_channels):
            hop = self.hops[c]
            t_c = self._frame_count(sig_len, hop)
            idx = np.arange(t_c)[:, None] * hop + np.arange(self.n_fft)[None, :]
            frames = padded[:, idx]                                # (N, T, n_fft)
            C, S = self._cs_f32[c]
            re = jnp.einsum("ntk,kf->ntf", frames, C)
            im = jnp.einsum("ntk,kf->ntf", frames, S)
            mel = jnp.einsum("ntf,fm->ntm", re * re + im * im, self._fb_f32)
            logmel = jnp.log(mel + 1e-6)
            W = jnp.asarray(build_resize_matrix(t_c, self.length))
            resized = jnp.einsum("lt,ntm->nlm", W, logmel)
            chans.append((jnp.transpose(resized, (0, 2, 1)) + 4.5) / 5.0)
        return jnp.stack(chans, axis=1)


if __name__ == "__main__":
    # Small consistent configuration: n_fft = sample_rate / duration = 200,
    # window lengths (10, 20, 40) taps, hop lengths (4, 10, 20) taps.
    sample_rate, duration, n_mels, length = 400, 2, 16, 32
    N, L = 2, sample_rate * duration                               # signal: (2, 800)

    key = jax.random.PRNGKey(0)
    signal = jax.random.normal(key, (N, L), dtype=jnp.float32)

    extractor = LogMelSpectrogramExtractor(sample_rate, n_mels, length, duration)
    out = jax.block_until_ready(extractor(signal))

    assert out.shape == (N, 3, n_mels, length), out.shape
    assert bool(jnp.all(jnp.isfinite(out)))

    # The kernel runs all matmuls with bf16 operands (f32 accumulation), so the pure-f32
    # reference gets a slightly looser tolerance than an all-f32 match.
    ref = jax.block_until_ready(extractor.reference(signal))
    np.testing.assert_allclose(np.asarray(out), np.asarray(ref), rtol=5e-2, atol=5e-2)

    print("KERNEL_OK")
</pallas_src>

<mosaic_0001>
module attributes {stable_mosaic.version = 11 : i64} {
  func.func @kernel(%arg0: i32, %arg1: memref<2x8x306xf32, #tpu.memory_space<vmem>>, %arg2: memref<256x400xbf16, #tpu.memory_space<vmem>>, %arg3: memref<16x256xbf16, #tpu.memory_space<vmem>>, %arg4: memref<256x128xbf16, #tpu.memory_space<vmem>>, %arg5: memref<2x16x128xf32, #tpu.memory_space<vmem>>, %arg6: memref<400x512xf32, #tpu.memory_space<vmem>>) attributes {dimension_semantics = [#tpu.dimension_semantics<parallel>], iteration_bounds = array<i64: 1>, scalar_prefetch = 0 : i64, scratch_operands = 1 : i64, tpu.core_type = #tpu.core_type<tc>, window_params = [{transform_indices = @transform_0, window_bounds = array<i64: 2, 8, 306>}, {pipeline_mode = #tpu.pipeline_mode<synchronous>, transform_indices = @transform_1, window_bounds = array<i64: 256, 400>}, {pipeline_mode = #tpu.pipeline_mode<synchronous>, transform_indices = @transform_2, window_bounds = array<i64: 16, 256>}, {pipeline_mode = #tpu.pipeline_mode<synchronous>, transform_indices = @transform_3, window_bounds = array<i64: 256, 128>}, {transform_indices = @transform_4, window_bounds = array<i64: 2, 16, 128>}]} {
    %c0 = arith.constant 0 : index
    %c0_0 = arith.constant 0 : index
    %c0_1 = arith.constant 0 : index
    %0 = vector.load %arg1[%c0, %c0_0, %c0_1] : memref<2x8x306xf32, #tpu.memory_space<vmem>>, vector<1x8x256xf32>
    %1 = vector.shape_cast %0 : vector<1x8x256xf32> to vector<8x256xf32>
    %c0_2 = arith.constant 0 : index
    %c0_3 = arith.constant 0 : index
    %2 = vector.load %arg6[%c0_2, %c0_3] : memref<400x512xf32, #tpu.memory_space<vmem>>, vector<8x256xf32>
    tpu.vector_store %arg6[%c0_2, %c0_3], %1 {strides = array<i32>} : memref<400x512xf32, #tpu.memory_space<vmem>>, vector<8x256xf32>,
    %c0_4 = arith.constant 0 : index
    %c0_5 = arith.constant 0 : index
    %c1 = arith.constant 1 : index
    %3 = vector.load %arg1[%c0_4, %c0_5, %c1] : memref<2x8x306xf32, #tpu.memory_space<vmem>>, vector<1x8x256xf32>
    %4 = vector.shape_cast %3 : vector<1x8x256xf32> to vector<8x256xf32>
    %c8 = arith.constant 8 : index
    %c0_6 = arith.constant 0 : index
    %5 = vector.load %arg6[%c8, %c0_6] : memref<400x512xf32, #tpu.memory_space<vmem>>, vector<8x256xf32>
    tpu.vector_store %arg6[%c8, %c0_6], %4 {strides = array<i32>} : memref<400x512xf32, #tpu.memory_space<vmem>>, vector<8x256xf32>,
    %c0_7 = arith.constant 0 : index
    %c0_8 = arith.constant 0 : index
    %c2 = arith.constant 2 : index
    %6 = vector.load %arg1[%c0_7, %c0_8, %c2] : memref<2x8x306xf32, #tpu.memory_space<vmem>>, vector<1x8x256xf32>
    %7 = vector.shape_cast %6 : vector<1x8x256xf32> to vector<8x256xf32>
    %c16 = arith.constant 16 : index
    %c0_9 = arith.constant 0 : index
    %8 = vector.load %arg6[%c16, %c0_9] : memref<400x512xf32, #tpu.memory_space<vmem>>, vector<8x256xf32>
    tpu.vector_store %arg6[%c16, %c0_9], %7 {strides = array<i32>} : memref<400x512xf32, #tpu.memory_space<vmem>>, vector<8x256xf32>,
    %c0_10 = arith.constant 0 : index
    %c0_11 = arith.constant 0 : index
    %c3 = arith.constant 3 : index
    %9 = vector.load %arg1[%c0_10, %c0_11, %c3] : memref<2x8x306xf32, #tpu.memory_space<vmem>>, vector<1x8x256xf32>
    %10 = vector.shape_cast %9 : vector<1x8x256xf32> to vector<8x256xf32>
    %c24 = arith.constant 24 : index
    %c0_12 = arith.constant 0 : index
    %11 = vector.load %arg6[%c24, %c0_12] : memref<400x512xf32, #tpu.memory_space<vmem>>, vector<8x256xf32>
    tpu.vector_store %arg6[%c24, %c0_12], %10 {strides = array<i32>} : memref<400x512xf32, #tpu.memory_space<vmem>>, vector<8x256xf32>,
    %c0_13 = arith.constant 0 : index
    %c0_14 = arith.constant 0 : index
    %c4 = arith.constant 4 : index
    %12 = vector.load %arg1[%c0_13, %c0_14, %c4] : memref<2x8x306xf32, #tpu.memory_space<vmem>>, vector<1x8x256xf32>
    %13 = vector.shape_cast %12 : vector<1x8x256xf32> to vector<8x256xf32>
    %c32 = arith.constant 32 : index
    %c0_15 = arith.constant 0 : index
    %14 = vector.load %arg6[%c32, %c0_15] : memref<400x512xf32, #tpu.memory_space<vmem>>, vector<8x256xf32>
    tpu.vector_store %arg6[%c32, %c0_15], %13 {strides = array<i32>} : memref<400x512xf32, #tpu.memory_space<vmem>>, vector<8x256xf32>,
    %c0_16 = arith.constant 0 : index
    %c0_17 = arith.constant 0 : index
    %c5 = arith.constant 5 : index
    %15 = vector.load %arg1[%c0_16, %c0_17, %c5] : memref<2x8x306xf32, #tpu.memory_space<vmem>>, vector<1x8x256xf32>
    %16 = vector.shape_cast %15 : vector<1x8x256xf32> to vector<8x256xf32>
    %c40 = arith.constant 40 : index
    %c0_18 = arith.constant 0 : index
    %17 = vector.load %arg6[%c40, %c0_18] : memref<400x512xf32, #tpu.memory_space<vmem>>, vector<8x256xf32>
    tpu.vector_store %arg6[%c40, %c0_18], %16 {strides = array<i32>} : memref<400x512xf32, #tpu.memory_space<vmem>>, vector<8x256xf32>,
    %c0_19 = arith.constant 0 : index
    %c0_20 = arith.constant 0 : index
    %c6 = arith.constant 6 : index
    %18 = vector.load %arg1[%c0_19, %c0_20, %c6] : memref<2x8x306xf32, #tpu.memory_space<vmem>>, vector<1x8x256xf32>
    %19 = vector.shape_cast %18 : vector<1x8x256xf32> to vector<8x256xf32>
    %c48 = arith.constant 48 : index
    %c0_21 = arith.constant 0 : index
    %20 = vector.load %arg6[%c48, %c0_21] : memref<400x512xf32, #tpu.memory_space<vmem>>, vector<8x256xf32>
    tpu.vector_store %arg6[%c48, %c0_21], %19 {strides = array<i32>} : memref<400x512xf32, #tpu.memory_space<vmem>>, vector<8x256xf32>,
    %c0_22 = arith.constant 0 : index
    %c0_23 = arith.constant 0 : index
    %c7 = arith.constant 7 : index
    %21 = vector.load %arg1[%c0_22, %c0_23, %c7] : memref<2x8x306xf32, #tpu.memory_space<vmem>>, vector<1x8x256xf32>
    %22 = vector.shape_cast %21 : vector<1x8x256xf32> to vector<8x256xf32>
    %c56 = arith.constant 56 : index
    %c0_24 = arith.constant 0 : index
    %23 = vector.load %arg6[%c56, %c0_24] : memref<400x512xf32, #tpu.memory_space<vmem>>, vector<8x256xf32>
    tpu.vector_store %arg6[%c56, %c0_24], %22 {strides = array<i32>} : memref<400x512xf32, #tpu.memory_space<vmem>>, vector<8x256xf32>,
    %c0_25 = arith.constant 0 : index
    %c0_26 = arith.constant 0 : index
    %c8_27 = arith.constant 8 : index
    %24 = vector.load %arg1[%c0_25, %c0_26, %c8_27] : memref<2x8x306xf32, #tpu.memory_space<vmem>>, vector<1x8x256xf32>
    %25 = vector.shape_cast %24 : vector<1x8x256xf32> to vector<8x256xf32>
    %c64 = arith.constant 64 : index
    %c0_28 = arith.constant 0 : index
    %26 = vector.load %arg6[%c64, %c0_28] : memref<400x512xf32, #tpu.memory_space<vmem>>, vector<8x256xf32>
    tpu.vector_store %arg6[%c64, %c0_28], %25 {strides = array<i32>} : memref<400x512xf32, #tpu.memory_space<vmem>>, vector<8x256xf32>,
    %c0_29 = arith.constant 0 : index
    %c0_30 = arith.constant 0 : index
    %c9 = arith.constant 9 : index
    %27 = vector.load %arg1[%c0_29, %c0_30, %c9] : memref<2x8x306xf32, #tpu.memory_space<vmem>>, vector<1x8x256xf32>
    %28 = vector.shape_cast %27 : vector<1x8x256xf32> to vector<8x256xf32>
    %c72 = arith.constant 72 : index
    %c0_31 = arith.constant 0 : index
    %29 = vector.load %arg6[%c72, %c0_31] : memref<400x512xf32, #tpu.memory_space<vmem>>, vector<8x256xf32>
    tpu.vector_store %arg6[%c72, %c0_31], %28 {strides = array<i32>} : memref<400x512xf32, #tpu.memory_space<vmem>>, vector<8x256xf32>,
    %c0_32 = arith.constant 0 : index
    %c0_33 = arith.constant 0 : index
    %c10 = arith.constant 10 : index
    %30 = vector.load %arg1[%c0_32, %c0_33, %c10] : memref<2x8x306xf32, #tpu.memory_space<vmem>>, vector<1x8x256xf32>
    %31 = vector.shape_cast %30 : vector<1x8x256xf32> to vector<8x256xf32>
    %c80 = arith.constant 80 : index
    %c0_34 = arith.constant 0 : index
    %32 = vector.load %arg6[%c80, %c0_34] : memref<400x512xf32, #tpu.memory_space<vmem>>, vector<8x256xf32>
    tpu.vector_store %arg6[%c80, %c0_34], %31 {strides = array<i32>} : memref<400x512xf32, #tpu.memory_space<vmem>>, vector<8x256xf32>,
    %c0_35 = arith.constant 0 : index
    %c0_36 = arith.constant 0 : index
    %c11 = arith.constant 11 : index
    %33 = vector.load %arg1[%c0_35, %c0_36, %c11] : memref<2x8x306xf32, #tpu.memory_space<vmem>>, vector<1x8x256xf32>
    %34 = vector.shape_cast %33 : vector<1x8x256xf32> to vector<8x256xf32>
    %c88 = arith.constant 88 : index
    %c0_37 = arith.constant 0 : index
    %35 = vector.load %arg6[%c88, %c0_37] : memref<400x512xf32, #tpu.memory_space<vmem>>, vector<8x256xf32>
    tpu.vector_store %arg6[%c88, %c0_37], %34 {strides = array<i32>} : memref<400x512xf32, #tpu.memory_space<vmem>>, vector<8x256xf32>,
    %c0_38 = arith.constant 0 : index
    %c0_39 = arith.constant 0 : index
    %c12 = arith.constant 12 : index
    %36 = vector.load %arg1[%c0_38, %c0_39, %c12] : memref<2x8x306xf32, #tpu.memory_space<vmem>>, vector<1x8x256xf32>
    %37 = vector.shape_cast %36 : vector<1x8x256xf32> to vector<8x256xf32>
    %c96 = arith.constant 96 : index
    %c0_40 = arith.constant 0 : index
    %38 = vector.load %arg6[%c96, %c0_40] : memref<400x512xf32, #tpu.memory_space<vmem>>, vector<8x256xf32>
    tpu.vector_store %arg6[%c96, %c0_40], %37 {strides = array<i32>} : memref<400x512xf32, #tpu.memory_space<vmem>>, vector<8x256xf32>,
    %c0_41 = arith.constant 0 : index
    %c0_42 = arith.constant 0 : index
    %c13 = arith.constant 13 : index
    %39 = vector.load %arg1[%c0_41, %c0_42, %c13] : memref<2x8x306xf32, #tpu.memory_space<vmem>>, vector<1x8x256xf32>
    %40 = vector.shape_cast %39 : vector<1x8x256xf32> to vector<8x256xf32>
    %c104 = arith.constant 104 : index
    %c0_43 = arith.constant 0 : index
    %41 = vector.load %arg6[%c104, %c0_43] : memref<400x512xf32, #tpu.memory_space<vmem>>, vector<8x256xf32>
    tpu.vector_store %arg6[%c104, %c0_43], %40 {strides = array<i32>} : memref<400x512xf32, #tpu.memory_space<vmem>>, vector<8x256xf32>,
    %c0_44 = arith.constant 0 : index
    %c0_45 = arith.constant 0 : index
    %c14 = arith.constant 14 : index
    %42 = vector.load %arg1[%c0_44, %c0_45, %c14] : memref<2x8x306xf32, #tpu.memory_space<vmem>>, vector<1x8x256xf32>
    %43 = vector.shape_cast %42 : vector<1x8x256xf32> to vector<8x256xf32>
    %c112 = arith.constant 112 : index
    %c0_46 = arith.constant 0 : index
    %44 = vector.load %arg6[%c112, %c0_46] : memref<400x512xf32, #tpu.memory_space<vmem>>, vector<8x256xf32>
    tpu.vector_store %arg6[%c112, %c0_46], %43 {strides = array<i32>} : memref<400x512xf32, #tpu.memory_space<vmem>>, vector<8x256xf32>,
    %c0_47 = arith.constant 0 : index
    %c0_48 = arith.constant 0 : index
    %c15 = arith.constant 15 : index
    %45 = vector.load %arg1[%c0_47, %c0_48, %c15] : memref<2x8x306xf32, #tpu.memory_space<vmem>>, vector<1x8x256xf32>
    %46 = vector.shape_cast %45 : vector<1x8x256xf32> to vector<8x256xf32>
    %c120 = arith.constant 120 : index
    %c0_49 = arith.constant 0 : index
    %47 = vector.load %arg6[%c120, %c0_49] : memref<400x512xf32, #tpu.memory_space<vmem>>, vector<8x256xf32>
    tpu.vector_store %arg6[%c120, %c0_49], %46 {strides = array<i32>} : memref<400x512xf32, #tpu.memory_space<vmem>>, vector<8x256xf32>,
    %c0_50 = arith.constant 0 : index
    %c0_51 = arith.constant 0 : index
    %c16_52 = arith.constant 16 : index
    %48 = vector.load %arg1[%c0_50, %c0_51, %c16_52] : memref<2x8x306xf32, #tpu.memory_space<vmem>>, vector<1x8x256xf32>
    %49 = vector.shape_cast %48 : vector<1x8x256xf32> to vector<8x256xf32>
    %c128 = arith.constant 128 : index
    %c0_53 = arith.constant 0 : index
    %50 = vector.load %arg6[%c128, %c0_53] : memref<400x512xf32, #tpu.memory_space<vmem>>, vector<8x256xf32>
    tpu.vector_store %arg6[%c128, %c0_53], %49 {strides = array<i32>} : memref<400x512xf32, #tpu.memory_space<vmem>>, vector<8x256xf32>,
    %c0_54 = arith.constant 0 : index
    %c0_55 = arith.constant 0 : index
    %c17 = arith.constant 17 : index
    %51 = vector.load %arg1[%c0_54, %c0_55, %c17] : memref<2x8x306xf32, #tpu.memory_space<vmem>>, vector<1x8x256xf32>
    %52 = vector.shape_cast %51 : vector<1x8x256xf32> to vector<8x256xf32>
    %c136 = arith.constant 136 : index
    %c0_56 = arith.constant 0 : index
    %53 = vector.load %arg6[%c136, %c0_56] : memref<400x512xf32, #tpu.memory_space<vmem>>, vector<8x256xf32>
    tpu.vector_store %arg6[%c136, %c0_56], %52 {strides = array<i32>} : memref<400x512xf32, #tpu.memory_space<vmem>>, vector<8x256xf32>,
    %c0_57 = arith.constant 0 : index
    %c0_58 = arith.constant 0 : index
    %c18 = arith.constant 18 : index
    %54 = vector.load %arg1[%c0_57, %c0_58, %c18] : memref<2x8x306xf32, #tpu.memory_space<vmem>>, vector<1x8x256xf32>
    %55 = vector.shape_cast %54 : vector<1x8x256xf32> to vector<8x256xf32>
    %c144 = arith.constant 144 : index
    %c0_59 = arith.constant 0 : index
    %56 = vector.load %arg6[%c144, %c0_59] : memref<400x512xf32, #tpu.memory_space<vmem>>, vector<8x256xf32>
    tpu.vector_store %arg6[%c144, %c0_59], %55 {strides = array<i32>} : memref<400x512xf32, #tpu.memory_space<vmem>>, vector<8x256xf32>,
    %c0_60 = arith.constant 0 : index
    %c0_61 = arith.constant 0 : index
    %c19 = arith.constant 19 : index
    %57 = vector.load %arg1[%c0_60, %c0_61, %c19] : memref<2x8x306xf32, #tpu.memory_space<vmem>>, vector<1x8x256xf32>
    %58 = vector.shape_cast %57 : vector<1x8x256xf32> to vector<8x256xf32>
    %c152 = arith.constant 152 : index
    %c0_62 = arith.constant 0 : index
    %59 = vector.load %arg6[%c152, %c0_62] : memref<400x512xf32, #tpu.memory_space<vmem>>, vector<8x256xf32>
    tpu.vector_store %arg6[%c152, %c0_62], %58 {strides = array<i32>} : memref<400x512xf32, #tpu.memory_space<vmem>>, vector<8x256xf32>,
    %c0_63 = arith.constant 0 : index
    %c0_64 = arith.constant 0 : index
    %c20 = arith.constant 20 : index
    %60 = vector.load %arg1[%c0_63, %c0_64, %c20] : memref<2x8x306xf32, #tpu.memory_space<vmem>>, vector<1x8x256xf32>
    %61 = vector.shape_cast %60 : vector<1x8x256xf32> to vector<8x256xf32>
    %c160 = arith.constant 160 : index
    %c0_65 = arith.constant 0 : index
    %62 = vector.load %arg6[%c160, %c0_65] : memref<400x512xf32, #tpu.memory_space<vmem>>, vector<8x256xf32>
    tpu.vector_store %arg6[%c160, %c0_65], %61 {strides = array<i32>} : memref<400x512xf32, #tpu.memory_space<vmem>>, vector<8x256xf32>,
    %c0_66 = arith.constant 0 : index
    %c0_67 = arith.constant 0 : index
    %c21 = arith.constant 21 : index
    %63 = vector.load %arg1[%c0_66, %c0_67, %c21] : memref<2x8x306xf32, #tpu.memory_space<vmem>>, vector<1x8x256xf32>
    %64 = vector.shape_cast %63 : vector<1x8x256xf32> to vector<8x256xf32>
    %c168 = arith.constant 168 : index
    %c0_68 = arith.constant 0 : index
    %65 = vector.load %arg6[%c168, %c0_68] : memref<400x512xf32, #tpu.memory_space<vmem>>, vector<8x256xf32>
    tpu.vector_store %arg6[%c168, %c0_68], %64 {strides = array<i32>} : memref<400x512xf32, #tpu.memory_space<vmem>>, vector<8x256xf32>,
    %c0_69 = arith.constant 0 : index
    %c0_70 = arith.constant 0 : index
    %c22 = arith.constant 22 : index
    %66 = vector.load %arg1[%c0_69, %c0_70, %c22] : memref<2x8x306xf32, #tpu.memory_space<vmem>>, vector<1x8x256xf32>
    %67 = vector.shape_cast %66 : vector<1x8x256xf32> to vector<8x256xf32>
    %c176 = arith.constant 176 : index
    %c0_71 = arith.constant 0 : index
    %68 = vector.load %arg6[%c176, %c0_71] : memref<400x512xf32, #tpu.memory_space<vmem>>, vector<8x256xf32>
    tpu.vector_store %arg6[%c176, %c0_71], %67 {strides = array<i32>} : memref<400x512xf32, #tpu.memory_space<vmem>>, vector<8x256xf32>,
    %c0_72 = arith.constant 0 : index
    %c0_73 = arith.constant 0 : index
    %c23 = arith.constant 23 : index
    %69 = vector.load %arg1[%c0_72, %c0_73, %c23] : memref<2x8x306xf32, #tpu.memory_space<vmem>>, vector<1x8x256xf32>
    %70 = vector.shape_cast %69 : vector<1x8x256xf32> to vector<8x256xf32>
    %c184 = arith.constant 184 : index
    %c0_74 = arith.constant 0 : index
    %71 = vector.load %arg6[%c184, %c0_74] : memref<400x512xf32, #tpu.memory_space<vmem>>, vector<8x256xf32>
    tpu.vector_store %arg6[%c184, %c0_74], %70 {strides = array<i32>} : memref<400x512xf32, #tpu.memory_space<vmem>>, vector<8x256xf32>,
    %c0_75 = arith.constant 0 : index
    %c0_76 = arith.constant 0 : index
    %c24_77 = arith.constant 24 : index
    %72 = vector.load %arg1[%c0_75, %c0_76, %c24_77] : memref<2x8x306xf32, #tpu.memory_space<vmem>>, vector<1x8x256xf32>
    %73 = vector.shape_cast %72 : vector<1x8x256xf32> to vector<8x256xf32>
    %c192 = arith.constant 192 : index
    %c0_78 = arith.constant 0 : index
    %74 = vector.load %arg6[%c192, %c0_78] : memref<400x512xf32, #tpu.memory_space<vmem>>, vector<8x256xf32>
    tpu.vector_store %arg6[%c192, %c0_78], %73 {strides = array<i32>} : memref<400x512xf32, #tpu.memory_space<vmem>>, vector<8x256xf32>,
    %c0_79 = arith.constant 0 : index
    %c0_80 = arith.constant 0 : index
    %c25 = arith.constant 25 : index
    %75 = vector.load %arg1[%c0_79, %c0_80, %c25] : memref<2x8x306xf32, #tpu.memory_space<vmem>>, vector<1x8x256xf32>
    %76 = vector.shape_cast %75 : vector<1x8x256xf32> to vector<8x256xf32>
    %c200 = arith.constant 200 : index
    %c0_81 = arith.constant 0 : index
    %77 = vector.load %arg6[%c200, %c0_81] : memref<400x512xf32, #tpu.memory_space<vmem>>, vector<8x256xf32>
    tpu.vector_store %arg6[%c200, %c0_81], %76 {strides = array<i32>} : memref<400x512xf32, #tpu.memory_space<vmem>>, vector<8x256xf32>,
    %c0_82 = arith.constant 0 : index
    %c0_83 = arith.constant 0 : index
    %c26 = arith.constant 26 : index
    %78 = vector.load %arg1[%c0_82, %c0_83, %c26] : memref<2x8x306xf32, #tpu.memory_space<vmem>>, vector<1x8x256xf32>
    %79 = vector.shape_cast %78 : vector<1x8x256xf32> to vector<8x256xf32>
    %c208 = arith.constant 208 : index
    %c0_84 = arith.constant 0 : index
    %80 = vector.load %arg6[%c208, %c0_84] : memref<400x512xf32, #tpu.memory_space<vmem>>, vector<8x256xf32>
    tpu.vector_store %arg6[%c208, %c0_84], %79 {strides = array<i32>} : memref<400x512xf32, #tpu.memory_space<vmem>>, vector<8x256xf32>,
    %c0_85 = arith.constant 0 : index
    %c0_86 = arith.constant 0 : index
    %c27 = arith.constant 27 : index
    %81 = vector.load %arg1[%c0_85, %c0_86, %c27] : memref<2x8x306xf32, #tpu.memory_space<vmem>>, vector<1x8x256xf32>
    %82 = vector.shape_cast %81 : vector<1x8x256xf32> to vector<8x256xf32>
    %c216 = arith.constant 216 : index
    %c0_87 = arith.constant 0 : index
    %83 = vector.load %arg6[%c216, %c0_87] : memref<400x512xf32, #tpu.memory_space<vmem>>, vector<8x256xf32>
    tpu.vector_store %arg6[%c216, %c0_87], %82 {strides = array<i32>} : memref<400x512xf32, #tpu.memory_space<vmem>>, vector<8x256xf32>,
    %c0_88 = arith.constant 0 : index
    %c0_89 = arith.constant 0 : index
    %c28 = arith.constant 28 : index
    %84 = vector.load %arg1[%c0_88, %c0_89, %c28] : memref<2x8x306xf32, #tpu.memory_space<vmem>>, vector<1x8x256xf32>
    %85 = vector.shape_cast %84 : vector<1x8x256xf32> to vector<8x256xf32>
    %c224 = arith.constant 224 : index
    %c0_90 = arith.constant 0 : index
    %86 = vector.load %arg6[%c224, %c0_90] : memref<400x512xf32, #tpu.memory_space<vmem>>, vector<8x256xf32>
    tpu.vector_store %arg6[%c224, %c0_90], %85 {strides = array<i32>} : memref<400x512xf32, #tpu.memory_space<vmem>>, vector<8x256xf32>,
    %c0_91 = arith.constant 0 : index
    %c0_92 = arith.constant 0 : index
    %c29 = arith.constant 29 : index
    %87 = vector.load %arg1[%c0_91, %c0_92, %c29] : memref<2x8x306xf32, #tpu.memory_space<vmem>>, vector<1x8x256xf32>
    %88 = vector.shape_cast %87 : vector<1x8x256xf32> to vector<8x256xf32>
    %c232 = arith.constant 232 : index
    %c0_93 = arith.constant 0 : index
    %89 = vector.load %arg6[%c232, %c0_93] : memref<400x512xf32, #tpu.memory_space<vmem>>, vector<8x256xf32>
    tpu.vector_store %arg6[%c232, %c0_93], %88 {strides = array<i32>} : memref<400x512xf32, #tpu.memory_space<vmem>>, vector<8x256xf32>,
    %c0_94 = arith.constant 0 : index
    %c0_95 = arith.constant 0 : index
    %c30 = arith.constant 30 : index
    %90 = vector.load %arg1[%c0_94, %c0_95, %c30] : memref<2x8x306xf32, #tpu.memory_space<vmem>>, vector<1x8x256xf32>
    %91 = vector.shape_cast %90 : vector<1x8x256xf32> to vector<8x256xf32>
    %c240 = arith.constant 240 : index
    %c0_96 = arith.constant 0 : index
    %92 = vector.load %arg6[%c240, %c0_96] : memref<400x512xf32, #tpu.memory_space<vmem>>, vector<8x256xf32>
    tpu.vector_store %arg6[%c240, %c0_96], %91 {strides = array<i32>} : memref<400x512xf32, #tpu.memory_space<vmem>>, vector<8x256xf32>,
    %c0_97 = arith.constant 0 : index
    %c0_98 = arith.constant 0 : index
    %c31 = arith.constant 31 : index
    %93 = vector.load %arg1[%c0_97, %c0_98, %c31] : memref<2x8x306xf32, #tpu.memory_space<vmem>>, vector<1x8x256xf32>
    %94 = vector.shape_cast %93 : vector<1x8x256xf32> to vector<8x256xf32>
    %c248 = arith.constant 248 : index
    %c0_99 = arith.constant 0 : index
    %95 = vector.load %arg6[%c248, %c0_99] : memref<400x512xf32, #tpu.memory_space<vmem>>, vector<8x256xf32>
    tpu.vector_store %arg6[%c248, %c0_99], %94 {strides = array<i32>} : memref<400x512xf32, #tpu.memory_space<vmem>>, vector<8x256xf32>,
    %c0_100 = arith.constant 0 : index
    %c0_101 = arith.constant 0 : index
    %c32_102 = arith.constant 32 : index
    %96 = vector.load %arg1[%c0_100, %c0_101, %c32_102] : memref<2x8x306xf32, #tpu.memory_space<vmem>>, vector<1x8x256xf32>
    %97 = vector.shape_cast %96 : vector<1x8x256xf32> to vector<8x256xf32>
    %c256 = arith.constant 256 : index
    %c0_103 = arith.constant 0 : index
    %98 = vector.load %arg6[%c256, %c0_103] : memref<400x512xf32, #tpu.memory_space<vmem>>, vector<8x256xf32>
    tpu.vector_store %arg6[%c256, %c0_103], %97 {strides = array<i32>} : memref<400x512xf32, #tpu.memory_space<vmem>>, vector<8x256xf32>,
    %c0_104 = arith.constant 0 : index
    %c0_105 = arith.constant 0 : index
    %c33 = arith.constant 33 : index
    %99 = vector.load %arg1[%c0_104, %c0_105, %c33] : memref<2x8x306xf32, #tpu.memory_space<vmem>>, vector<1x8x256xf32>
    %100 = vector.shape_cast %99 : vector<1x8x256xf32> to vector<8x256xf32>
    %c264 = arith.constant 264 : index
    %c0_106 = arith.constant 0 : index
    %101 = vector.load %arg6[%c264, %c0_106] : memref<400x512xf32, #tpu.memory_space<vmem>>, vector<8x256xf32>
    tpu.vector_store %arg6[%c264, %c0_106], %100 {strides = array<i32>} : memref<400x512xf32, #tpu.memory_space<vmem>>, vector<8x256xf32>,
    %c0_107 = arith.constant 0 : index
    %c0_108 = arith.constant 0 : index
    %c34 = arith.constant 34 : index
    %102 = vector.load %arg1[%c0_107, %c0_108, %c34] : memref<2x8x306xf32, #tpu.memory_space<vmem>>, vector<1x8x256xf32>
    %103 = vector.shape_cast %102 : vector<1x8x256xf32> to vector<8x256xf32>
    %c272 = arith.constant 272 : index
    %c0_109 = arith.constant 0 : index
    %104 = vector.load %arg6[%c272, %c0_109] : memref<400x512xf32, #tpu.memory_space<vmem>>, vector<8x256xf32>
    tpu.vector_store %arg6[%c272, %c0_109], %103 {strides = array<i32>} : memref<400x512xf32, #tpu.memory_space<vmem>>, vector<8x256xf32>,
    %c0_110 = arith.constant 0 : index
    %c0_111 = arith.constant 0 : index
    %c35 = arith.constant 35 : index
    %105 = vector.load %arg1[%c0_110, %c0_111, %c35] : memref<2x8x306xf32, #tpu.memory_space<vmem>>, vector<1x8x256xf32>
    %106 = vector.shape_cast %105 : vector<1x8x256xf32> to vector<8x256xf32>
    %c280 = arith.constant 280 : index
    %c0_112 = arith.constant 0 : index
    %107 = vector.load %arg6[%c280, %c0_112] : memref<400x512xf32, #tpu.memory_space<vmem>>, vector<8x256xf32>
    tpu.vector_store %arg6[%c280, %c0_112], %106 {strides = array<i32>} : memref<400x512xf32, #tpu.memory_space<vmem>>, vector<8x256xf32>,
    %c0_113 = arith.constant 0 : index
    %c0_114 = arith.constant 0 : index
    %c36 = arith.constant 36 : index
    %108 = vector.load %arg1[%c0_113, %c0_114, %c36] : memref<2x8x306xf32, #tpu.memory_space<vmem>>, vector<1x8x256xf32>
    %109 = vector.shape_cast %108 : vector<1x8x256xf32> to vector<8x256xf32>
    %c288 = arith.constant 288 : index
    %c0_115 = arith.constant 0 : index
    %110 = vector.load %arg6[%c288, %c0_115] : memref<400x512xf32, #tpu.memory_space<vmem>>, vector<8x256xf32>
    tpu.vector_store %arg6[%c288, %c0_115], %109 {strides = array<i32>} : memref<400x512xf32, #tpu.memory_space<vmem>>, vector<8x256xf32>,
    %c0_116 = arith.constant 0 : index
    %c0_117 = arith.constant 0 : index
    %c37 = arith.constant 37 : index
    %111 = vector.load %arg1[%c0_116, %c0_117, %c37] : memref<2x8x306xf32, #tpu.memory_space<vmem>>, vector<1x8x256xf32>
    %112 = vector.shape_cast %111 : vector<1x8x256xf32> to vector<8x256xf32>
    %c296 = arith.constant 296 : index
    %c0_118 = arith.constant 0 : index
    %113 = vector.load %arg6[%c296, %c0_118] : memref<400x512xf32, #tpu.memory_space<vmem>>, vector<8x256xf32>
    tpu.vector_store %arg6[%c296, %c0_118], %112 {strides = array<i32>} : memref<400x512xf32, #tpu.memory_space<vmem>>, vector<8x256xf32>,
    %c0_119 = arith.constant 0 : index
    %c0_120 = arith.constant 0 : index
    %c38 = arith.constant 38 : index
    %114 = vector.load %arg1[%c0_119, %c0_120, %c38] : memref<2x8x306xf32, #tpu.memory_space<vmem>>, vector<1x8x256xf32>
    %115 = vector.shape_cast %114 : vector<1x8x256xf32> to vector<8x256xf32>
    %c304 = arith.constant 304 : index
    %c0_121 = arith.constant 0 : index
    %116 = vector.load %arg6[%c304, %c0_121] : memref<400x512xf32, #tpu.memory_space<vmem>>, vector<8x256xf32>
    tpu.vector_store %arg6[%c304, %c0_121], %115 {strides = array<i32>} : memref<400x512xf32, #tpu.memory_space<vmem>>, vector<8x256xf32>,
    %c0_122 = arith.constant 0 : index
    %c0_123 = arith.constant 0 : index
    %c39 = arith.constant 39 : index
    %117 = vector.load %arg1[%c0_122, %c0_123, %c39] : memref<2x8x306xf32, #tpu.memory_space<vmem>>, vector<1x8x256xf32>
    %118 = vector.shape_cast %117 : vector<1x8x256xf32> to vector<8x256xf32>
    %c312 = arith.constant 312 : index
    %c0_124 = arith.constant 0 : index
    %119 = vector.load %arg6[%c312, %c0_124] : memref<400x512xf32, #tpu.memory_space<vmem>>, vector<8x256xf32>
    tpu.vector_store %arg6[%c312, %c0_124], %118 {strides = array<i32>} : memref<400x512xf32, #tpu.memory_space<vmem>>, vector<8x256xf32>,
    %c0_125 = arith.constant 0 : index
    %c0_126 = arith.constant 0 : index
    %c40_127 = arith.constant 40 : index
    %120 = vector.load %arg1[%c0_125, %c0_126, %c40_127] : memref<2x8x306xf32, #tpu.memory_space<vmem>>, vector<1x8x256xf32>
    %121 = vector.shape_cast %120 : vector<1x8x256xf32> to vector<8x256xf32>
    %c320 = arith.constant 320 : index
    %c0_128 = arith.constant 0 : index
    %122 = vector.load %arg6[%c320, %c0_128] : memref<400x512xf32, #tpu.memory_space<vmem>>, vector<8x256xf32>
    tpu.vector_store %arg6[%c320, %c0_128], %121 {strides = array<i32>} : memref<400x512xf32, #tpu.memory_space<vmem>>, vector<8x256xf32>,
    %c0_129 = arith.constant 0 : index
    %c0_130 = arith.constant 0 : index
    %c41 = arith.constant 41 : index
    %123 = vector.load %arg1[%c0_129, %c0_130, %c41] : memref<2x8x306xf32, #tpu.memory_space<vmem>>, vector<1x8x256xf32>
    %124 = vector.shape_cast %123 : vector<1x8x256xf32> to vector<8x256xf32>
    %c328 = arith.constant 328 : index
    %c0_131 = arith.constant 0 : index
    %125 = vector.load %arg6[%c328, %c0_131] : memref<400x512xf32, #tpu.memory_space<vmem>>, vector<8x256xf32>
    tpu.vector_store %arg6[%c328, %c0_131], %124 {strides = array<i32>} : memref<400x512xf32, #tpu.memory_space<vmem>>, vector<8x256xf32>,
    %c0_132 = arith.constant 0 : index
    %c0_133 = arith.constant 0 : index
    %c42 = arith.constant 42 : index
    %126 = vector.load %arg1[%c0_132, %c0_133, %c42] : memref<2x8x306xf32, #tpu.memory_space<vmem>>, vector<1x8x256xf32>
    %127 = vector.shape_cast %126 : vector<1x8x256xf32> to vector<8x256xf32>
    %c336 = arith.constant 336 : index
    %c0_134 = arith.constant 0 : index
    %128 = vector.load %arg6[%c336, %c0_134] : memref<400x512xf32, #tpu.memory_space<vmem>>, vector<8x256xf32>
    tpu.vector_store %arg6[%c336, %c0_134], %127 {strides = array<i32>} : memref<400x512xf32, #tpu.memory_space<vmem>>, vector<8x256xf32>,
    %c0_135 = arith.constant 0 : index
    %c0_136 = arith.constant 0 : index
    %c43 = arith.constant 43 : index
    %129 = vector.load %arg1[%c0_135, %c0_136, %c43] : memref<2x8x306xf32, #tpu.memory_space<vmem>>, vector<1x8x256xf32>
    %130 = vector.shape_cast %129 : vector<1x8x256xf32> to vector<8x256xf32>
    %c344 = arith.constant 344 : index
    %c0_137 = arith.constant 0 : index
    %131 = vector.load %arg6[%c344, %c0_137] : memref<400x512xf32, #tpu.memory_space<vmem>>, vector<8x256xf32>
    tpu.vector_store %arg6[%c344, %c0_137], %130 {strides = array<i32>} : memref<400x512xf32, #tpu.memory_space<vmem>>, vector<8x256xf32>,
    %c0_138 = arith.constant 0 : index
    %c0_139 = arith.constant 0 : index
    %c44 = arith.constant 44 : index
    %132 = vector.load %arg1[%c0_138, %c0_139, %c44] : memref<2x8x306xf32, #tpu.memory_space<vmem>>, vector<1x8x256xf32>
    %133 = vector.shape_cast %132 : vector<1x8x256xf32> to vector<8x256xf32>
    %c352 = arith.constant 352 : index
    %c0_140 = arith.constant 0 : index
    %134 = vector.load %arg6[%c352, %c0_140] : memref<400x512xf32, #tpu.memory_space<vmem>>, vector<8x256xf32>
    tpu.vector_store %arg6[%c352, %c0_140], %133 {strides = array<i32>} : memref<400x512xf32, #tpu.memory_space<vmem>>, vector<8x256xf32>,
    %c0_141 = arith.constant 0 : index
    %c0_142 = arith.constant 0 : index
    %c45 = arith.constant 45 : index
    %135 = vector.load %arg1[%c0_141, %c0_142, %c45] : memref<2x8x306xf32, #tpu.memory_space<vmem>>, vector<1x8x256xf32>
    %136 = vector.shape_cast %135 : vector<1x8x256xf32> to vector<8x256xf32>
    %c360 = arith.constant 360 : index
    %c0_143 = arith.constant 0 : index
    %137 = vector.load %arg6[%c360, %c0_143] : memref<400x512xf32, #tpu.memory_space<vmem>>, vector<8x256xf32>
    tpu.vector_store %arg6[%c360, %c0_143], %136 {strides = array<i32>} : memref<400x512xf32, #tpu.memory_space<vmem>>, vector<8x256xf32>,
    %c0_144 = arith.constant 0 : index
    %c0_145 = arith.constant 0 : index
    %c46 = arith.constant 46 : index
    %138 = vector.load %arg1[%c0_144, %c0_145, %c46] : memref<2x8x306xf32, #tpu.memory_space<vmem>>, vector<1x8x256xf32>
    %139 = vector.shape_cast %138 : vector<1x8x256xf32> to vector<8x256xf32>
    %c368 = arith.constant 368 : index
    %c0_146 = arith.constant 0 : index
    %140 = vector.load %arg6[%c368, %c0_146] : memref<400x512xf32, #tpu.memory_space<vmem>>, vector<8x256xf32>
    tpu.vector_store %arg6[%c368, %c0_146], %139 {strides = array<i32>} : memref<400x512xf32, #tpu.memory_space<vmem>>, vector<8x256xf32>,
    %c0_147 = arith.constant 0 : index
    %c0_148 = arith.constant 0 : index
    %c47 = arith.constant 47 : index
    %141 = vector.load %arg1[%c0_147, %c0_148, %c47] : memref<2x8x306xf32, #tpu.memory_space<vmem>>, vector<1x8x256xf32>
    %142 = vector.shape_cast %141 : vector<1x8x256xf32> to vector<8x256xf32>
    %c376 = arith.constant 376 : index
    %c0_149 = arith.constant 0 : index
    %143 = vector.load %arg6[%c376, %c0_149] : memref<400x512xf32, #tpu.memory_space<vmem>>, vector<8x256xf32>
    tpu.vector_store %arg6[%c376, %c0_149], %142 {strides = array<i32>} : memref<400x512xf32, #tpu.memory_space<vmem>>, vector<8x256xf32>,
    %c0_150 = arith.constant 0 : index
    %c0_151 = arith.constant 0 : index
    %c48_152 = arith.constant 48 : index
    %144 = vector.load %arg1[%c0_150, %c0_151, %c48_152] : memref<2x8x306xf32, #tpu.memory_space<vmem>>, vector<1x8x256xf32>
    %145 = vector.shape_cast %144 : vector<1x8x256xf32> to vector<8x256xf32>
    %c384 = arith.constant 384 : index
    %c0_153 = arith.constant 0 : index
    %146 = vector.load %arg6[%c384, %c0_153] : memref<400x512xf32, #tpu.memory_space<vmem>>, vector<8x256xf32>
    tpu.vector_store %arg6[%c384, %c0_153], %145 {strides = array<i32>} : memref<400x512xf32, #tpu.memory_space<vmem>>, vector<8x256xf32>,
    %c0_154 = arith.constant 0 : index
    %c0_155 = arith.constant 0 : index
    %c49 = arith.constant 49 : index
    %147 = vector.load %arg1[%c0_154, %c0_155, %c49] : memref<2x8x306xf32, #tpu.memory_space<vmem>>, vector<1x8x256xf32>
    %148 = vector.shape_cast %147 : vector<1x8x256xf32> to vector<8x256xf32>
    %c392 = arith.constant 392 : index
    %c0_156 = arith.constant 0 : index
    %149 = vector.load %arg6[%c392, %c0_156] : memref<400x512xf32, #tpu.memory_space<vmem>>, vector<8x256xf32>
    tpu.vector_store %arg6[%c392, %c0_156], %148 {strides = array<i32>} : memref<400x512xf32, #tpu.memory_space<vmem>>, vector<8x256xf32>,
    %c1_157 = arith.constant 1 : index
    %c0_158 = arith.constant 0 : index
    %c0_159 = arith.constant 0 : index
    %150 = vector.load %arg1[%c1_157, %c0_158, %c0_159] : memref<2x8x306xf32, #tpu.memory_space<vmem>>, vector<1x8x256xf32>
    %151 = vector.shape_cast %150 : vector<1x8x256xf32> to vector<8x256xf32>
    %c0_160 = arith.constant 0 : index
    %c256_161 = arith.constant 256 : index
    %152 = vector.load %arg6[%c0_160, %c256_161] : memref<400x512xf32, #tpu.memory_space<vmem>>, vector<8x256xf32>
    tpu.vector_store %arg6[%c0_160, %c256_161], %151 {strides = array<i32>} : memref<400x512xf32, #tpu.memory_space<vmem>>, vector<8x256xf32>,
    %c1_162 = arith.constant 1 : index
    %c0_163 = arith.constant 0 : index
    %c1_164 = arith.constant 1 : index
    %153 = vector.load %arg1[%c1_162, %c0_163, %c1_164] : memref<2x8x306xf32, #tpu.memory_space<vmem>>, vector<1x8x256xf32>
    %154 = vector.shape_cast %153 : vector<1x8x256xf32> to vector<8x256xf32>
    %c8_165 = arith.constant 8 : index
    %c256_166 = arith.constant 256 : index
    %155 = vector.load %arg6[%c8_165, %c256_166] : memref<400x512xf32, #tpu.memory_space<vmem>>, vector<8x256xf32>
    tpu.vector_store %arg6[%c8_165, %c256_166], %154 {strides = array<i32>} : memref<400x512xf32, #tpu.memory_space<vmem>>, vector<8x256xf32>,
    %c1_167 = arith.constant 1 : index
    %c0_168 = arith.constant 0 : index
    %c2_169 = arith.constant 2 : index
    %156 = vector.load %arg1[%c1_167, %c0_168, %c2_169] : memref<2x8x306xf32, #tpu.memory_space<vmem>>, vector<1x8x256xf32>
    %157 = vector.shape_cast %156 : vector<1x8x256xf32> to vector<8x256xf32>
    %c16_170 = arith.constant 16 : index
    %c256_171 = arith.constant 256 : index
    %158 = vector.load %arg6[%c16_170, %c256_171] : memref<400x512xf32, #tpu.memory_space<vmem>>, vector<8x256xf32>
    tpu.vector_store %arg6[%c16_170, %c256_171], %157 {strides = array<i32>} : memref<400x512xf32, #tpu.memory_space<vmem>>, vector<8x256xf32>,
    %c1_172 = arith.constant 1 : index
    %c0_173 = arith.constant 0 : index
    %c3_174 = arith.constant 3 : index
    %159 = vector.load %arg1[%c1_172, %c0_173, %c3_174] : memref<2x8x306xf32, #tpu.memory_space<vmem>>, vector<1x8x256xf32>
    %160 = vector.shape_cast %159 : vector<1x8x256xf32> to vector<8x256xf32>
    %c24_175 = arith.constant 24 : index
    %c256_176 = arith.constant 256 : index
    %161 = vector.load %arg6[%c24_175, %c256_176] : memref<400x512xf32, #tpu.memory_space<vmem>>, vector<8x256xf32>
    tpu.vector_store %arg6[%c24_175, %c256_176], %160 {strides = array<i32>} : memref<400x512xf32, #tpu.memory_space<vmem>>, vector<8x256xf32>,
    %c1_177 = arith.constant 1 : index
    %c0_178 = arith.constant 0 : index
    %c4_179 = arith.constant 4 : index
    %162 = vector.load %arg1[%c1_177, %c0_178, %c4_179] : memref<2x8x306xf32, #tpu.memory_space<vmem>>, vector<1x8x256xf32>
    %163 = vector.shape_cast %162 : vector<1x8x256xf32> to vector<8x256xf32>
    %c32_180 = arith.constant 32 : index
    %c256_181 = arith.constant 256 : index
    %164 = vector.load %arg6[%c32_180, %c256_181] : memref<400x512xf32, #tpu.memory_space<vmem>>, vector<8x256xf32>
    tpu.vector_store %arg6[%c32_180, %c256_181], %163 {strides = array<i32>} : memref<400x512xf32, #tpu.memory_space<vmem>>, vector<8x256xf32>,
    %c1_182 = arith.constant 1 : index
    %c0_183 = arith.constant 0 : index
    %c5_184 = arith.constant 5 : index
    %165 = vector.load %arg1[%c1_182, %c0_183, %c5_184] : memref<2x8x306xf32, #tpu.memory_space<vmem>>, vector<1x8x256xf32>
    %166 = vector.shape_cast %165 : vector<1x8x256xf32> to vector<8x256xf32>
    %c40_185 = arith.constant 40 : index
    %c256_186 = arith.constant 256 : index
    %167 = vector.load %arg6[%c40_185, %c256_186] : memref<400x512xf32, #tpu.memory_space<vmem>>, vector<8x256xf32>
    tpu.vector_store %arg6[%c40_185, %c256_186], %166 {strides = array<i32>} : memref<400x512xf32, #tpu.memory_space<vmem>>, vector<8x256xf32>,
    %c1_187 = arith.constant 1 : index
    %c0_188 = arith.constant 0 : index
    %c6_189 = arith.constant 6 : index
    %168 = vector.load %arg1[%c1_187, %c0_188, %c6_189] : memref<2x8x306xf32, #tpu.memory_space<vmem>>, vector<1x8x256xf32>
    %169 = vector.shape_cast %168 : vector<1x8x256xf32> to vector<8x256xf32>
    %c48_190 = arith.constant 48 : index
    %c256_191 = arith.constant 256 : index
    %170 = vector.load %arg6[%c48_190, %c256_191] : memref<400x512xf32, #tpu.memory_space<vmem>>, vector<8x256xf32>
    tpu.vector_store %arg6[%c48_190, %c256_191], %169 {strides = array<i32>} : memref<400x512xf32, #tpu.memory_space<vmem>>, vector<8x256xf32>,
    %c1_192 = arith.constant 1 : index
    %c0_193 = arith.constant 0 : index
    %c7_194 = arith.constant 7 : index
    %171 = vector.load %arg1[%c1_192, %c0_193, %c7_194] : memref<2x8x306xf32, #tpu.memory_space<vmem>>, vector<1x8x256xf32>
    %172 = vector.shape_cast %171 : vector<1x8x256xf32> to vector<8x256xf32>
    %c56_195 = arith.constant 56 : index
    %c256_196 = arith.constant 256 : index
    %173 = vector.load %arg6[%c56_195, %c256_196] : memref<400x512xf32, #tpu.memory_space<vmem>>, vector<8x256xf32>
    tpu.vector_store %arg6[%c56_195, %c256_196], %172 {strides = array<i32>} : memref<400x512xf32, #tpu.memory_space<vmem>>, vector<8x256xf32>,
    %c1_197 = arith.constant 1 : index
    %c0_198 = arith.constant 0 : index
    %c8_199 = arith.constant 8 : index
    %174 = vector.load %arg1[%c1_197, %c0_198, %c8_199] : memref<2x8x306xf32, #tpu.memory_space<vmem>>, vector<1x8x256xf32>
    %175 = vector.shape_cast %174 : vector<1x8x256xf32> to vector<8x256xf32>
    %c64_200 = arith.constant 64 : index
    %c256_201 = arith.constant 256 : index
    %176 = vector.load %arg6[%c64_200, %c256_201] : memref<400x512xf32, #tpu.memory_space<vmem>>, vector<8x256xf32>
    tpu.vector_store %arg6[%c64_200, %c256_201], %175 {strides = array<i32>} : memref<400x512xf32, #tpu.memory_space<vmem>>, vector<8x256xf32>,
    %c1_202 = arith.constant 1 : index
    %c0_203 = arith.constant 0 : index
    %c9_204 = arith.constant 9 : index
    %177 = vector.load %arg1[%c1_202, %c0_203, %c9_204] : memref<2x8x306xf32, #tpu.memory_space<vmem>>, vector<1x8x256xf32>
    %178 = vector.shape_cast %177 : vector<1x8x256xf32> to vector<8x256xf32>
    %c72_205 = arith.constant 72 : index
    %c256_206 = arith.constant 256 : index
    %179 = vector.load %arg6[%c72_205, %c256_206] : memref<400x512xf32, #tpu.memory_space<vmem>>, vector<8x256xf32>
    tpu.vector_store %arg6[%c72_205, %c256_206], %178 {strides = array<i32>} : memref<400x512xf32, #tpu.memory_space<vmem>>, vector<8x256xf32>,
    %c1_207 = arith.constant 1 : index
    %c0_208 = arith.constant 0 : index
    %c10_209 = arith.constant 10 : index
    %180 = vector.load %arg1[%c1_207, %c0_208, %c10_209] : memref<2x8x306xf32, #tpu.memory_space<vmem>>, vector<1x8x256xf32>
    %181 = vector.shape_cast %180 : vector<1x8x256xf32> to vector<8x256xf32>
    %c80_210 = arith.constant 80 : index
    %c256_211 = arith.constant 256 : index
    %182 = vector.load %arg6[%c80_210, %c256_211] : memref<400x512xf32, #tpu.memory_space<vmem>>, vector<8x256xf32>
    tpu.vector_store %arg6[%c80_210, %c256_211], %181 {strides = array<i32>} : memref<400x512xf32, #tpu.memory_space<vmem>>, vector<8x256xf32>,
    %c1_212 = arith.constant 1 : index
    %c0_213 = arith.constant 0 : index
    %c11_214 = arith.constant 11 : index
    %183 = vector.load %arg1[%c1_212, %c0_213, %c11_214] : memref<2x8x306xf32, #tpu.memory_space<vmem>>, vector<1x8x256xf32>
    %184 = vector.shape_cast %183 : vector<1x8x256xf32> to vector<8x256xf32>
    %c88_215 = arith.constant 88 : index
    %c256_216 = arith.constant 256 : index
    %185 = vector.load %arg6[%c88_215, %c256_216] : memref<400x512xf32, #tpu.memory_space<vmem>>, vector<8x256xf32>
    tpu.vector_store %arg6[%c88_215, %c256_216], %184 {strides = array<i32>} : memref<400x512xf32, #tpu.memory_space<vmem>>, vector<8x256xf32>,
    %c1_217 = arith.constant 1 : index
    %c0_218 = arith.constant 0 : index
    %c12_219 = arith.constant 12 : index
    %186 = vector.load %arg1[%c1_217, %c0_218, %c12_219] : memref<2x8x306xf32, #tpu.memory_space<vmem>>, vector<1x8x256xf32>
    %187 = vector.shape_cast %186 : vector<1x8x256xf32> to vector<8x256xf32>
    %c96_220 = arith.constant 96 : index
    %c256_221 = arith.constant 256 : index
    %188 = vector.load %arg6[%c96_220, %c256_221] : memref<400x512xf32, #tpu.memory_space<vmem>>, vector<8x256xf32>
    tpu.vector_store %arg6[%c96_220, %c256_221], %187 {strides = array<i32>} : memref<400x512xf32, #tpu.memory_space<vmem>>, vector<8x256xf32>,
    %c1_222 = arith.constant 1 : index
    %c0_223 = arith.constant 0 : index
    %c13_224 = arith.constant 13 : index
    %189 = vector.load %arg1[%c1_222, %c0_223, %c13_224] : memref<2x8x306xf32, #tpu.memory_space<vmem>>, vector<1x8x256xf32>
    %190 = vector.shape_cast %189 : vector<1x8x256xf32> to vector<8x256xf32>
    %c104_225 = arith.constant 104 : index
    %c256_226 = arith.constant 256 : index
    %191 = vector.load %arg6[%c104_225, %c256_226] : memref<400x512xf32, #tpu.memory_space<vmem>>, vector<8x256xf32>
    tpu.vector_store %arg6[%c104_225, %c256_226], %190 {strides = array<i32>} : memref<400x512xf32, #tpu.memory_space<vmem>>, vector<8x256xf32>,
    %c1_227 = arith.constant 1 : index
    %c0_228 = arith.constant 0 : index
    %c14_229 = arith.constant 14 : index
    %192 = vector.load %arg1[%c1_227, %c0_228, %c14_229] : memref<2x8x306xf32, #tpu.memory_space<vmem>>, vector<1x8x256xf32>
    %193 = vector.shape_cast %192 : vector<1x8x256xf32> to vector<8x256xf32>
    %c112_230 = arith.constant 112 : index
    %c256_231 = arith.constant 256 : index
    %194 = vector.load %arg6[%c112_230, %c256_231] : memref<400x512xf32, #tpu.memory_space<vmem>>, vector<8x256xf32>
    tpu.vector_store %arg6[%c112_230, %c256_231], %193 {strides = array<i32>} : memref<400x512xf32, #tpu.memory_space<vmem>>, vector<8x256xf32>,
    %c1_232 = arith.constant 1 : index
    %c0_233 = arith.constant 0 : index
    %c15_234 = arith.constant 15 : index
    %195 = vector.load %arg1[%c1_232, %c0_233, %c15_234] : memref<2x8x306xf32, #tpu.memory_space<vmem>>, vector<1x8x256xf32>
    %196 = vector.shape_cast %195 : vector<1x8x256xf32> to vector<8x256xf32>
    %c120_235 = arith.constant 120 : index
    %c256_236 = arith.constant 256 : index
    %197 = vector.load %arg6[%c120_235, %c256_236] : memref<400x512xf32, #tpu.memory_space<vmem>>, vector<8x256xf32>
    tpu.vector_store %arg6[%c120_235, %c256_236], %196 {strides = array<i32>} : memref<400x512xf32, #tpu.memory_space<vmem>>, vector<8x256xf32>,
    %c1_237 = arith.constant 1 : index
    %c0_238 = arith.constant 0 : index
    %c16_239 = arith.constant 16 : index
    %198 = vector.load %arg1[%c1_237, %c0_238, %c16_239] : memref<2x8x306xf32, #tpu.memory_space<vmem>>, vector<1x8x256xf32>
    %199 = vector.shape_cast %198 : vector<1x8x256xf32> to vector<8x256xf32>
    %c128_240 = arith.constant 128 : index
    %c256_241 = arith.constant 256 : index
    %200 = vector.load %arg6[%c128_240, %c256_241] : memref<400x512xf32, #tpu.memory_space<vmem>>, vector<8x256xf32>
    tpu.vector_store %arg6[%c128_240, %c256_241], %199 {strides = array<i32>} : memref<400x512xf32, #tpu.memory_space<vmem>>, vector<8x256xf32>,
    %c1_242 = arith.constant 1 : index
    %c0_243 = arith.constant 0 : index
    %c17_244 = arith.constant 17 : index
    %201 = vector.load %arg1[%c1_242, %c0_243, %c17_244] : memref<2x8x306xf32, #tpu.memory_space<vmem>>, vector<1x8x256xf32>
    %202 = vector.shape_cast %201 : vector<1x8x256xf32> to vector<8x256xf32>
    %c136_245 = arith.constant 136 : index
    %c256_246 = arith.constant 256 : index
    %203 = vector.load %arg6[%c136_245, %c256_246] : memref<400x512xf32, #tpu.memory_space<vmem>>, vector<8x256xf32>
    tpu.vector_store %arg6[%c136_245, %c256_246], %202 {strides = array<i32>} : memref<400x512xf32, #tpu.memory_space<vmem>>, vector<8x256xf32>,
    %c1_247 = arith.constant 1 : index
    %c0_248 = arith.constant 0 : index
    %c18_249 = arith.constant 18 : index
    %204 = vector.load %arg1[%c1_247, %c0_248, %c18_249] : memref<2x8x306xf32, #tpu.memory_space<vmem>>, vector<1x8x256xf32>
    %205 = vector.shape_cast %204 : vector<1x8x256xf32> to vector<8x256xf32>
    %c144_250 = arith.constant 144 : index
    %c256_251 = arith.constant 256 : index
    %206 = vector.load %arg6[%c144_250, %c256_251] : memref<400x512xf32, #tpu.memory_space<vmem>>, vector<8x256xf32>
    tpu.vector_store %arg6[%c144_250, %c256_251], %205 {strides = array<i32>} : memref<400x512xf32, #tpu.memory_space<vmem>>, vector<8x256xf32>,
    %c1_252 = arith.constant 1 : index
    %c0_253 = arith.constant 0 : index
    %c19_254 = arith.constant 19 : index
    %207 = vector.load %arg1[%c1_252, %c0_253, %c19_254] : memref<2x8x306xf32, #tpu.memory_space<vmem>>, vector<1x8x256xf32>
    %208 = vector.shape_cast %207 : vector<1x8x256xf32> to vector<8x256xf32>
    %c152_255 = arith.constant 152 : index
    %c256_256 = arith.constant 256 : index
    %209 = vector.load %arg6[%c152_255, %c256_256] : memref<400x512xf32, #tpu.memory_space<vmem>>, vector<8x256xf32>
    tpu.vector_store %arg6[%c152_255, %c256_256], %208 {strides = array<i32>} : memref<400x512xf32, #tpu.memory_space<vmem>>, vector<8x256xf32>,
    %c1_257 = arith.constant 1 : index
    %c0_258 = arith.constant 0 : index
    %c20_259 = arith.constant 20 : index
    %210 = vector.load %arg1[%c1_257, %c0_258, %c20_259] : memref<2x8x306xf32, #tpu.memory_space<vmem>>, vector<1x8x256xf32>
    %211 = vector.shape_cast %210 : vector<1x8x256xf32> to vector<8x256xf32>
    %c160_260 = arith.constant 160 : index
    %c256_261 = arith.constant 256 : index
    %212 = vector.load %arg6[%c160_260, %c256_261] : memref<400x512xf32, #tpu.memory_space<vmem>>, vector<8x256xf32>
    tpu.vector_store %arg6[%c160_260, %c256_261], %211 {strides = array<i32>} : memref<400x512xf32, #tpu.memory_space<vmem>>, vector<8x256xf32>,
    %c1_262 = arith.constant 1 : index
    %c0_263 = arith.constant 0 : index
    %c21_264 = arith.constant 21 : index
    %213 = vector.load %arg1[%c1_262, %c0_263, %c21_264] : memref<2x8x306xf32, #tpu.memory_space<vmem>>, vector<1x8x256xf32>
    %214 = vector.shape_cast %213 : vector<1x8x256xf32> to vector<8x256xf32>
    %c168_265 = arith.constant 168 : index
    %c256_266 = arith.constant 256 : index
    %215 = vector.load %arg6[%c168_265, %c256_266] : memref<400x512xf32, #tpu.memory_space<vmem>>, vector<8x256xf32>
    tpu.vector_store %arg6[%c168_265, %c256_266], %214 {strides = array<i32>} : memref<400x512xf32, #tpu.memory_space<vmem>>, vector<8x256xf32>,
    %c1_267 = arith.constant 1 : index
    %c0_268 = arith.constant 0 : index
    %c22_269 = arith.constant 22 : index
    %216 = vector.load %arg1[%c1_267, %c0_268, %c22_269] : memref<2x8x306xf32, #tpu.memory_space<vmem>>, vector<1x8x256xf32>
    %217 = vector.shape_cast %216 : vector<1x8x256xf32> to vector<8x256xf32>
    %c176_270 = arith.constant 176 : index
    %c256_271 = arith.constant 256 : index
    %218 = vector.load %arg6[%c176_270, %c256_271] : memref<400x512xf32, #tpu.memory_space<vmem>>, vector<8x256xf32>
    tpu.vector_store %arg6[%c176_270, %c256_271], %217 {strides = array<i32>} : memref<400x512xf32, #tpu.memory_space<vmem>>, vector<8x256xf32>,
    %c1_272 = arith.constant 1 : index
    %c0_273 = arith.constant 0 : index
    %c23_274 = arith.constant 23 : index
    %219 = vector.load %arg1[%c1_272, %c0_273, %c23_274] : memref<2x8x306xf32, #tpu.memory_space<vmem>>, vector<1x8x256xf32>
    %220 = vector.shape_cast %219 : vector<1x8x256xf32> to vector<8x256xf32>
    %c184_275 = arith.constant 184 : index
    %c256_276 = arith.constant 256 : index
    %221 = vector.load %arg6[%c184_275, %c256_276] : memref<400x512xf32, #tpu.memory_space<vmem>>, vector<8x256xf32>
    tpu.vector_store %arg6[%c184_275, %c256_276], %220 {strides = array<i32>} : memref<400x512xf32, #tpu.memory_space<vmem>>, vector<8x256xf32>,
    %c1_277 = arith.constant 1 : index
    %c0_278 = arith.constant 0 : index
    %c24_279 = arith.constant 24 : index
    %222 = vector.load %arg1[%c1_277, %c0_278, %c24_279] : memref<2x8x306xf32, #tpu.memory_space<vmem>>, vector<1x8x256xf32>
    %223 = vector.shape_cast %222 : vector<1x8x256xf32> to vector<8x256xf32>
    %c192_280 = arith.constant 192 : index
    %c256_281 = arith.constant 256 : index
    %224 = vector.load %arg6[%c192_280, %c256_281] : memref<400x512xf32, #tpu.memory_space<vmem>>, vector<8x256xf32>
    tpu.vector_store %arg6[%c192_280, %c256_281], %223 {strides = array<i32>} : memref<400x512xf32, #tpu.memory_space<vmem>>, vector<8x256xf32>,
    %c1_282 = arith.constant 1 : index
    %c0_283 = arith.constant 0 : index
    %c25_284 = arith.constant 25 : index
    %225 = vector.load %arg1[%c1_282, %c0_283, %c25_284] : memref<2x8x306xf32, #tpu.memory_space<vmem>>, vector<1x8x256xf32>
    %226 = vector.shape_cast %225 : vector<1x8x256xf32> to vector<8x256xf32>
    %c200_285 = arith.constant 200 : index
    %c256_286 = arith.constant 256 : index
    %227 = vector.load %arg6[%c200_285, %c256_286] : memref<400x512xf32, #tpu.memory_space<vmem>>, vector<8x256xf32>
    tpu.vector_store %arg6[%c200_285, %c256_286], %226 {strides = array<i32>} : memref<400x512xf32, #tpu.memory_space<vmem>>, vector<8x256xf32>,
    %c1_287 = arith.constant 1 : index
    %c0_288 = arith.constant 0 : index
    %c26_289 = arith.constant 26 : index
    %228 = vector.load %arg1[%c1_287, %c0_288, %c26_289] : memref<2x8x306xf32, #tpu.memory_space<vmem>>, vector<1x8x256xf32>
    %229 = vector.shape_cast %228 : vector<1x8x256xf32> to vector<8x256xf32>
    %c208_290 = arith.constant 208 : index
    %c256_291 = arith.constant 256 : index
    %230 = vector.load %arg6[%c208_290, %c256_291] : memref<400x512xf32, #tpu.memory_space<vmem>>, vector<8x256xf32>
    tpu.vector_store %arg6[%c208_290, %c256_291], %229 {strides = array<i32>} : memref<400x512xf32, #tpu.memory_space<vmem>>, vector<8x256xf32>,
    %c1_292 = arith.constant 1 : index
    %c0_293 = arith.constant 0 : index
    %c27_294 = arith.constant 27 : index
    %231 = vector.load %arg1[%c1_292, %c0_293, %c27_294] : memref<2x8x306xf32, #tpu.memory_space<vmem>>, vector<1x8x256xf32>
    %232 = vector.shape_cast %231 : vector<1x8x256xf32> to vector<8x256xf32>
    %c216_295 = arith.constant 216 : index
    %c256_296 = arith.constant 256 : index
    %233 = vector.load %arg6[%c216_295, %c256_296] : memref<400x512xf32, #tpu.memory_space<vmem>>, vector<8x256xf32>
    tpu.vector_store %arg6[%c216_295, %c256_296], %232 {strides = array<i32>} : memref<400x512xf32, #tpu.memory_space<vmem>>, vector<8x256xf32>,
    %c1_297 = arith.constant 1 : index
    %c0_298 = arith.constant 0 : index
    %c28_299 = arith.constant 28 : index
    %234 = vector.load %arg1[%c1_297, %c0_298, %c28_299] : memref<2x8x306xf32, #tpu.memory_space<vmem>>, vector<1x8x256xf32>
    %235 = vector.shape_cast %234 : vector<1x8x256xf32> to vector<8x256xf32>
    %c224_300 = arith.constant 224 : index
    %c256_301 = arith.constant 256 : index
    %236 = vector.load %arg6[%c224_300, %c256_301] : memref<400x512xf32, #tpu.memory_space<vmem>>, vector<8x256xf32>
    tpu.vector_store %arg6[%c224_300, %c256_301], %235 {strides = array<i32>} : memref<400x512xf32, #tpu.memory_space<vmem>>, vector<8x256xf32>,
    %c1_302 = arith.constant 1 : index
    %c0_303 = arith.constant 0 : index
    %c29_304 = arith.constant 29 : index
    %237 = vector.load %arg1[%c1_302, %c0_303, %c29_304] : memref<2x8x306xf32, #tpu.memory_space<vmem>>, vector<1x8x256xf32>
    %238 = vector.shape_cast %237 : vector<1x8x256xf32> to vector<8x256xf32>
    %c232_305 = arith.constant 232 : index
    %c256_306 = arith.constant 256 : index
    %239 = vector.load %arg6[%c232_305, %c256_306] : memref<400x512xf32, #tpu.memory_space<vmem>>, vector<8x256xf32>
    tpu.vector_store %arg6[%c232_305, %c256_306], %238 {strides = array<i32>} : memref<400x512xf32, #tpu.memory_space<vmem>>, vector<8x256xf32>,
    %c1_307 = arith.constant 1 : index
    %c0_308 = arith.constant 0 : index
    %c30_309 = arith.constant 30 : index
    %240 = vector.load %arg1[%c1_307, %c0_308, %c30_309] : memref<2x8x306xf32, #tpu.memory_space<vmem>>, vector<1x8x256xf32>
    %241 = vector.shape_cast %240 : vector<1x8x256xf32> to vector<8x256xf32>
    %c240_310 = arith.constant 240 : index
    %c256_311 = arith.constant 256 : index
    %242 = vector.load %arg6[%c240_310, %c256_311] : memref<400x512xf32, #tpu.memory_space<vmem>>, vector<8x256xf32>
    tpu.vector_store %arg6[%c240_310, %c256_311], %241 {strides = array<i32>} : memref<400x512xf32, #tpu.memory_space<vmem>>, vector<8x256xf32>,
    %c1_312 = arith.constant 1 : index
    %c0_313 = arith.constant 0 : index
    %c31_314 = arith.constant 31 : index
    %243 = vector.load %arg1[%c1_312, %c0_313, %c31_314] : memref<2x8x306xf32, #tpu.memory_space<vmem>>, vector<1x8x256xf32>
    %244 = vector.shape_cast %243 : vector<1x8x256xf32> to vector<8x256xf32>
    %c248_315 = arith.constant 248 : index
    %c256_316 = arith.constant 256 : index
    %245 = vector.load %arg6[%c248_315, %c256_316] : memref<400x512xf32, #tpu.memory_space<vmem>>, vector<8x256xf32>
    tpu.vector_store %arg6[%c248_315, %c256_316], %244 {strides = array<i32>} : memref<400x512xf32, #tpu.memory_space<vmem>>, vector<8x256xf32>,
    %c1_317 = arith.constant 1 : index
    %c0_318 = arith.constant 0 : index
    %c32_319 = arith.constant 32 : index
    %246 = vector.load %arg1[%c1_317, %c0_318, %c32_319] : memref<2x8x306xf32, #tpu.memory_space<vmem>>, vector<1x8x256xf32>
    %247 = vector.shape_cast %246 : vector<1x8x256xf32> to vector<8x256xf32>
    %c256_320 = arith.constant 256 : index
    %c256_321 = arith.constant 256 : index
    %248 = vector.load %arg6[%c256_320, %c256_321] : memref<400x512xf32, #tpu.memory_space<vmem>>, vector<8x256xf32>
    tpu.vector_store %arg6[%c256_320, %c256_321], %247 {strides = array<i32>} : memref<400x512xf32, #tpu.memory_space<vmem>>, vector<8x256xf32>,
    %c1_322 = arith.constant 1 : index
    %c0_323 = arith.constant 0 : index
    %c33_324 = arith.constant 33 : index
    %249 = vector.load %arg1[%c1_322, %c0_323, %c33_324] : memref<2x8x306xf32, #tpu.memory_space<vmem>>, vector<1x8x256xf32>
    %250 = vector.shape_cast %249 : vector<1x8x256xf32> to vector<8x256xf32>
    %c264_325 = arith.constant 264 : index
    %c256_326 = arith.constant 256 : index
    %251 = vector.load %arg6[%c264_325, %c256_326] : memref<400x512xf32, #tpu.memory_space<vmem>>, vector<8x256xf32>
    tpu.vector_store %arg6[%c264_325, %c256_326], %250 {strides = array<i32>} : memref<400x512xf32, #tpu.memory_space<vmem>>, vector<8x256xf32>,
    %c1_327 = arith.constant 1 : index
    %c0_328 = arith.constant 0 : index
    %c34_329 = arith.constant 34 : index
    %252 = vector.load %arg1[%c1_327, %c0_328, %c34_329] : memref<2x8x306xf32, #tpu.memory_space<vmem>>, vector<1x8x256xf32>
    %253 = vector.shape_cast %252 : vector<1x8x256xf32> to vector<8x256xf32>
    %c272_330 = arith.constant 272 : index
    %c256_331 = arith.constant 256 : index
    %254 = vector.load %arg6[%c272_330, %c256_331] : memref<400x512xf32, #tpu.memory_space<vmem>>, vector<8x256xf32>
    tpu.vector_store %arg6[%c272_330, %c256_331], %253 {strides = array<i32>} : memref<400x512xf32, #tpu.memory_space<vmem>>, vector<8x256xf32>,
    %c1_332 = arith.constant 1 : index
    %c0_333 = arith.constant 0 : index
    %c35_334 = arith.constant 35 : index
    %255 = vector.load %arg1[%c1_332, %c0_333, %c35_334] : memref<2x8x306xf32, #tpu.memory_space<vmem>>, vector<1x8x256xf32>
    %256 = vector.shape_cast %255 : vector<1x8x256xf32> to vector<8x256xf32>
    %c280_335 = arith.constant 280 : index
    %c256_336 = arith.constant 256 : index
    %257 = vector.load %arg6[%c280_335, %c256_336] : memref<400x512xf32, #tpu.memory_space<vmem>>, vector<8x256xf32>
    tpu.vector_store %arg6[%c280_335, %c256_336], %256 {strides = array<i32>} : memref<400x512xf32, #tpu.memory_space<vmem>>, vector<8x256xf32>,
    %c1_337 = arith.constant 1 : index
    %c0_338 = arith.constant 0 : index
    %c36_339 = arith.constant 36 : index
    %258 = vector.load %arg1[%c1_337, %c0_338, %c36_339] : memref<2x8x306xf32, #tpu.memory_space<vmem>>, vector<1x8x256xf32>
    %259 = vector.shape_cast %258 : vector<1x8x256xf32> to vector<8x256xf32>
    %c288_340 = arith.constant 288 : index
    %c256_341 = arith.constant 256 : index
    %260 = vector.load %arg6[%c288_340, %c256_341] : memref<400x512xf32, #tpu.memory_space<vmem>>, vector<8x256xf32>
    tpu.vector_store %arg6[%c288_340, %c256_341], %259 {strides = array<i32>} : memref<400x512xf32, #tpu.memory_space<vmem>>, vector<8x256xf32>,
    %c1_342 = arith.constant 1 : index
    %c0_343 = arith.constant 0 : index
    %c37_344 = arith.constant 37 : index
    %261 = vector.load %arg1[%c1_342, %c0_343, %c37_344] : memref<2x8x306xf32, #tpu.memory_space<vmem>>, vector<1x8x256xf32>
    %262 = vector.shape_cast %261 : vector<1x8x256xf32> to vector<8x256xf32>
    %c296_345 = arith.constant 296 : index
    %c256_346 = arith.constant 256 : index
    %263 = vector.load %arg6[%c296_345, %c256_346] : memref<400x512xf32, #tpu.memory_space<vmem>>, vector<8x256xf32>
    tpu.vector_store %arg6[%c296_345, %c256_346], %262 {strides = array<i32>} : memref<400x512xf32, #tpu.memory_space<vmem>>, vector<8x256xf32>,
    %c1_347 = arith.constant 1 : index
    %c0_348 = arith.constant 0 : index
    %c38_349 = arith.constant 38 : index
    %264 = vector.load %arg1[%c1_347, %c0_348, %c38_349] : memref<2x8x306xf32, #tpu.memory_space<vmem>>, vector<1x8x256xf32>
    %265 = vector.shape_cast %264 : vector<1x8x256xf32> to vector<8x256xf32>
    %c304_350 = arith.constant 304 : index
    %c256_351 = arith.constant 256 : index
    %266 = vector.load %arg6[%c304_350, %c256_351] : memref<400x512xf32, #tpu.memory_space<vmem>>, vector<8x256xf32>
    tpu.vector_store %arg6[%c304_350, %c256_351], %265 {strides = array<i32>} : memref<400x512xf32, #tpu.memory_space<vmem>>, vector<8x256xf32>,
    %c1_352 = arith.constant 1 : index
    %c0_353 = arith.constant 0 : index
    %c39_354 = arith.constant 39 : index
    %267 = vector.load %arg1[%c1_352, %c0_353, %c39_354] : memref<2x8x306xf32, #tpu.memory_space<vmem>>, vector<1x8x256xf32>
    %268 = vector.shape_cast %267 : vector<1x8x256xf32> to vector<8x256xf32>
    %c312_355 = arith.constant 312 : index
    %c256_356 = arith.constant 256 : index
    %269 = vector.load %arg6[%c312_355, %c256_356] : memref<400x512xf32, #tpu.memory_space<vmem>>, vector<8x256xf32>
    tpu.vector_store %arg6[%c312_355, %c256_356], %268 {strides = array<i32>} : memref<400x512xf32, #tpu.memory_space<vmem>>, vector<8x256xf32>,
    %c1_357 = arith.constant 1 : index
    %c0_358 = arith.constant 0 : index
    %c40_359 = arith.constant 40 : index
    %270 = vector.load %arg1[%c1_357, %c0_358, %c40_359] : memref<2x8x306xf32, #tpu.memory_space<vmem>>, vector<1x8x256xf32>
    %271 = vector.shape_cast %270 : vector<1x8x256xf32> to vector<8x256xf32>
    %c320_360 = arith.constant 320 : index
    %c256_361 = arith.constant 256 : index
    %272 = vector.load %arg6[%c320_360, %c256_361] : memref<400x512xf32, #tpu.memory_space<vmem>>, vector<8x256xf32>
    tpu.vector_store %arg6[%c320_360, %c256_361], %271 {strides = array<i32>} : memref<400x512xf32, #tpu.memory_space<vmem>>, vector<8x256xf32>,
    %c1_362 = arith.constant 1 : index
    %c0_363 = arith.constant 0 : index
    %c41_364 = arith.constant 41 : index
    %273 = vector.load %arg1[%c1_362, %c0_363, %c41_364] : memref<2x8x306xf32, #tpu.memory_space<vmem>>, vector<1x8x256xf32>
    %274 = vector.shape_cast %273 : vector<1x8x256xf32> to vector<8x256xf32>
    %c328_365 = arith.constant 328 : index
    %c256_366 = arith.constant 256 : index
    %275 = vector.load %arg6[%c328_365, %c256_366] : memref<400x512xf32, #tpu.memory_space<vmem>>, vector<8x256xf32>
    tpu.vector_store %arg6[%c328_365, %c256_366], %274 {strides = array<i32>} : memref<400x512xf32, #tpu.memory_space<vmem>>, vector<8x256xf32>,
    %c1_367 = arith.constant 1 : index
    %c0_368 = arith.constant 0 : index
    %c42_369 = arith.constant 42 : index
    %276 = vector.load %arg1[%c1_367, %c0_368, %c42_369] : memref<2x8x306xf32, #tpu.memory_space<vmem>>, vector<1x8x256xf32>
    %277 = vector.shape_cast %276 : vector<1x8x256xf32> to vector<8x256xf32>
    %c336_370 = arith.constant 336 : index
    %c256_371 = arith.constant 256 : index
    %278 = vector.load %arg6[%c336_370, %c256_371] : memref<400x512xf32, #tpu.memory_space<vmem>>, vector<8x256xf32>
    tpu.vector_store %arg6[%c336_370, %c256_371], %277 {strides = array<i32>} : memref<400x512xf32, #tpu.memory_space<vmem>>, vector<8x256xf32>,
    %c1_372 = arith.constant 1 : index
    %c0_373 = arith.constant 0 : index
    %c43_374 = arith.constant 43 : index
    %279 = vector.load %arg1[%c1_372, %c0_373, %c43_374] : memref<2x8x306xf32, #tpu.memory_space<vmem>>, vector<1x8x256xf32>
    %280 = vector.shape_cast %279 : vector<1x8x256xf32> to vector<8x256xf32>
    %c344_375 = arith.constant 344 : index
    %c256_376 = arith.constant 256 : index
    %281 = vector.load %arg6[%c344_375, %c256_376] : memref<400x512xf32, #tpu.memory_space<vmem>>, vector<8x256xf32>
    tpu.vector_store %arg6[%c344_375, %c256_376], %280 {strides = array<i32>} : memref<400x512xf32, #tpu.memory_space<vmem>>, vector<8x256xf32>,
    %c1_377 = arith.constant 1 : index
    %c0_378 = arith.constant 0 : index
    %c44_379 = arith.constant 44 : index
    %282 = vector.load %arg1[%c1_377, %c0_378, %c44_379] : memref<2x8x306xf32, #tpu.memory_space<vmem>>, vector<1x8x256xf32>
    %283 = vector.shape_cast %282 : vector<1x8x256xf32> to vector<8x256xf32>
    %c352_380 = arith.constant 352 : index
    %c256_381 = arith.constant 256 : index
    %284 = vector.load %arg6[%c352_380, %c256_381] : memref<400x512xf32, #tpu.memory_space<vmem>>, vector<8x256xf32>
    tpu.vector_store %arg6[%c352_380, %c256_381], %283 {strides = array<i32>} : memref<400x512xf32, #tpu.memory_space<vmem>>, vector<8x256xf32>,
    %c1_382 = arith.constant 1 : index
    %c0_383 = arith.constant 0 : index
    %c45_384 = arith.constant 45 : index
    %285 = vector.load %arg1[%c1_382, %c0_383, %c45_384] : memref<2x8x306xf32, #tpu.memory_space<vmem>>, vector<1x8x256xf32>
    %286 = vector.shape_cast %285 : vector<1x8x256xf32> to vector<8x256xf32>
    %c360_385 = arith.constant 360 : index
    %c256_386 = arith.constant 256 : index
    %287 = vector.load %arg6[%c360_385, %c256_386] : memref<400x512xf32, #tpu.memory_space<vmem>>, vector<8x256xf32>
    tpu.vector_store %arg6[%c360_385, %c256_386], %286 {strides = array<i32>} : memref<400x512xf32, #tpu.memory_space<vmem>>, vector<8x256xf32>,
    %c1_387 = arith.constant 1 : index
    %c0_388 = arith.constant 0 : index
    %c46_389 = arith.constant 46 : index
    %288 = vector.load %arg1[%c1_387, %c0_388, %c46_389] : memref<2x8x306xf32, #tpu.memory_space<vmem>>, vector<1x8x256xf32>
    %289 = vector.shape_cast %288 : vector<1x8x256xf32> to vector<8x256xf32>
    %c368_390 = arith.constant 368 : index
    %c256_391 = arith.constant 256 : index
    %290 = vector.load %arg6[%c368_390, %c256_391] : memref<400x512xf32, #tpu.memory_space<vmem>>, vector<8x256xf32>
    tpu.vector_store %arg6[%c368_390, %c256_391], %289 {strides = array<i32>} : memref<400x512xf32, #tpu.memory_space<vmem>>, vector<8x256xf32>,
    %c1_392 = arith.constant 1 : index
    %c0_393 = arith.constant 0 : index
    %c47_394 = arith.constant 47 : index
    %291 = vector.load %arg1[%c1_392, %c0_393, %c47_394] : memref<2x8x306xf32, #tpu.memory_space<vmem>>, vector<1x8x256xf32>
    %292 = vector.shape_cast %291 : vector<1x8x256xf32> to vector<8x256xf32>
    %c376_395 = arith.constant 376 : index
    %c256_396 = arith.constant 256 : index
    %293 = vector.load %arg6[%c376_395, %c256_396] : memref<400x512xf32, #tpu.memory_space<vmem>>, vector<8x256xf32>
    tpu.vector_store %arg6[%c376_395, %c256_396], %292 {strides = array<i32>} : memref<400x512xf32, #tpu.memory_space<vmem>>, vector<8x256xf32>,
    %c1_397 = arith.constant 1 : index
    %c0_398 = arith.constant 0 : index
    %c48_399 = arith.constant 48 : index
    %294 = vector.load %arg1[%c1_397, %c0_398, %c48_399] : memref<2x8x306xf32, #tpu.memory_space<vmem>>, vector<1x8x256xf32>
    %295 = vector.shape_cast %294 : vector<1x8x256xf32> to vector<8x256xf32>
    %c384_400 = arith.constant 384 : index
    %c256_401 = arith.constant 256 : index
    %296 = vector.load %arg6[%c384_400, %c256_401] : memref<400x512xf32, #tpu.memory_space<vmem>>, vector<8x256xf32>
    tpu.vector_store %arg6[%c384_400, %c256_401], %295 {strides = array<i32>} : memref<400x512xf32, #tpu.memory_space<vmem>>, vector<8x256xf32>,
    %c1_402 = arith.constant 1 : index
    %c0_403 = arith.constant 0 : index
    %c49_404 = arith.constant 49 : index
    %297 = vector.load %arg1[%c1_402, %c0_403, %c49_404] : memref<2x8x306xf32, #tpu.memory_space<vmem>>, vector<1x8x256xf32>
    %298 = vector.shape_cast %297 : vector<1x8x256xf32> to vector<8x256xf32>
    %c392_405 = arith.constant 392 : index
    %c256_406 = arith.constant 256 : index
    %299 = vector.load %arg6[%c392_405, %c256_406] : memref<400x512xf32, #tpu.memory_space<vmem>>, vector<8x256xf32>
    tpu.vector_store %arg6[%c392_405, %c256_406], %298 {strides = array<i32>} : memref<400x512xf32, #tpu.memory_space<vmem>>, vector<8x256xf32>,
    %c0_407 = arith.constant 0 : index
    %c0_408 = arith.constant 0 : index
    %300 = vector.load %arg6[%c0_407, %c0_408] : memref<400x512xf32, #tpu.memory_space<vmem>>, vector<400x512xf32>
    %301 = arith.truncf %300 : vector<400x512xf32> to vector<400x512xbf16>
    %c0_409 = arith.constant 0 : index
    %c0_410 = arith.constant 0 : index
    %302 = vector.load %arg2[%c0_409, %c0_410] : memref<256x400xbf16, #tpu.memory_space<vmem>>, vector<256x400xbf16>
    %cst = arith.constant dense<0.000000e+00> : vector<256x512xf32>
    %303 = tpu.matmul %302, %301, %cst {dimension_numbers = #tpu.dot_dimension_numbers<[1], [0], [0], [1], [0, 0, 1, 1], [], []>} : vector<256x400xbf16>, vector<400x512xbf16>, vector<256x512xf32> -> vector<256x512xf32>
    %304 = arith.mulf %303, %303 : vector<256x512xf32>
    %305 = arith.truncf %304 : vector<256x512xf32> to vector<256x512xbf16>
    %c0_411 = arith.constant 0 : index
    %c0_412 = arith.constant 0 : index
    %306 = vector.load %arg3[%c0_411, %c0_412] : memref<16x256xbf16, #tpu.memory_space<vmem>>, vector<16x256xbf16>
    %cst_413 = arith.constant dense<0.000000e+00> : vector<16x512xf32>
    %307 = tpu.matmul %306, %305, %cst_413 {dimension_numbers = #tpu.dot_dimension_numbers<[1], [0], [0], [1], [0, 0, 1, 1], [], []>} : vector<16x256xbf16>, vector<256x512xbf16>, vector<16x512xf32> -> vector<16x512xf32>
    %cst_414 = arith.constant 9.99999997E-7 : f32
    %308 = vector.broadcast %cst_414 : f32 to vector<16x512xf32>
    %309 = arith.addf %307, %308 : vector<16x512xf32>
    %310 = math.log %309 : vector<16x512xf32>
    %311 = arith.truncf %310 : vector<16x512xf32> to vector<16x512xbf16>
    %c0_415 = arith.constant 0 : index
    %c0_416 = arith.constant 0 : index
    %312 = vector.load %arg4[%c0_415, %c0_416] : memref<256x128xbf16, #tpu.memory_space<vmem>>, vector<256x128xbf16>
    %313 = vector.extract_strided_slice %311 {offsets = [0, 0], sizes = [16, 256], strides = [1, 1]} : vector<16x512xbf16> to vector<16x256xbf16>
    %cst_417 = arith.constant dense<0.000000e+00> : vector<16x128xf32>
    %314 = tpu.matmul %313, %312, %cst_417 {dimension_numbers = #tpu.dot_dimension_numbers<[1], [0], [0], [1], [0, 0, 1, 1], [], []>} : vector<16x256xbf16>, vector<256x128xbf16>, vector<16x128xf32> -> vector<16x128xf32>
    %cst_418 = arith.constant 0.899999976 : f32
    %315 = vector.broadcast %cst_418 : f32 to vector<16x128xf32>
    %316 = arith.addf %314, %315 : vector<16x128xf32>
    %c0_419 = arith.constant 0 : index
    %c0_420 = arith.constant 0 : index
    %c0_421 = arith.constant 0 : index
    %317 = vector.load %arg5[%c0_419, %c0_420, %c0_421] : memref<2x16x128xf32, #tpu.memory_space<vmem>>, vector<1x16x128xf32>
    %318 = vector.shape_cast %317 : vector<1x16x128xf32> to vector<16x128xf32>
    %319 = vector.shape_cast %316 : vector<16x128xf32> to vector<1x16x128xf32>
    tpu.vector_store %arg5[%c0_419, %c0_420, %c0_421], %319 {strides = array<i32>} : memref<2x16x128xf32, #tpu.memory_space<vmem>>, vector<1x16x128xf32>,
    %320 = vector.extract_strided_slice %311 {offsets = [0, 256], sizes = [16, 256], strides = [1, 1]} : vector<16x512xbf16> to vector<16x256xbf16>
    %cst_422 = arith.constant dense<0.000000e+00> : vector<16x128xf32>
    %321 = tpu.matmul %320, %312, %cst_422 {dimension_numbers = #tpu.dot_dimension_numbers<[1], [0], [0], [1], [0, 0, 1, 1], [], []>} : vector<16x256xbf16>, vector<256x128xbf16>, vector<16x128xf32> -> vector<16x128xf32>
    %cst_423 = arith.constant 0.899999976 : f32
    %322 = vector.broadcast %cst_423 : f32 to vector<16x128xf32>
    %323 = arith.addf %321, %322 : vector<16x128xf32>
    %c1_424 = arith.constant 1 : index
    %c0_425 = arith.constant 0 : index
    %c0_426 = arith.constant 0 : index
    %324 = vector.load %arg5[%c1_424, %c0_425, %c0_426] : memref<2x16x128xf32, #tpu.memory_space<vmem>>, vector<1x16x128xf32>
    %325 = vector.shape_cast %324 : vector<1x16x128xf32> to vector<16x128xf32>
    %326 = vector.shape_cast %323 : vector<16x128xf32> to vector<1x16x128xf32>
    tpu.vector_store %arg5[%c1_424, %c0_425, %c0_426], %326 {strides = array<i32>} : memref<2x16x128xf32, #tpu.memory_space<vmem>>, vector<1x16x128xf32>,
    return
  }
  func.func @transform_0(%arg0: i32) -> (i32, i32, i32) {
    %c0_i32 = arith.constant 0 : i32
    %c0_i32_0 = arith.constant 0 : i32
    %c0_i32_1 = arith.constant 0 : i32
    return %arg0, %c0_i32, %c0_i32_0 : i32, i32, i32
  }
  func.func @transform_1(%arg0: i32) -> (i32, i32) {
    %c0_i32 = arith.constant 0 : i32
    %c0_i32_0 = arith.constant 0 : i32
    %c0_i32_1 = arith.constant 0 : i32
    return %c0_i32, %c0_i32_0 : i32, i32
  }
  func.func @transform_2(%arg0: i32) -> (i32, i32) {
    %c0_i32 = arith.constant 0 : i32
    %c0_i32_0 = arith.constant 0 : i32
    %c0_i32_1 = arith.constant 0 : i32
    return %c0_i32, %c0_i32_0 : i32, i32
  }
  func.func @transform_3(%arg0: i32) -> (i32, i32) {
    %c0_i32 = arith.constant 0 : i32
    %c0_i32_0 = arith.constant 0 : i32
    %c0_i32_1 = arith.constant 0 : i32
    return %c0_i32, %c0_i32_0 : i32, i32
  }
  func.func @transform_4(%arg0: i32) -> (i32, i32, i32) {
    %c0_i32 = arith.constant 0 : i32
    %c0_i32_0 = arith.constant 0 : i32
    %c0_i32_1 = arith.constant 0 : i32
    return %arg0, %c0_i32, %c0_i32_0 : i32, i32, i32
  }
}

</mosaic_0001>

<bundles_post_ra>
// kernel: tpu_custom_call.1
= control target key start
LH: loop header
LB: loop body
LE: loop exit
PB: predicated region body
PF: predicated region fallthrough
CT: control target
= control target key end

     0   :  { %s5248_s27 = smov 127   ;;  %s5249_s28 = smov 126   ;;  %s6097_s0 = inlined_call_operand.vmem [shape: f32[2,8,306], index: 0, kind: input, shape index: {}]   ;;  %s6098_s1 = inlined_call_operand.vmem [shape: bf16[256,400], index: 1, kind: input, shape index: {}]   ;;  %s6099_s2 = inlined_call_operand.vmem [shape: bf16[16,256], index: 2, kind: input, shape index: {}]   ;;  %s6100_s3 = inlined_call_operand.vmem [shape: bf16[256,128], index: 3, kind: input, shape index: {}]   ;;  %s6101_s4 = inlined_call_operand.hbm [shape: f32[2,16,128], index: 4, kind: output, shape index: {}]  }
   0x1   :  { %v5328_v0 = vld [vmem:[%s6097_s0 + $0x8] sm:$0xff]  ;;  %v25_v1 = vld [vmem:[%s6097_s0 + $0x10] sm:$0xff]  ;;  %v5336_v2 = vld [vmem:[%s6097_s0] sm:$0xff]  ;;  %s5250_s29 = smov 125   ;;  %s5251_s30 = smov 124  }
   0x2   :  { %v5339_v3 = vpack.i.bf16 %v25_v1, %v5328_v0  ;;  %v5344_v4 = vld [vmem:[%s6097_s0 + $0x18] sm:$0xff]  ;;  %v5349_v5 = vld [vmem:[%s6097_s0 + $0x20] sm:$0xff]  ;;  %v3875_v6 = vld [vmem:[%s6097_s0 + $0x28] sm:$0xff]  ;;  %s5252_s5 = smov 123   ;;  %s5253_s6 = smov 122  }
   0x3   :  { %v5356_v7 = vpack.i.bf16 %v5344_v4, %v5336_v2  ;;  %v5360_v8 = vpack.i.bf16 %v3875_v6, %v5349_v5  ;;  %s5254_s7 = smov 121  }
   0x4   :  { %4359 = vrot.lane.b32.xlu0 %v5339_v3, %s5248_s27 }
   0x5   :  { %4369 = vrot.lane.b32.xlu1 %v5356_v7, %s5248_s27 }
   0x8   :  { %4364 = vrot.lane.b32.xlu0 %v5360_v8, %s5248_s27 }
   0x9   :  { %4374 = vrot.lane.b32.xlu1 %v5339_v3, %s5249_s28 }
   0xc   :  { %4379 = vrot.lane.b32.xlu0 %v5339_v3, %s5250_s29 }
   0xd   :  { %4384 = vrot.lane.b32.xlu1 %v5360_v8, %s5249_s28 }
  0x10   :  { %4389 = vrot.lane.b32.xlu0 %v5360_v8, %s5250_s29 }
  0x11   :  { %4394 = vrot.lane.b32.xlu1 %v5356_v7, %s5249_s28 }
  0x14   :  { %4399 = vrot.lane.b32.xlu0 %v5356_v7, %s5250_s29 }
  0x15   :  { %4404 = vrot.lane.b32.xlu1 %v5339_v3, %s5251_s30 }
  0x18   :  { %4409 = vrot.lane.b32.xlu0 %v5339_v3, %s5252_s5 }
  0x19   :  { %4414 = vrot.lane.b32.xlu1 %v5360_v8, %s5251_s30 }
  0x1c   :  { %4419 = vrot.lane.b32.xlu0 %v5360_v8, %s5252_s5 }
  0x1d   :  { %4424 = vrot.lane.b32.xlu1 %v5356_v7, %s5251_s30 }
  0x20   :  { %4429 = vrot.lane.b32.xlu0 %v5356_v7, %s5252_s5 }
  0x21   :  { %4434 = vrot.lane.b32.xlu1 %v5339_v3, %s5253_s6 }
  0x24   :  { %4439 = vrot.lane.b32.xlu0 %v5339_v3, %s5254_s7 }
  0x25   :  { %9 = vsyncpa [#allocation4], 0  ;;  %4444 = vrot.lane.b32.xlu1 %v5360_v8, %s5253_s6  ;;  %s5255_s8 = smov 120   ;;  %s5256_s9 = smov 119   ;;  %vm35_vm0 = vcmask 1039360   ;;  %vm54_vm1 = vcmask 1031168  }
  0x26   :  { %s5257_s10 = smov 118   ;;  %s5258_s11 = smov 117   ;;  %vm73_vm2 = vcmask 1022976   ;;  %vm92_vm3 = vcmask 1014784   ;;  %vm111_vm4 = vcmask 1006592   ;;  %vm130_vm5 = vcmask 998400  }
  0x27   :  { %s5259_s12 = smov 116   ;;  %s5260_s13 = smov 115   ;;  %vm149_vm6 = vcmask 990208   ;;  %vm168_vm7 = vcmask 982016   ;;  %vm187_vm8 = vcmask 973824   ;;  %vm206_vm9 = vcmask 965632  }
  0x28   :  { %4449 = vrot.lane.b32.xlu0 %v5360_v8, %s5254_s7  ;;  %s5261_s14 = smov 114   ;;  %s5262_s15 = smov 113   ;;  %vm225_vm10 = vcmask 957440   ;;  %vm244_vm11 = vcmask 949248   ;;  %vm263_vm12 = vcmask 941056   ;;  %vm282_vm13 = vcmask 932864  }
  0x29   :  { %4454 = vrot.lane.b32.xlu1 %v5356_v7, %s5253_s6  ;;  %s5263_s16 = smov 112   ;;  %s5264_s17 = smov 111   ;;  %vm301_vm14 = vcmask 924672   ;;  %vm320_vm15 = vcmask 916480  }
  0x2a   :  { %s5265_s18 = smov 110   ;;  %s5266_s19 = smov 109  }
  0x2b   :  { %s5267_s20 = smov 108   ;;  %s5268_s21 = smov 107  }
  0x2c   :  { %4459 = vrot.lane.b32.xlu0 %v5356_v7, %s5254_s7  ;;  %s5269_s22 = smov 106   ;;  %s5270_s23 = smov 105  }
  0x2d   :  { %4464 = vrot.lane.b32.xlu1 %v5339_v3, %s5255_s8  ;;  %s5271_s24 = smov 104   ;;  %s5272_s25 = smov 103  }
  0x2e   :  { %s5273_s26 = smov 102   ;;  %s5274_s27 = smov 101  }
  0x2f   :  { %s5275_s28 = smov 100   ;;  %s5288_s29 = smov 87  }
  0x30   :  { %4469 = vrot.lane.b32.xlu0 %v5339_v3, %s5256_s9  ;;  %s5289_s30 = smov 86   ;;  %s5290_s5 = smov 85  }
  0x31   :  { %4474 = vrot.lane.b32.xlu1 %v5360_v8, %s5255_s8 }
  0x34   :  { %4479 = vrot.lane.b32.xlu0 %v5360_v8, %s5256_s9 }
  0x35   :  { %4484 = vrot.lane.b32.xlu1 %v5356_v7, %s5255_s8 }
  0x38   :  { %4489 = vrot.lane.b32.xlu0 %v5356_v7, %s5256_s9 }
  0x39   :  { %4494 = vrot.lane.b32.xlu1 %v5339_v3, %s5257_s10 }
  0x3c   :  { %4499 = vrot.lane.b32.xlu0 %v5339_v3, %s5258_s11 }
  0x3d   :  { %4504 = vrot.lane.b32.xlu1 %v5360_v8, %s5257_s10 }
  0x40   :  { %4509 = vrot.lane.b32.xlu0 %v5360_v8, %s5258_s11 }
  0x41   :  { %4514 = vrot.lane.b32.xlu1 %v5356_v7, %s5257_s10  ;;  %s5291_s10 = smov 84  }
  0x44   :  { %4519 = vrot.lane.b32.xlu0 %v5356_v7, %s5258_s11  ;;  %s5276_s11 = smov 99  }
  0x45   :  { %4524 = vrot.lane.b32.xlu1 %v5339_v3, %s5259_s12 }
  0x48   :  { %4529 = vrot.lane.b32.xlu0 %v5339_v3, %s5260_s13 }
  0x49   :  { %4534 = vrot.lane.b32.xlu1 %v5360_v8, %s5259_s12 }
  0x4c   :  { %4539 = vrot.lane.b32.xlu0 %v5360_v8, %s5260_s13 }
  0x4d   :  { %4544 = vrot.lane.b32.xlu1 %v5356_v7, %s5259_s12 }
  0x50   :  { %4549 = vrot.lane.b32.xlu0 %v5356_v7, %s5260_s13 }
  0x51   :  { %4554 = vrot.lane.b32.xlu1 %v5339_v3, %s5261_s14 }
  0x54   :  { %4559 = vrot.lane.b32.xlu0 %v5339_v3, %s5262_s15 }
  0x55   :  { %4564 = vrot.lane.b32.xlu1 %v5360_v8, %s5261_s14 }
  0x58   :  { %4569 = vrot.lane.b32.xlu0 %v5360_v8, %s5262_s15 }
  0x59   :  { %4574 = vrot.lane.b32.xlu1 %v5356_v7, %s5261_s14 }
  0x5c   :  { %4579 = vrot.lane.b32.xlu0 %v5356_v7, %s5262_s15  ;;  %s5292_s15 = smov 83  }
  0x5d   :  { %4584 = vrot.lane.b32.xlu1 %v5339_v3, %s5263_s16 }
  0x60   :  { %4589 = vrot.lane.b32.xlu0 %v5339_v3, %s5264_s17 }
  0x61   :  { %4594 = vrot.lane.b32.xlu1 %v5360_v8, %s5263_s16 }
  0x64   :  { %4599 = vrot.lane.b32.xlu0 %v5360_v8, %s5264_s17 }
  0x65   :  { %4604 = vrot.lane.b32.xlu1 %v5356_v7, %s5263_s16  ;;  %s5277_s16 = smov 98  }
  0x68   :  { %4609 = vrot.lane.b32.xlu0 %v5356_v7, %s5264_s17  ;;  %s5278_s17 = smov 97  }
  0x69   :  { %4614 = vrot.lane.b32.xlu1 %v5339_v3, %s5265_s18 }
  0x6c   :  { %4619 = vrot.lane.b32.xlu0 %v5339_v3, %s5266_s19 }
  0x6d   :  { %4624 = vrot.lane.b32.xlu1 %v5360_v8, %s5265_s18 }
  0x70   :  { %4629 = vrot.lane.b32.xlu0 %v5360_v8, %s5266_s19 }
  0x71   :  { %4634 = vrot.lane.b32.xlu1 %v5356_v7, %s5265_s18 }
  0x74   :  { %4639 = vrot.lane.b32.xlu0 %v5356_v7, %s5266_s19 }
  0x75   :  { %4644 = vrot.lane.b32.xlu1 %v5339_v3, %s5267_s20 }
  0x76   :  { %v4360_v9 = vpop.permute.xlu0 %4359 }
  0x77   :  { %v4362_v10 = vunpack.i.h.bf16 %v4360_v9  ;;  %v4361_v11 = vunpack.i.l.bf16 %v4360_v9  ;;  %v4370_v12 = vpop.permute.xlu1 %4369 }
  0x78   :  { %v4371_v13 = vunpack.i.l.bf16 %v4370_v12  ;;  %4649 = vrot.lane.b32.xlu0 %v5339_v3, %s5268_s21  ;;  %v4372_v14 = vunpack.i.h.bf16 %v4370_v12 }
  0x79   :  { %4654 = vrot.lane.b32.xlu1 %v5360_v8, %s5267_s20  ;;  %v37_v15 = vsel %vm35_vm0, %v4361_v11, %v4362_v10 }
  0x7a   :  { %v4365_v16 = vpop.permute.xlu0 %4364  ;;  %v2042_v17 = vpack.c.bf16 %v37_v15, %v5328_v0  ;;  %v36_v18 = vsel %vm35_vm0, %v4371_v13, %v4361_v11 }
  0x7b   :  { %v4367_v19 = vunpack.i.h.bf16 %v4365_v16  ;;  %v4366_v20 = vunpack.i.l.bf16 %v4365_v16  ;;  %v4375_v21 = vpop.permute.xlu1 %4374  ;;  %v2041_v22 = vpack.c.bf16 %v36_v18, %v5336_v2 }
  0x7c   :  { %v4377_v23 = vunpack.i.h.bf16 %v4375_v21  ;;  %v4376_v24 = vunpack.i.l.bf16 %v4375_v21  ;;  %4659 = vrot.lane.b32.xlu0 %v5360_v8, %s5268_s21  ;;  %2558 = vmatprep.subr.bf16.mxu0 %v2042_v17 }
  0x7d   :  { %4664 = vrot.lane.b32.xlu1 %v5356_v7, %s5267_s20  ;;  %2559 = vmatpush1.bf16.msra.mxu0 %v2041_v22  ;;  %v972_v25 = vsel %vm35_vm0, %v4366_v20, %v4367_v19  ;;  %v971_v26 = vsel %vm35_vm0, %v4372_v14, %v4366_v20  ;;  %s5279_s20 = smov 96   ;;  %vm339_vm0 = vcmask 908288  }
  0x7e   :  { %v4380_v27 = vpop.permute.xlu0 %4379  ;;  %v2044_v28 = vpack.c.bf16 %v972_v25, %v5349_v5  ;;  %v2043_v29 = vpack.c.bf16 %v971_v26, %v5344_v4  ;;  %v56_v33 = vsel %vm54_vm1, %v4376_v24, %v4377_v23 }
  0x7f   :  { %v4382_v30 = vunpack.i.h.bf16 %v4380_v27  ;;  %v4381_v31 = vunpack.i.l.bf16 %v4380_v27  ;;  %v4385_v32 = vpop.permute.xlu1 %4384 }
  0x80   :  { %v4387_v34 = vunpack.i.h.bf16 %v4385_v32  ;;  %v4386_v35 = vunpack.i.l.bf16 %v4385_v32  ;;  %4669 = vrot.lane.b32.xlu0 %v5356_v7, %s5268_s21  ;;  %2944 = vmatprep.subr.bf16.mxu1 %v2044_v28  ;;  %s5280_s21 = smov 95  }
  0x81   :  { %4674 = vrot.lane.b32.xlu1 %v5339_v3, %s5269_s22  ;;  %2945 = vmatpush1.bf16.msra.mxu1 %v2043_v29  ;;  %v75_v36 = vsel %vm73_vm2, %v4381_v31, %v4382_v30 }
  0x82   :  { %v4390_v37 = vpop.permute.xlu0 %4389  ;;  %v2046_v38 = vpack.c.bf16 %v75_v36, %v56_v33  ;;  %v990_v42 = vsel %vm54_vm1, %v4386_v35, %v4387_v34 }
  0x83   :  { %v4392_v39 = vunpack.i.h.bf16 %v4390_v37  ;;  %v4391_v40 = vunpack.i.l.bf16 %v4390_v37  ;;  %v4395_v41 = vpop.permute.xlu1 %4394 }
  0x84   :  { %4679 = vrot.lane.b32.xlu0 %v5339_v3, %s5270_s23  ;;  %2560 = vmatprep.subr.bf16.mxu0 %v2046_v38  ;;  %v4397_v43 = vunpack.i.h.bf16 %v4395_v41  ;;  %v4396_v44 = vunpack.i.l.bf16 %v4395_v41 }
  0x85   :  { %4684 = vrot.lane.b32.xlu1 %v5360_v8, %s5269_s22  ;;  %v1008_v45 = vsel %vm73_vm2, %v4391_v40, %v4392_v39 }
  0x86   :  { %v4400_v46 = vpop.permute.xlu0 %4399  ;;  %v2048_v47 = vpack.c.bf16 %v1008_v45, %v990_v42  ;;  %v55_v53 = vsel %vm54_vm1, %v4396_v44, %v4376_v24  ;;  %v989_v55 = vsel %vm54_vm1, %v4397_v43, %v4386_v35  ;;  %vm358_vm1 = vcmask 900096  }
  0x87   :  { %v4402_v48 = vunpack.i.h.bf16 %v4400_v46  ;;  %v4401_v49 = vunpack.i.l.bf16 %v4400_v46  ;;  %v4405_v50 = vpop.permute.xlu1 %4404 }
  0x88   :  { %v4407_v51 = vunpack.i.h.bf16 %v4405_v50  ;;  %v4406_v52 = vunpack.i.l.bf16 %v4405_v50  ;;  %4689 = vrot.lane.b32.xlu0 %v5360_v8, %s5270_s23  ;;  %2946 = vmatprep.subr.bf16.mxu1 %v2048_v47 }
  0x89   :  { %4694 = vrot.lane.b32.xlu1 %v5356_v7, %s5269_s22  ;;  %v74_v54 = vsel %vm73_vm2, %v4401_v49, %v4381_v31  ;;  %v1007_v56 = vsel %vm73_vm2, %v4402_v48, %v4391_v40  ;;  %s5281_s22 = smov 94   ;;  %vm377_vm2 = vcmask 891904  }
  0x8a   :  { %v4410_v57 = vpop.permute.xlu0 %4409  ;;  %v2045_v58 = vpack.c.bf16 %v74_v54, %v55_v53  ;;  %v2047_v59 = vpack.c.bf16 %v1007_v56, %v989_v55  ;;  %v94_v63 = vsel %vm92_vm3, %v4406_v52, %v4407_v51 }
  0x8b   :  { %v4412_v60 = vunpack.i.h.bf16 %v4410_v57  ;;  %v4411_v61 = vunpack.i.l.bf16 %v4410_v57  ;;  %v4415_v62 = vpop.permute.xlu1 %4414 }
  0x8c   :  { %v4417_v0 = vunpack.i.h.bf16 %v4415_v62  ;;  %v4416_v1 = vunpack.i.l.bf16 %v4415_v62  ;;  %4699 = vrot.lane.b32.xlu0 %v5356_v7, %s5270_s23  ;;  %2561 = vmatpush1.bf16.msra.mxu0 %v2045_v58  ;;  %s5282_s23 = smov 93  }
  0x8d   :  { %4704 = vrot.lane.b32.xlu1 %v5339_v3, %s5271_s24  ;;  %2947 = vmatpush1.bf16.msra.mxu1 %v2047_v59  ;;  %v113_v2 = vsel %vm111_vm4, %v4411_v61, %v4412_v60 }
  0x8e   :  { %v4420_v4 = vpop.permute.xlu0 %4419  ;;  %v2050_v5 = vpack.c.bf16 %v113_v2, %v94_v63  ;;  %v1026_v11 = vsel %vm92_vm3, %v4416_v1, %v4417_v0  ;;  %v3958_v2 = vld [vmem:[%s6097_s0 + $0x20] sm:$0xff] }
  0x8f   :  { %v4422_v6 = vunpack.i.h.bf16 %v4420_v4  ;;  %v4421_v9 = vunpack.i.l.bf16 %v4420_v4  ;;  %v4425_v10 = vpop.permute.xlu1 %4424  ;;  %v3959_v4 = vld [vmem:[%s6097_s0 + $0x28] sm:$0xff] }
  0x90   :  { %4709 = vrot.lane.b32.xlu0 %v5339_v3, %s5272_s25  ;;  %2562 = vmatprep.subr.bf16.mxu0 %v2050_v5  ;;  %v4427_v12 = vunpack.i.h.bf16 %v4425_v10  ;;  %v4426_v13 = vunpack.i.l.bf16 %v4425_v10 }
  0x91   :  { %4714 = vrot.lane.b32.xlu1 %v5360_v8, %s5271_s24  ;;  %v1044_v14 = vsel %vm111_vm4, %v4421_v9, %v4422_v6 }
  0x92   :  { %v4430_v15 = vpop.permute.xlu0 %4429  ;;  %v2052_v16 = vpack.c.bf16 %v1044_v14, %v1026_v11  ;;  %v93_v22 = vsel %vm92_vm3, %v4426_v13, %v4406_v52  ;;  %v1025_v24 = vsel %vm92_vm3, %v4427_v12, %v4416_v1  ;;  %v5505_v14 = vpack.i.bf16 %v3959_v4, %v3958_v2 }
  0x93   :  { %v4432_v17 = vunpack.i.h.bf16 %v4430_v15  ;;  %v4431_v18 = vunpack.i.l.bf16 %v4430_v15  ;;  %v4435_v19 = vpop.permute.xlu1 %4434  ;;  %vm396_vm3 = vcmask 883712  }
  0x94   :  { %v4437_v20 = vunpack.i.h.bf16 %v4435_v19  ;;  %v4436_v21 = vunpack.i.l.bf16 %v4435_v19  ;;  %4719 = vrot.lane.b32.xlu0 %v5360_v8, %s5272_s25  ;;  %2948 = vmatprep.subr.bf16.mxu1 %v2052_v16  ;;  %v575_v19 = vld [vmem:[%s6097_s0 + $0x8] sm:$0xff] }
  0x95   :  { %4724 = vrot.lane.b32.xlu1 %v5356_v7, %s5271_s24  ;;  %v112_v23 = vsel %vm111_vm4, %v4431_v18, %v4411_v61  ;;  %v1043_v25 = vsel %vm111_vm4, %v4432_v17, %v4421_v9  ;;  %v3954_v9 = vld [vmem:[%s6097_s0 + $0x18] sm:$0xff]  ;;  %s5283_s24 = smov 92   ;;  %vm415_vm4 = vcmask 875520  }
  0x96   :  { %v4440_v26 = vpop.permute.xlu0 %4439  ;;  %v2049_v27 = vpack.c.bf16 %v112_v23, %v93_v22  ;;  %v2051_v28 = vpack.c.bf16 %v1043_v25, %v1025_v24  ;;  %v132_v32 = vsel %vm130_vm5, %v4436_v21, %v4437_v20 }
  0x97   :  { %v4442_v29 = vunpack.i.h.bf16 %v4440_v26  ;;  %v4441_v30 = vunpack.i.l.bf16 %v4440_v26  ;;  %v4445_v31 = vpop.permute.xlu1 %4444 }
  0x98   :  { %v4447_v33 = vunpack.i.h.bf16 %v4445_v31  ;;  %v4446_v34 = vunpack.i.l.bf16 %v4445_v31  ;;  %4729 = vrot.lane.b32.xlu0 %v5356_v7, %s5272_s25  ;;  %2563 = vmatpush1.bf16.msra.mxu0 %v2049_v27  ;;  %s5284_s25 = smov 91  }
  0x99   :  { %4734 = vrot.lane.b32.xlu1 %v5339_v3, %s5273_s26  ;;  %2949 = vmatpush1.bf16.msra.mxu1 %v2051_v28  ;;  %v151_v35 = vsel %vm149_vm6, %v4441_v30, %v4442_v29 }
  0x9a   :  { %v4450_v36 = vpop.permute.xlu0 %4449  ;;  %v2054_v37 = vpack.c.bf16 %v151_v35, %v132_v32  ;;  %v1062_v41 = vsel %vm130_vm5, %v4446_v34, %v4447_v33 }
  0x9b   :  { %v4452_v38 = vunpack.i.h.bf16 %v4450_v36  ;;  %v4451_v39 = vunpack.i.l.bf16 %v4450_v36  ;;  %v4455_v40 = vpop.permute.xlu1 %4454 }
  0x9c   :  { %4739 = vrot.lane.b32.xlu0 %v5339_v3, %s5274_s27  ;;  %2564 = vmatprep.subr.bf16.mxu0 %v2054_v37  ;;  %v4457_v42 = vunpack.i.h.bf16 %v4455_v40  ;;  %v4456_v43 = vunpack.i.l.bf16 %v4455_v40 }
  0x9d   :  { %4744 = vrot.lane.b32.xlu1 %v5360_v8, %s5273_s26  ;;  %v1080_v44 = vsel %vm149_vm6, %v4451_v39, %v4452_v38 }
  0x9e   :  { %v4460_v45 = vpop.permute.xlu0 %4459  ;;  %v2056_v46 = vpack.c.bf16 %v1080_v44, %v1062_v41  ;;  %v131_v52 = vsel %vm130_vm5, %v4456_v43, %v4436_v21  ;;  %v1061_v54 = vsel %vm130_vm5, %v4457_v42, %v4446_v34  ;;  %vm434_vm5 = vcmask 867328  }
  0x9f   :  { %v4462_v47 = vunpack.i.h.bf16 %v4460_v45  ;;  %v4461_v48 = vunpack.i.l.bf16 %v4460_v45  ;;  %v4465_v49 = vpop.permute.xlu1 %4464 }
  0xa0   :  { %v4467_v50 = vunpack.i.h.bf16 %v4465_v49  ;;  %v4466_v51 = vunpack.i.l.bf16 %v4465_v49  ;;  %4749 = vrot.lane.b32.xlu0 %v5360_v8, %s5274_s27  ;;  %2950 = vmatprep.subr.bf16.mxu1 %v2056_v46 }
  0xa1   :  { %4754 = vrot.lane.b32.xlu1 %v5356_v7, %s5273_s26  ;;  %v150_v53 = vsel %vm149_vm6, %v4461_v48, %v4441_v30  ;;  %v1079_v55 = vsel %vm149_vm6, %v4462_v47, %v4451_v39  ;;  %v5095_v47 = vld [vmem:[%s6098_s1 + $0x4] ss:$16 sps:$4 sm:$0xff]   ;;  %s5285_s26 = smov 90   ;;  %vm453_vm6 = vcmask 859136  }
  0xa2   :  { %v4470_v56 = vpop.permute.xlu0 %4469  ;;  %v2053_v57 = vpack.c.bf16 %v150_v53, %v131_v52  ;;  %v2055_v58 = vpack.c.bf16 %v1079_v55, %v1061_v54  ;;  %v170_v62 = vsel %vm168_vm7, %v4466_v51, %v4467_v50  ;;  %2590 = vmatprep.mubr.bf16.mxu0 %v5095_v47  ;;  %2976 = vmatprep.mubr.bf16.mxu1 %v5095_v47 }
  0xa3   :  { %v4472_v59 = vunpack.i.h.bf16 %v4470_v56  ;;  %v4471_v60 = vunpack.i.l.bf16 %v4470_v56  ;;  %v4475_v61 = vpop.permute.xlu1 %4474 }
  0xa4   :  { %v4477_v63 = vunpack.i.h.bf16 %v4475_v61  ;;  %v4476_v0 = vunpack.i.l.bf16 %v4475_v61  ;;  %4759 = vrot.lane.b32.xlu0 %v5356_v7, %s5274_s27  ;;  %2565 = vmatpush1.bf16.msra.mxu0 %v2053_v57  ;;  %v536_v7 = vld [vmem:[%s6097_s0] sm:$0xff]  ;;  %s5286_s27 = smov 89  }
  0xa5   :  { %4764 = vrot.lane.b32.xlu1 %v5339_v3, %s5275_s28  ;;  %2951 = vmatpush1.bf16.msra.mxu1 %v2055_v58  ;;  %v189_v1 = vsel %vm187_vm8, %v4471_v60, %v4472_v59  ;;  %v5509_v17 = vpack.i.bf16 %v3954_v9, %v536_v7 }
  0xa6   :  { %v4480_v5 = vpop.permute.xlu0 %4479  ;;  %v2058_v6 = vpack.c.bf16 %v189_v1, %v170_v62  ;;  %v1098_v13 = vsel %vm168_vm7, %v4476_v0, %v4477_v63 }
  0xa7   :  { %v4482_v10 = vunpack.i.h.bf16 %v4480_v5  ;;  %v4481_v11 = vunpack.i.l.bf16 %v4480_v5  ;;  %v4485_v12 = vpop.permute.xlu1 %4484 }
  0xa8   :  { %4769 = vrot.lane.b32.xlu0 %v5339_v3, %s5276_s11  ;;  %2566 = vmatprep.subr.bf16.mxu0 %v2058_v6  ;;  %v4487_v15 = vunpack.i.h.bf16 %v4485_v12  ;;  %v4486_v16 = vunpack.i.l.bf16 %v4485_v12  ;;  %v576_v3 = vld [vmem:[%s6097_s0 + $0x10] sm:$0xff] }
  0xa9   :  { %4774 = vrot.lane.b32.xlu1 %v5360_v8, %s5275_s28  ;;  %v1116_v18 = vsel %vm187_vm8, %v4481_v11, %v4482_v10  ;;  %v5520_v8 = vpack.i.bf16 %v576_v3, %v575_v19 }
  0xaa   :  { %v4490_v20 = vpop.permute.xlu0 %4489  ;;  %v2060_v21 = vpack.c.bf16 %v1116_v18, %v1098_v13  ;;  %v169_v27 = vsel %vm168_vm7, %v4486_v16, %v4466_v51  ;;  %v1097_v29 = vsel %vm168_vm7, %v4487_v15, %v4476_v0  ;;  %vm472_vm7 = vcmask 850944  }
  0xab   :  { %v4492_v22 = vunpack.i.h.bf16 %v4490_v20  ;;  %v4491_v23 = vunpack.i.l.bf16 %v4490_v20  ;;  %v4495_v24 = vpop.permute.xlu1 %4494 }
  0xac   :  { %v4497_v25 = vunpack.i.h.bf16 %v4495_v24  ;;  %v4496_v26 = vunpack.i.l.bf16 %v4495_v24  ;;  %4779 = vrot.lane.b32.xlu0 %v5505_v14, %s5276_s11  ;;  %2952 = vmatprep.subr.bf16.mxu1 %v2060_v21 }
  0xad   :  { %4784 = vrot.lane.b32.xlu1 %v5509_v17, %s5275_s28  ;;  %v188_v28 = vsel %vm187_vm8, %v4491_v23, %v4471_v60  ;;  %v1115_v30 = vsel %vm187_vm8, %v4492_v22, %v4481_v11  ;;  %s5287_s28 = smov 88   ;;  %vm491_vm8 = vcmask 842752  }
  0xae   :  { %v4500_v31 = vpop.permute.xlu0 %4499  ;;  %v2057_v32 = vpack.c.bf16 %v188_v28, %v169_v27  ;;  %v2059_v33 = vpack.c.bf16 %v1115_v30, %v1097_v29  ;;  %v208_v37 = vsel %vm206_vm9, %v4496_v26, %v4497_v25 }
  0xaf   :  { %v4502_v34 = vunpack.i.h.bf16 %v4500_v31  ;;  %v4501_v35 = vunpack.i.l.bf16 %v4500_v31  ;;  %v4505_v36 = vpop.permute.xlu1 %4504 }
  0xb0   :  { %v4507_v38 = vunpack.i.h.bf16 %v4505_v36  ;;  %v4506_v39 = vunpack.i.l.bf16 %v4505_v36  ;;  %4789 = vrot.lane.b32.xlu0 %v5509_v17, %s5276_s11  ;;  %2567 = vmatpush1.bf16.msra.mxu0 %v2057_v32 }
  0xb1   :  { %4794 = vrot.lane.b32.xlu1 %v5520_v8, %s5277_s16  ;;  %2953 = vmatpush1.bf16.msra.mxu1 %v2059_v33  ;;  %v227_v40 = vsel %vm225_vm10, %v4501_v35, %v4502_v34 }
  0xb2   :  { %v4510_v41 = vpop.permute.xlu0 %4509  ;;  %v2062_v42 = vpack.c.bf16 %v227_v40, %v208_v37  ;;  %v1134_v46 = vsel %vm206_vm9, %v4506_v39, %v4507_v38 }
  0xb3   :  { %v4512_v43 = vunpack.i.h.bf16 %v4510_v41  ;;  %v4511_v44 = vunpack.i.l.bf16 %v4510_v41  ;;  %v4515_v45 = vpop.permute.xlu1 %4514 }
  0xb4   :  { %4799 = vrot.lane.b32.xlu0 %v5520_v8, %s5278_s17  ;;  %2568 = vmatprep.subr.bf16.mxu0 %v2062_v42  ;;  %v4517_v48 = vunpack.i.h.bf16 %v4515_v45  ;;  %v4516_v49 = vunpack.i.l.bf16 %v4515_v45 }
  0xb5   :  { %4804 = vrot.lane.b32.xlu1 %v5505_v14, %s5277_s16  ;;  %v1152_v50 = vsel %vm225_vm10, %v4511_v44, %v4512_v43 }
  0xb6   :  { %v4520_v51 = vpop.permute.xlu0 %4519  ;;  %v2064_v52 = vpack.c.bf16 %v1152_v50, %v1134_v46  ;;  %v207_v58 = vsel %vm206_vm9, %v4516_v49, %v4496_v26  ;;  %v1133_v60 = vsel %vm206_vm9, %v4517_v48, %v4506_v39  ;;  %vm510_vm9 = vcmask 834560  }
  0xb7   :  { %v4522_v53 = vunpack.i.h.bf16 %v4520_v51  ;;  %v4521_v54 = vunpack.i.l.bf16 %v4520_v51  ;;  %v4525_v55 = vpop.permute.xlu1 %4524 }
  0xb8   :  { %v4527_v56 = vunpack.i.h.bf16 %v4525_v55  ;;  %v4526_v57 = vunpack.i.l.bf16 %v4525_v55  ;;  %4809 = vrot.lane.b32.xlu0 %v5505_v14, %s5278_s17  ;;  %2954 = vmatprep.subr.bf16.mxu1 %v2064_v52 }
  0xb9   :  { %4814 = vrot.lane.b32.xlu1 %v5509_v17, %s5277_s16  ;;  %v226_v59 = vsel %vm225_vm10, %v4521_v54, %v4501_v35  ;;  %v1151_v61 = vsel %vm225_vm10, %v4522_v53, %v4511_v44  ;;  %vm529_vm10 = vcmask 826368  }
  0xba   :  { %v4530_v62 = vpop.permute.xlu0 %4529  ;;  %v2061_v63 = vpack.c.bf16 %v226_v59, %v207_v58  ;;  %v2063_v0 = vpack.c.bf16 %v1151_v61, %v1133_v60  ;;  %v246_v5 = vsel %vm244_vm11, %v4526_v57, %v4527_v56 }
  0xbb   :  { %v4532_v1 = vunpack.i.h.bf16 %v4530_v62  ;;  %v4531_v2 = vunpack.i.l.bf16 %v4530_v62  ;;  %v4535_v4 = vpop.permute.xlu1 %4534 }
  0xbc   :  { %v4537_v6 = vunpack.i.h.bf16 %v4535_v4  ;;  %v4536_v7 = vunpack.i.l.bf16 %v4535_v4  ;;  %4819 = vrot.lane.b32.xlu0 %v5509_v17, %s5278_s17  ;;  %2569 = vmatpush1.bf16.msra.mxu0 %v2061_v63 }
  0xbd   :  { %4824 = vrot.lane.b32.xlu1 %v5520_v8, %s5279_s20  ;;  %2955 = vmatpush1.bf16.msra.mxu1 %v2063_v0  ;;  %v265_v9 = vsel %vm263_vm12, %v4531_v2, %v4532_v1 }
  0xbe   :  { %v4540_v10 = vpop.permute.xlu0 %4539  ;;  %v2066_v11 = vpack.c.bf16 %v265_v9, %v246_v5  ;;  %v1170_v16 = vsel %vm244_vm11, %v4536_v7, %v4537_v6 }
  0xbf   :  { %v4542_v12 = vunpack.i.h.bf16 %v4540_v10  ;;  %v4541_v13 = vunpack.i.l.bf16 %v4540_v10  ;;  %v4545_v15 = vpop.permute.xlu1 %4544 }
  0xc0   :  { %4829 = vrot.lane.b32.xlu0 %v5520_v8, %s5280_s21  ;;  %2570 = vmatprep.subr.bf16.mxu0 %v2066_v11  ;;  %v4547_v18 = vunpack.i.h.bf16 %v4545_v15  ;;  %v4546_v19 = vunpack.i.l.bf16 %v4545_v15 }
  0xc1   :  { %4834 = vrot.lane.b32.xlu1 %v5505_v14, %s5279_s20  ;;  %v1188_v3 = vsel %vm263_vm12, %v4541_v13, %v4542_v12 }
  0xc2   :  { %v4550_v20 = vpop.permute.xlu0 %4549  ;;  %v2068_v21 = vpack.c.bf16 %v1188_v3, %v1170_v16  ;;  %v245_v27 = vsel %vm244_vm11, %v4546_v19, %v4526_v57  ;;  %v1169_v29 = vsel %vm244_vm11, %v4547_v18, %v4536_v7  ;;  %vm548_vm11 = vcmask 818176  }
  0xc3   :  { %v4552_v22 = vunpack.i.h.bf16 %v4550_v20  ;;  %v4551_v23 = vunpack.i.l.bf16 %v4550_v20  ;;  %v4555_v24 = vpop.permute.xlu1 %4554 }
  0xc4   :  { %v4557_v25 = vunpack.i.h.bf16 %v4555_v24  ;;  %v4556_v26 = vunpack.i.l.bf16 %v4555_v24  ;;  %4839 = vrot.lane.b32.xlu0 %v5505_v14, %s5280_s21  ;;  %2956 = vmatprep.subr.bf16.mxu1 %v2068_v21 }
  0xc5   :  { %4844 = vrot.lane.b32.xlu1 %v5509_v17, %s5279_s20  ;;  %v264_v28 = vsel %vm263_vm12, %v4551_v23, %v4531_v2  ;;  %v1187_v30 = vsel %vm263_vm12, %v4552_v22, %v4541_v13  ;;  %s5294_s20 = smov 81   ;;  %vm567_vm12 = vcmask 809984  }
  0xc6   :  { %v4560_v31 = vpop.permute.xlu0 %4559  ;;  %v2065_v32 = vpack.c.bf16 %v264_v28, %v245_v27  ;;  %v2067_v33 = vpack.c.bf16 %v1187_v30, %v1169_v29  ;;  %v284_v37 = vsel %vm282_vm13, %v4556_v26, %v4557_v25 }
  0xc7   :  { %v4562_v34 = vunpack.i.h.bf16 %v4560_v31  ;;  %v4561_v35 = vunpack.i.l.bf16 %v4560_v31  ;;  %v4565_v36 = vpop.permute.xlu1 %4564 }
  0xc8   :  { %v4567_v38 = vunpack.i.h.bf16 %v4565_v36  ;;  %v4566_v39 = vunpack.i.l.bf16 %v4565_v36  ;;  %4849 = vrot.lane.b32.xlu0 %v5509_v17, %s5280_s21  ;;  %2571 = vmatpush1.bf16.msra.mxu0 %v2065_v32  ;;  %s5295_s21 = smov 80  }
  0xc9   :  { %4854 = vrot.lane.b32.xlu1 %v5520_v8, %s5281_s22  ;;  %2957 = vmatpush1.bf16.msra.mxu1 %v2067_v33  ;;  %v303_v40 = vsel %vm301_vm14, %v4561_v35, %v4562_v34 }
  0xca   :  { %v4570_v41 = vpop.permute.xlu0 %4569  ;;  %v2070_v42 = vpack.c.bf16 %v303_v40, %v284_v37  ;;  %v1206_v46 = vsel %vm282_vm13, %v4566_v39, %v4567_v38 }
  0xcb   :  { %v4572_v43 = vunpack.i.h.bf16 %v4570_v41  ;;  %v4571_v44 = vunpack.i.l.bf16 %v4570_v41  ;;  %v4575_v45 = vpop.permute.xlu1 %4574 }
  0xcc   :  { %4859 = vrot.lane.b32.xlu0 %v5520_v8, %s5282_s23  ;;  %2572 = vmatprep.subr.bf16.mxu0 %v2070_v42  ;;  %v4577_v47 = vunpack.i.h.bf16 %v4575_v45  ;;  %v4576_v48 = vunpack.i.l.bf16 %v4575_v45 }
  0xcd   :  { %4864 = vrot.lane.b32.xlu1 %v5505_v14, %s5281_s22  ;;  %v1224_v49 = vsel %vm301_vm14, %v4571_v44, %v4572_v43 }
  0xce   :  { %v4580_v50 = vpop.permute.xlu0 %4579  ;;  %v2072_v51 = vpack.c.bf16 %v1224_v49, %v1206_v46  ;;  %v283_v57 = vsel %vm282_vm13, %v4576_v48, %v4556_v26  ;;  %v1205_v59 = vsel %vm282_vm13, %v4577_v47, %v4566_v39  ;;  %vm586_vm13 = vcmask 801792  }
  0xcf   :  { %v4582_v52 = vunpack.i.h.bf16 %v4580_v50  ;;  %v4581_v53 = vunpack.i.l.bf16 %v4580_v50  ;;  %v4585_v54 = vpop.permute.xlu1 %4584 }
  0xd0   :  { %v4587_v55 = vunpack.i.h.bf16 %v4585_v54  ;;  %v4586_v56 = vunpack.i.l.bf16 %v4585_v54  ;;  %4869 = vrot.lane.b32.xlu0 %v5505_v14, %s5282_s23  ;;  %2958 = vmatprep.subr.bf16.mxu1 %v2072_v51 }
  0xd1   :  { %4874 = vrot.lane.b32.xlu1 %v5509_v17, %s5281_s22  ;;  %v302_v58 = vsel %vm301_vm14, %v4581_v53, %v4561_v35  ;;  %v1223_v60 = vsel %vm301_vm14, %v4582_v52, %v4571_v44  ;;  %s5296_s22 = smov 79   ;;  %vm605_vm14 = vcmask 793600  }
  0xd2   :  { %v4590_v61 = vpop.permute.xlu0 %4589  ;;  %v2069_v62 = vpack.c.bf16 %v302_v58, %v283_v57  ;;  %v2071_v63 = vpack.c.bf16 %v1223_v60, %v1205_v59  ;;  %v322_v4 = vsel %vm320_vm15, %v4586_v56, %v4587_v55 }
  0xd3   :  { %v4592_v0 = vunpack.i.h.bf16 %v4590_v61  ;;  %v4591_v1 = vunpack.i.l.bf16 %v4590_v61  ;;  %v4595_v2 = vpop.permute.xlu1 %4594 }
  0xd4   :  { %v4597_v5 = vunpack.i.h.bf16 %v4595_v2  ;;  %v4596_v6 = vunpack.i.l.bf16 %v4595_v2  ;;  %4879 = vrot.lane.b32.xlu0 %v5509_v17, %s5282_s23  ;;  %2573 = vmatpush1.bf16.msra.mxu0 %v2069_v62 }
  0xd5   :  { %2959 = vmatpush1.bf16.msra.mxu1 %v2071_v63  ;;  %4884 = vrot.lane.b32.xlu1 %v5520_v8, %s5283_s24  ;;  %v341_v7 = vsel %vm339_vm0, %v4591_v1, %v4592_v0 }
  0xd6   :  { %v4600_v9 = vpop.permute.xlu0 %4599  ;;  %v2074_v10 = vpack.c.bf16 %v341_v7, %v322_v4  ;;  %v1242_v15 = vsel %vm320_vm15, %v4596_v6, %v4597_v5 }
  0xd7   :  { %v4602_v11 = vunpack.i.h.bf16 %v4600_v9  ;;  %v4601_v12 = vunpack.i.l.bf16 %v4600_v9  ;;  %v4605_v13 = vpop.permute.xlu1 %4604 }
  0xd8   :  { %4889 = vrot.lane.b32.xlu0 %v5520_v8, %s5284_s25  ;;  %2574 = vmatprep.subr.bf16.mxu0 %v2074_v10  ;;  %v4607_v16 = vunpack.i.h.bf16 %v4605_v13  ;;  %v4606_v18 = vunpack.i.l.bf16 %v4605_v13 }
  0xd9   :  { %4894 = vrot.lane.b32.xlu1 %v5505_v14, %s5283_s24  ;;  %v1260_v19 = vsel %vm339_vm0, %v4601_v12, %v4602_v11 }
  0xda   :  { %v4610_v3 = vpop.permute.xlu0 %4609  ;;  %v2076_v20 = vpack.c.bf16 %v1260_v19, %v1242_v15  ;;  %v321_v26 = vsel %vm320_vm15, %v4606_v18, %v4586_v56  ;;  %v1241_v28 = vsel %vm320_vm15, %v4607_v16, %v4596_v6  ;;  %vm624_vm15 = vcmask 785408  }
  0xdb   :  { %v4612_v21 = vunpack.i.h.bf16 %v4610_v3  ;;  %v4611_v22 = vunpack.i.l.bf16 %v4610_v3  ;;  %v4615_v23 = vpop.permute.xlu1 %4614 }
  0xdc   :  { %v4617_v24 = vunpack.i.h.bf16 %v4615_v23  ;;  %v4616_v25 = vunpack.i.l.bf16 %v4615_v23  ;;  %4899 = vrot.lane.b32.xlu0 %v5505_v14, %s5284_s25  ;;  %2960 = vmatprep.subr.bf16.mxu1 %v2076_v20 }
  0xdd   :  { %4904 = vrot.lane.b32.xlu1 %v5509_v17, %s5283_s24  ;;  %v340_v27 = vsel %vm339_vm0, %v4611_v22, %v4591_v1  ;;  %v1259_v29 = vsel %vm339_vm0, %v4612_v21, %v4601_v12  ;;  %vm643_vm0 = vcmask 777216  }
  0xde   :  { %v4620_v30 = vpop.permute.xlu0 %4619  ;;  %v2073_v31 = vpack.c.bf16 %v340_v27, %v321_v26  ;;  %v2075_v32 = vpack.c.bf16 %v1259_v29, %v1241_v28  ;;  %v360_v36 = vsel %vm358_vm1, %v4616_v25, %v4617_v24 }
  0xdf   :  { %v4622_v33 = vunpack.i.h.bf16 %v4620_v30  ;;  %v4621_v34 = vunpack.i.l.bf16 %v4620_v30  ;;  %v4625_v35 = vpop.permute.xlu1 %4624 }
  0xe0   :  { %v4627_v37 = vunpack.i.h.bf16 %v4625_v35  ;;  %v4626_v38 = vunpack.i.l.bf16 %v4625_v35  ;;  %4909 = vrot.lane.b32.xlu0 %v5509_v17, %s5284_s25  ;;  %2575 = vmatpush1.bf16.msra.mxu0 %v2073_v31 }
  0xe1   :  { %2961 = vmatpush1.bf16.msra.mxu1 %v2075_v32  ;;  %4914 = vrot.lane.b32.xlu1 %v5520_v8, %s5285_s26  ;;  %v379_v39 = vsel %vm377_vm2, %v4621_v34, %v4622_v33 }
  0xe2   :  { %v4630_v40 = vpop.permute.xlu0 %4629  ;;  %v2078_v41 = vpack.c.bf16 %v379_v39, %v360_v36  ;;  %v1278_v45 = vsel %vm358_vm1, %v4626_v38, %v4627_v37 }
  0xe3   :  { %v4632_v42 = vunpack.i.h.bf16 %v4630_v40  ;;  %v4631_v43 = vunpack.i.l.bf16 %v4630_v40  ;;  %v4635_v44 = vpop.permute.xlu1 %4634 }
  0xe4   :  { %4919 = vrot.lane.b32.xlu0 %v5520_v8, %s5286_s27  ;;  %2576 = vmatprep.subr.bf16.mxu0 %v2078_v41  ;;  %v4637_v46 = vunpack.i.h.bf16 %v4635_v44  ;;  %v4636_v47 = vunpack.i.l.bf16 %v4635_v44 }
  0xe5   :  { %4924 = vrot.lane.b32.xlu1 %v5505_v14, %s5285_s26  ;;  %v1296_v48 = vsel %vm377_vm2, %v4631_v43, %v4632_v42 }
  0xe6   :  { %v4640_v49 = vpop.permute.xlu0 %4639  ;;  %v2080_v50 = vpack.c.bf16 %v1296_v48, %v1278_v45  ;;  %v359_v56 = vsel %vm358_vm1, %v4636_v47, %v4616_v25  ;;  %v1277_v58 = vsel %vm358_vm1, %v4637_v46, %v4626_v38  ;;  %vm662_vm1 = vcmask 769024  }
  0xe7   :  { %v4642_v51 = vunpack.i.h.bf16 %v4640_v49  ;;  %v4641_v52 = vunpack.i.l.bf16 %v4640_v49  ;;  %v4645_v53 = vpop.permute.xlu1 %4644 }
  0xe8   :  { %v4647_v54 = vunpack.i.h.bf16 %v4645_v53  ;;  %v4646_v55 = vunpack.i.l.bf16 %v4645_v53  ;;  %4929 = vrot.lane.b32.xlu0 %v5505_v14, %s5286_s27  ;;  %2962 = vmatprep.subr.bf16.mxu1 %v2080_v50 }
  0xe9   :  { %4934 = vrot.lane.b32.xlu1 %v5509_v17, %s5285_s26  ;;  %v378_v57 = vsel %vm377_vm2, %v4641_v52, %v4621_v34  ;;  %v1295_v59 = vsel %vm377_vm2, %v4642_v51, %v4631_v43  ;;  %vm681_vm2 = vcmask 760832  }
  0xea   :  { %v4650_v60 = vpop.permute.xlu0 %4649  ;;  %v2077_v61 = vpack.c.bf16 %v378_v57, %v359_v56  ;;  %v2079_v62 = vpack.c.bf16 %v1295_v59, %v1277_v58  ;;  %v398_v2 = vsel %vm396_vm3, %v4646_v55, %v4647_v54 }
  0xeb   :  { %v4652_v63 = vunpack.i.h.bf16 %v4650_v60  ;;  %v4651_v0 = vunpack.i.l.bf16 %v4650_v60  ;;  %v4655_v1 = vpop.permute.xlu1 %4654 }
  0xec   :  { %v4657_v4 = vunpack.i.h.bf16 %v4655_v1  ;;  %v4656_v5 = vunpack.i.l.bf16 %v4655_v1  ;;  %4939 = vrot.lane.b32.xlu0 %v5509_v17, %s5286_s27  ;;  %2577 = vmatpush1.bf16.msra.mxu0 %v2077_v61 }
  0xed   :  { %2963 = vmatpush1.bf16.msra.mxu1 %v2079_v62  ;;  %v417_v6 = vsel %vm415_vm4, %v4651_v0, %v4652_v63  ;;  %4944 = vrot.lane.b32.xlu1 %v5520_v8, %s5287_s28  ;;  %v4003_v62 = vld [vmem:[%s6097_s0 + $0x20] sm:$0xff]  ;;  %v4004_v63 = vld [vmem:[%s6097_s0 + $0x28] sm:$0xff] }
  0xee   :  { %v4660_v7 = vpop.permute.xlu0 %4659  ;;  %v2082_v9 = vpack.c.bf16 %v417_v6, %v398_v2  ;;  %v1314_v13 = vsel %vm396_vm3, %v4656_v5, %v4657_v4 }
  0xef   :  { %v4662_v10 = vunpack.i.h.bf16 %v4660_v7  ;;  %v4661_v11 = vunpack.i.l.bf16 %v4660_v7  ;;  %v4665_v12 = vpop.permute.xlu1 %4664 }
  0xf0   :  { %2578 = vmatprep.subr.bf16.mxu0 %v2082_v9  ;;  %4949 = vrot.lane.b32.xlu0 %v5520_v8, %s5288_s29  ;;  %v4667_v15 = vunpack.i.h.bf16 %v4665_v12  ;;  %v4666_v16 = vunpack.i.l.bf16 %v4665_v12  ;;  %v5662_v9 = vpack.i.bf16 %v4004_v63, %v4003_v62  ;;  %v859_v12 = vld [vmem:[%s6097_s0] sm:$0xff] }
  0xf1   :  { %v1332_v18 = vsel %vm415_vm4, %v4661_v11, %v4662_v10  ;;  %4954 = vrot.lane.b32.xlu1 %v5505_v14, %s5287_s28 }
  0xf2   :  { %v4670_v19 = vpop.permute.xlu0 %4669  ;;  %v2084_v3 = vpack.c.bf16 %v1332_v18, %v1314_v13  ;;  %v397_v25 = vsel %vm396_vm3, %v4666_v16, %v4646_v55  ;;  %v1313_v27 = vsel %vm396_vm3, %v4667_v15, %v4656_v5  ;;  %v4005_v13 = vld [vmem:[%s6097_s0 + $0x18] sm:$0xff]  ;;  %vm700_vm3 = vcmask 752640  }
  0xf3   :  { %v4672_v20 = vunpack.i.h.bf16 %v4670_v19  ;;  %v4671_v21 = vunpack.i.l.bf16 %v4670_v19  ;;  %v4675_v22 = vpop.permute.xlu1 %4674 }
  0xf4   :  { %v4677_v23 = vunpack.i.h.bf16 %v4675_v22  ;;  %v4676_v24 = vunpack.i.l.bf16 %v4675_v22  ;;  %2964 = vmatprep.subr.bf16.mxu1 %v2084_v3  ;;  %4959 = vrot.lane.b32.xlu0 %v5505_v14, %s5288_s29  ;;  %v898_v22 = vld [vmem:[%s6097_s0 + $0x8] sm:$0xff] }
  0xf5   :  { %v416_v26 = vsel %vm415_vm4, %v4671_v21, %v4651_v0  ;;  %v1331_v28 = vsel %vm415_vm4, %v4672_v20, %v4661_v11  ;;  %4964 = vrot.lane.b32.xlu1 %v5509_v17, %s5287_s28  ;;  %v5676_v21 = vpack.i.bf16 %v4005_v13, %v859_v12  ;;  %vm719_vm4 = vcmask 744448  }
  0xf6   :  { %v4680_v29 = vpop.permute.xlu0 %4679  ;;  %v2081_v30 = vpack.c.bf16 %v416_v26, %v397_v25  ;;  %v2083_v31 = vpack.c.bf16 %v1331_v28, %v1313_v27  ;;  %v436_v35 = vsel %vm434_vm5, %v4676_v24, %v4677_v23  ;;  %v899_v23 = vld [vmem:[%s6097_s0 + $0x10] sm:$0xff]  ;;  %s5293_s0 = smov 82  }
  0xf7   :  { %v4682_v32 = vunpack.i.h.bf16 %v4680_v29  ;;  %v4681_v33 = vunpack.i.l.bf16 %v4680_v29  ;;  %v4685_v34 = vpop.permute.xlu1 %4684 }
  0xf8   :  { %v4687_v36 = vunpack.i.h.bf16 %v4685_v34  ;;  %v4686_v37 = vunpack.i.l.bf16 %v4685_v34  ;;  %2579 = vmatpush1.bf16.msra.mxu0 %v2081_v30  ;;  %2965 = vmatpush1.bf16.msra.mxu1 %v2083_v31  ;;  %v5685_v31 = vpack.i.bf16 %v899_v23, %v898_v22 }
  0xf9   :  { %4969 = vrot.lane.b32.xlu0 %v5509_v17, %s5288_s29  ;;  %v455_v38 = vsel %vm453_vm6, %v4681_v33, %v4682_v32  ;;  %4974 = vrot.lane.b32.xlu1 %v5520_v8, %s5289_s30 }
  0xfa   :  { %v4690_v39 = vpop.permute.xlu0 %4689  ;;  %v2086_v40 = vpack.c.bf16 %v455_v38, %v436_v35  ;;  %v1350_v44 = vsel %vm434_vm5, %v4686_v37, %v4687_v36 }
  0xfb   :  { %v4692_v41 = vunpack.i.h.bf16 %v4690_v39  ;;  %v4691_v42 = vunpack.i.l.bf16 %v4690_v39  ;;  %v4695_v43 = vpop.permute.xlu1 %4694 }
  0xfc   :  { %v4696_v45 = vunpack.i.l.bf16 %v4695_v43  ;;  %2580 = vmatprep.subr.bf16.mxu0 %v2086_v40  ;;  %v4697_v46 = vunpack.i.h.bf16 %v4695_v43 }
  0xfd   :  { %4979 = vrot.lane.b32.xlu0 %v5520_v8, %s5290_s5  ;;  %v1368_v47 = vsel %vm453_vm6, %v4691_v42, %v4692_v41  ;;  %4984 = vrot.lane.b32.xlu1 %v5505_v14, %s5289_s30 }
  0xfe   :  { %v4700_v48 = vpop.permute.xlu0 %4699  ;;  %v2088_v49 = vpack.c.bf16 %v1368_v47, %v1350_v44  ;;  %v435_v55 = vsel %vm434_vm5, %v4696_v45, %v4676_v24  ;;  %v1349_v57 = vsel %vm434_vm5, %v4697_v46, %v4686_v37  ;;  %vm738_vm5 = vcmask 736256  }
  0xff   :  { %v4702_v50 = vunpack.i.h.bf16 %v4700_v48  ;;  %v4701_v51 = vunpack.i.l.bf16 %v4700_v48  ;;  %v4705_v52 = vpop.permute.xlu1 %4704 }
 0x100   :  { %v4707_v53 = vunpack.i.h.bf16 %v4705_v52  ;;  %v4706_v54 = vunpack.i.l.bf16 %v4705_v52  ;;  %2966 = vmatprep.subr.bf16.mxu1 %v2088_v49 }
 0x101   :  { %4989 = vrot.lane.b32.xlu0 %v5505_v14, %s5290_s5  ;;  %v454_v56 = vsel %vm453_vm6, %v4701_v51, %v4681_v33  ;;  %v1367_v58 = vsel %vm453_vm6, %v4702_v50, %v4691_v42  ;;  %4994 = vrot.lane.b32.xlu1 %v5509_v17, %s5289_s30  ;;  %vm757_vm6 = vcmask 728064  }
 0x102   :  { %v4710_v59 = vpop.permute.xlu0 %4709  ;;  %v2085_v60 = vpack.c.bf16 %v454_v56, %v435_v55  ;;  %v2087_v61 = vpack.c.bf16 %v1367_v58, %v1349_v57  ;;  %v474_v4 = vsel %vm472_vm7, %v4706_v54, %v4707_v53 }
 0x103   :  { %v4712_v0 = vunpack.i.h.bf16 %v4710_v59  ;;  %v4711_v1 = vunpack.i.l.bf16 %v4710_v59  ;;  %v4715_v2 = vpop.permute.xlu1 %4714 }
 0x104   :  { %v4717_v5 = vunpack.i.h.bf16 %v4715_v2  ;;  %v4716_v6 = vunpack.i.l.bf16 %v4715_v2  ;;  %2581 = vmatpush1.bf16.msra.mxu0 %v2085_v60  ;;  %2967 = vmatpush1.bf16.msra.mxu1 %v2087_v61 }
 0x105   :  { %4999 = vrot.lane.b32.xlu0 %v5509_v17, %s5290_s5  ;;  %v493_v7 = vsel %vm491_vm8, %v4711_v1, %v4712_v0  ;;  %5004 = vrot.lane.b32.xlu1 %v5520_v8, %s5291_s10 }
 0x106   :  { %v4720_v10 = vpop.permute.xlu0 %4719  ;;  %v2090_v11 = vpack.c.bf16 %v493_v7, %v474_v4  ;;  %v1386_v18 = vsel %vm472_vm7, %v4716_v6, %v4717_v5 }
 0x107   :  { %v4722_v15 = vunpack.i.h.bf16 %v4720_v10  ;;  %v4721_v17 = vunpack.i.l.bf16 %v4720_v10  ;;  %v4725_v16 = vpop.permute.xlu1 %4724 }
 0x108   :  { %v4726_v19 = vunpack.i.l.bf16 %v4725_v16  ;;  %2582 = vmatprep.subr.bf16.mxu0 %v2090_v11  ;;  %v4727_v3 = vunpack.i.h.bf16 %v4725_v16 }
 0x109   :  { %v1404_v20 = vsel %vm491_vm8, %v4721_v17, %v4722_v15  ;;  %5009 = vrot.lane.b32.xlu0 %v5520_v8, %s5292_s15  ;;  %5014 = vrot.lane.b32.xlu1 %v5662_v9, %s5291_s10 }
 0x10a   :  { %v4730_v24 = vpop.permute.xlu0 %4729  ;;  %v2092_v25 = vpack.c.bf16 %v1404_v20, %v1386_v18  ;;  %v473_v30 = vsel %vm472_vm7, %v4726_v19, %v4706_v54  ;;  %v1385_v33 = vsel %vm472_vm7, %v4727_v3, %v4716_v6  ;;  %vm776_vm7 = vcmask 719872  }
 0x10b   :  { %v4732_v26 = vunpack.i.h.bf16 %v4730_v24  ;;  %v4731_v27 = vunpack.i.l.bf16 %v4730_v24  ;;  %v4735_v28 = vpop.permute.xlu1 %4734 }
 0x10c   :  { %v4737_v8 = vunpack.i.h.bf16 %v4735_v28  ;;  %v4736_v29 = vunpack.i.l.bf16 %v4735_v28  ;;  %2968 = vmatprep.subr.bf16.mxu1 %v2092_v25 }
 0x10d   :  { %v492_v32 = vsel %vm491_vm8, %v4731_v27, %v4711_v1  ;;  %v1403_v34 = vsel %vm491_vm8, %v4732_v26, %v4721_v17  ;;  %5019 = vrot.lane.b32.xlu0 %v5505_v14, %s5292_s15  ;;  %5024 = vrot.lane.b32.xlu1 %v5676_v21, %s5291_s10  ;;  %vm795_vm8 = vcmask 711680  }
 0x10e   :  { %v4740_v35 = vpop.permute.xlu0 %4739  ;;  %v2089_v36 = vpack.c.bf16 %v492_v32, %v473_v30  ;;  %v2091_v37 = vpack.c.bf16 %v1403_v34, %v1385_v33  ;;  %v512_v41 = vsel %vm510_vm9, %v4736_v29, %v4737_v8 }
 0x10f   :  { %v4742_v38 = vunpack.i.h.bf16 %v4740_v35  ;;  %v4741_v39 = vunpack.i.l.bf16 %v4740_v35  ;;  %v4745_v40 = vpop.permute.xlu1 %4744 }
 0x110   :  { %v4747_v42 = vunpack.i.h.bf16 %v4745_v40  ;;  %v4746_v43 = vunpack.i.l.bf16 %v4745_v40  ;;  %2583 = vmatpush1.bf16.msra.mxu0 %v2089_v36  ;;  %2969 = vmatpush1.bf16.msra.mxu1 %v2091_v37 }
 0x111   :  { %v531_v44 = vsel %vm529_vm10, %v4741_v39, %v4742_v38  ;;  %5029 = vrot.lane.b32.xlu0 %v5676_v21, %s5292_s15  ;;  %5034 = vrot.lane.b32.xlu1 %v5685_v31, %s5293_s0 }
 0x112   :  { %v4750_v14 = vpop.permute.xlu0 %4749  ;;  %v2094_v45 = vpack.c.bf16 %v531_v44, %v512_v41  ;;  %v1422_v49 = vsel %vm510_vm9, %v4746_v43, %v4747_v42 }
 0x113   :  { %v4752_v46 = vunpack.i.h.bf16 %v4750_v14  ;;  %v4751_v47 = vunpack.i.l.bf16 %v4750_v14  ;;  %v4755_v48 = vpop.permute.xlu1 %4754 }
 0x114   :  { %v4756_v50 = vunpack.i.l.bf16 %v4755_v48  ;;  %2584 = vmatprep.subr.bf16.mxu0 %v2094_v45  ;;  %v4757_v51 = vunpack.i.h.bf16 %v4755_v48 }
 0x115   :  { %v1440_v52 = vsel %vm529_vm10, %v4751_v47, %v4752_v46  ;;  %5039 = vrot.lane.b32.xlu0 %v5685_v31, %s5294_s20  ;;  %5044 = vrot.lane.b32.xlu1 %v5662_v9, %s5293_s0 }
 0x116   :  { %v4760_v53 = vpop.permute.xlu0 %4759  ;;  %v2096_v54 = vpack.c.bf16 %v1440_v52, %v1422_v49  ;;  %v511_v60 = vsel %vm510_vm9, %v4756_v50, %v4736_v29  ;;  %v1421_v62 = vsel %vm510_vm9, %v4757_v51, %v4746_v43  ;;  %vm814_vm9 = vcmask 703488  }
 0x117   :  { %v4762_v55 = vunpack.i.h.bf16 %v4760_v53  ;;  %v4761_v56 = vunpack.i.l.bf16 %v4760_v53  ;;  %v4765_v57 = vpop.permute.xlu1 %4764 }
 0x118   :  { %v4767_v58 = vunpack.i.h.bf16 %v4765_v57  ;;  %v4766_v59 = vunpack.i.l.bf16 %v4765_v57  ;;  %2970 = vmatprep.subr.bf16.mxu1 %v2096_v54 }
 0x119   :  { %v530_v61 = vsel %vm529_vm10, %v4761_v56, %v4741_v39  ;;  %v1439_v63 = vsel %vm529_vm10, %v4762_v55, %v4751_v47  ;;  %5049 = vrot.lane.b32.xlu0 %v5662_v9, %s5294_s20  ;;  %5054 = vrot.lane.b32.xlu1 %v5676_v21, %s5293_s0  ;;  %vm833_vm10 = vcmask 695296  }
 0x11a   :  { %v4770_v0 = vpop.permute.xlu0 %4769  ;;  %v2093_v1 = vpack.c.bf16 %v530_v61, %v511_v60  ;;  %v2095_v2 = vpack.c.bf16 %v1439_v63, %v1421_v62  ;;  %v550_v7 = vsel %vm548_vm11, %v4766_v59, %v4767_v58 }
 0x11b   :  { %v4772_v4 = vunpack.i.h.bf16 %v4770_v0  ;;  %v4771_v5 = vunpack.i.l.bf16 %v4770_v0  ;;  %v4775_v6 = vpop.permute.xlu1 %4774 }
 0x11c   :  { %v4777_v10 = vunpack.i.h.bf16 %v4775_v6  ;;  %v4776_v11 = vunpack.i.l.bf16 %v4775_v6  ;;  %2585 = vmatpush1.bf16.msra.mxu0 %v2093_v1  ;;  %2971 = vmatpush1.bf16.msra.mxu1 %v2095_v2  ;;  %v5093_v2 = vld [vmem:[%s6098_s1] ss:$16 sps:$4 sm:$0xff]  }
 0x11d   :  { %v569_v12 = vsel %vm567_vm12, %v4771_v5, %v4772_v4  ;;  %5059 = vrot.lane.b32.xlu0 %v5676_v21, %s5294_s20  ;;  %5064 = vrot.lane.b32.xlu1 %v5685_v31, %s5295_s21 }
 0x11e   :  { %v4780_v13 = vpop.permute.xlu0 %4779  ;;  %v2098_v15 = vpack.c.bf16 %v569_v12, %v550_v7  ;;  %v1458_v19 = vsel %vm548_vm11, %v4776_v11, %v4777_v10  ;;  %v5096_v7 = vld [vmem:[%s6098_s1 + $0x24] ss:$16 sps:$4 sm:$0xff]  }
 0x11f   :  { %v4782_v17 = vunpack.i.h.bf16 %v4780_v13  ;;  %v4781_v16 = vunpack.i.l.bf16 %v4780_v13  ;;  %v4785_v18 = vpop.permute.xlu1 %4784 }
 0x120   :  { %v4786_v3 = vunpack.i.l.bf16 %v4785_v18  ;;  %2586 = vmatprep.subr.bf16.mxu0 %v2098_v15  ;;  %v4787_v20 = vunpack.i.h.bf16 %v4785_v18 }
 0x121   :  { %v1476_v22 = vsel %vm567_vm12, %v4781_v16, %v4782_v17  ;;  %5069 = vrot.lane.b32.xlu0 %v5685_v31, %s5296_s22  ;;  %5074 = vrot.lane.b32.xlu1 %v5662_v9, %s5295_s21 }
 0x122   :  { %v4790_v23 = vpop.permute.xlu0 %4789  ;;  %v2100_v24 = vpack.c.bf16 %v1476_v22, %v1458_v19  ;;  %v549_v29 = vsel %vm548_vm11, %v4786_v3, %v4766_v59  ;;  %v1457_v32 = vsel %vm548_vm11, %v4787_v20, %v4776_v11  ;;  %vm852_vm11 = vcmask 687104  }
 0x123   :  { %v4792_v25 = vunpack.i.h.bf16 %v4790_v23  ;;  %v4791_v26 = vunpack.i.l.bf16 %v4790_v23  ;;  %v4795_v27 = vpop.permute.xlu1 %4794 }
 0x124   :  { %v4797_v28 = vunpack.i.h.bf16 %v4795_v27  ;;  %v4796_v8 = vunpack.i.l.bf16 %v4795_v27  ;;  %2972 = vmatprep.subr.bf16.mxu1 %v2100_v24 }
 0x125   :  { %v568_v30 = vsel %vm567_vm12, %v4791_v26, %v4771_v5  ;;  %v1475_v33 = vsel %vm567_vm12, %v4792_v25, %v4781_v16  ;;  %5079 = vrot.lane.b32.xlu0 %v5662_v9, %s5296_s22  ;;  %5084 = vrot.lane.b32.xlu1 %v5676_v21, %s5295_s21  ;;  %vm871_vm12 = vcmask 678912  }
 0x126   :  { %v4800_v31 = vpop.permute.xlu0 %4799  ;;  %v2097_v34 = vpack.c.bf16 %v568_v30, %v549_v29  ;;  %v2099_v35 = vpack.c.bf16 %v1475_v33, %v1457_v32  ;;  %v588_v39 = vsel %vm586_vm13, %v4796_v8, %v4797_v28  ;;  %v5098_v28 = vld [vmem:[%s6098_s1 + $0x20] ss:$16 sps:$4 sm:$0xff]   ;;  %v5099_v33 = vld [vmem:[%s6098_s1 + $0x44] ss:$16 sps:$4 sm:$0xff]  }
 0x127   :  { %v4802_v36 = vunpack.i.h.bf16 %v4800_v31  ;;  %v4801_v37 = vunpack.i.l.bf16 %v4800_v31  ;;  %v4805_v38 = vpop.permute.xlu1 %4804 }
 0x128   :  { %v4807_v40 = vunpack.i.h.bf16 %v4805_v38  ;;  %v4806_v41 = vunpack.i.l.bf16 %v4805_v38  ;;  %2587 = vmatpush1.bf16.msra.mxu0 %v2097_v34  ;;  %2973 = vmatpush1.bf16.msra.mxu1 %v2099_v35 }
 0x129   :  { %v607_v42 = vsel %vm605_vm14, %v4801_v37, %v4802_v36  ;;  %5089 = vrot.lane.b32.xlu0 %v5676_v21, %s5296_s22 }
 0x12a   :  { %v4810_v9 = vpop.permute.xlu0 %4809  ;;  %v2102_v43 = vpack.c.bf16 %v607_v42, %v588_v39  ;;  %v1494_v46 = vsel %vm586_vm13, %v4806_v41, %v4807_v40 }
 0x12b   :  { %v4812_v44 = vunpack.i.h.bf16 %v4810_v9  ;;  %v4811_v14 = vunpack.i.l.bf16 %v4810_v9  ;;  %v4815_v45 = vpop.permute.xlu1 %4814 }
 0x12c   :  { %2588 = vmatprep.subr.bf16.mxu0 %v2102_v43  ;;  %v4817_v47 = vunpack.i.h.bf16 %v4815_v45  ;;  %v4816_v48 = vunpack.i.l.bf16 %v4815_v45 }
 0x12d   :  { %v1512_v49 = vsel %vm605_vm14, %v4811_v14, %v4812_v44 }
 0x12e   :  { %v4820_v50 = vpop.permute.xlu0 %4819  ;;  %v2104_v51 = vpack.c.bf16 %v1512_v49, %v1494_v46  ;;  %v587_v21 = vsel %vm586_vm13, %v4816_v48, %v4796_v8  ;;  %v1493_v58 = vsel %vm586_vm13, %v4817_v47, %v4806_v41  ;;  %v5101_v46 = vld [vmem:[%s6098_s1 + $0x40] ss:$16 sps:$4 sm:$0xff]   ;;  %vm890_vm13 = vcmask 670720  }
 0x12f   :  { %v4822_v52 = vunpack.i.h.bf16 %v4820_v50  ;;  %v4821_v53 = vunpack.i.l.bf16 %v4820_v50  ;;  %v4825_v54 = vpop.permute.xlu1 %4824  ;;  %v5102_v50 = vld [vmem:[%s6098_s1 + $0x64] ss:$16 sps:$4 sm:$0xff]  }
 0x130   :  { %v4827_v55 = vunpack.i.h.bf16 %v4825_v54  ;;  %v4826_v56 = vunpack.i.l.bf16 %v4825_v54  ;;  %2974 = vmatprep.subr.bf16.mxu1 %v2104_v51 }
 0x131   :  { %v606_v57 = vsel %vm605_vm14, %v4821_v53, %v4801_v37  ;;  %v1511_v59 = vsel %vm605_vm14, %v4822_v52, %v4811_v14  ;;  %vm909_vm14 = vcmask 662528  }
 0x132   :  { %v4830_v60 = vpop.permute.xlu0 %4829  ;;  %v2101_v61 = vpack.c.bf16 %v606_v57, %v587_v21  ;;  %v2103_v62 = vpack.c.bf16 %v1511_v59, %v1493_v58  ;;  %v626_v4 = vsel %vm624_vm15, %v4826_v56, %v4827_v55 }
 0x133   :  { %v4832_v63 = vunpack.i.h.bf16 %v4830_v60  ;;  %v4831_v0 = vunpack.i.l.bf16 %v4830_v60  ;;  %v4835_v1 = vpop.permute.xlu1 %4834 }
 0x134   :  { %v4837_v5 = vunpack.i.h.bf16 %v4835_v1  ;;  %v4836_v6 = vunpack.i.l.bf16 %v4835_v1  ;;  %2589 = vmatpush1.bf16.msra.mxu0 %v2101_v61  ;;  %2975 = vmatpush1.bf16.msra.mxu1 %v2103_v62 }
 0x135   :  { %v645_v10 = vsel %vm643_vm0, %v4831_v0, %v4832_v63 }
 0x136   :  { %v4840_v11 = vpop.permute.xlu0 %4839  ;;  %v2106_v12 = vpack.c.bf16 %v645_v10, %v626_v4  ;;  %v1530_v16 = vsel %vm624_vm15, %v4836_v6, %v4837_v5  ;;  %v5104_v5 = vld [vmem:[%s6098_s1 + $0x60] ss:$16 sps:$4 sm:$0xff]  }
 0x137   :  { %v4842_v13 = vunpack.i.h.bf16 %v4840_v11  ;;  %v4841_v15 = vunpack.i.l.bf16 %v4840_v11  ;;  %v4845_v17 = vpop.permute.xlu1 %4844  ;;  %2591 = vmatmul.mubr.bf16.vlgmr.msra.gmra.mrb[0].mxu0 %v5093_v2  ;;  %2977 = vmatmul.mubr.bf16.vlgmr.msra.gmra.mrb[0].mxu1 %v5093_v2  ;;  %v5105_v11 = vld [vmem:[%s6098_s1 + $0x84] ss:$16 sps:$4 sm:$0xff]  }
 0x138   :  { %v4847_v18 = vunpack.i.h.bf16 %v4845_v17  ;;  %v4846_v19 = vunpack.i.l.bf16 %v4845_v17  ;;  %2751 = vmatprep.subr.bf16.mxu0 %v2106_v12  ;;  %2600 = vmatprep.mubr.bf16.mxu0 %v5096_v7 }
 0x139   :  { %v1548_v3 = vsel %vm643_vm0, %v4841_v15, %v4842_v13  ;;  %2986 = vmatprep.mubr.bf16.mxu1 %v5096_v7 }
 0x13a   :  { %v4850_v20 = vpop.permute.xlu0 %4849  ;;  %v2108_v22 = vpack.c.bf16 %v1548_v3, %v1530_v16  ;;  %v625_v23 = vsel %vm624_vm15, %v4846_v19, %v4826_v56  ;;  %v1529_v24 = vsel %vm624_vm15, %v4847_v18, %v4836_v6  ;;  %vm928_vm15 = vcmask 654336  }
 0x13b   :  { %v4852_v25 = vunpack.i.h.bf16 %v4850_v20  ;;  %v4851_v26 = vunpack.i.l.bf16 %v4850_v20  ;;  %v4855_v27 = vpop.permute.xlu1 %4854 }
 0x13c   :  { %v4857_v8 = vunpack.i.h.bf16 %v4855_v27  ;;  %v4856_v29 = vunpack.i.l.bf16 %v4855_v27  ;;  %3137 = vmatprep.subr.bf16.mxu1 %v2108_v22 }
 0x13d   :  { %v644_v30 = vsel %vm643_vm0, %v4851_v26, %v4831_v0  ;;  %v1547_v32 = vsel %vm643_vm0, %v4852_v25, %v4841_v15  ;;  %vm947_vm0 = vcmask 646144  }
 0x13e   :  { %v2105_v31 = vpack.c.bf16 %v644_v30, %v625_v23  ;;  %v2107_v34 = vpack.c.bf16 %v1547_v32, %v1529_v24  ;;  %v4860_v35 = vpop.permute.xlu0 %4859  ;;  %v664_v39 = vsel %vm662_vm1, %v4856_v29, %v4857_v8 }
 0x13f   :  { %v4862_v36 = vunpack.i.h.bf16 %v4860_v35  ;;  %v4861_v37 = vunpack.i.l.bf16 %v4860_v35  ;;  %v4865_v38 = vpop.permute.xlu1 %4864  ;;  %2601 = vmatmul.mubr.bf16.gmra.mrb[4].mxu0 %v5098_v28  ;;  %2987 = vmatmul.mubr.bf16.gmra.mrb[4].mxu1 %v5098_v28 }
 0x140   :  { %v4867_v40 = vunpack.i.h.bf16 %v4865_v38  ;;  %v4866_v41 = vunpack.i.l.bf16 %v4865_v38  ;;  %2752 = vmatpush1.bf16.msra.mxu0 %v2105_v31  ;;  %3138 = vmatpush1.bf16.msra.mxu1 %v2107_v34  ;;  %v5108_v34 = vld [vmem:[%s6098_s1 + $0xa4] ss:$16 sps:$4 sm:$0xff]  }
 0x141   :  { %2610 = vmatprep.mubr.bf16.mxu0 %v5099_v33  ;;  %2996 = vmatprep.mubr.bf16.mxu1 %v5099_v33  ;;  %v683_v42 = vsel %vm681_vm2, %v4861_v37, %v4862_v36 }
 0x142   :  { %v4870_v9 = vpop.permute.xlu0 %4869  ;;  %v2110_v43 = vpack.c.bf16 %v683_v42, %v664_v39  ;;  %v1566_v47 = vsel %vm662_vm1, %v4866_v41, %v4867_v40 }
 0x143   :  { %v4872_v44 = vunpack.i.h.bf16 %v4870_v9  ;;  %v4871_v14 = vunpack.i.l.bf16 %v4870_v9  ;;  %v4875_v45 = vpop.permute.xlu1 %4874 }
 0x144   :  { %v4877_v48 = vunpack.i.h.bf16 %v4875_v45  ;;  %v4876_v49 = vunpack.i.l.bf16 %v4875_v45  ;;  %2753 = vmatprep.subr.bf16.mxu0 %v2110_v43 }
 0x145   :  { %v1584_v51 = vsel %vm681_vm2, %v4871_v14, %v4872_v44 }
 0x146   :  { %v4880_v52 = vpop.permute.xlu0 %4879  ;;  %v2112_v53 = vpack.c.bf16 %v1584_v51, %v1566_v47  ;;  %v663_v54 = vsel %vm662_vm1, %v4876_v49, %v4856_v29  ;;  %v1565_v55 = vsel %vm662_vm1, %v4877_v48, %v4866_v41  ;;  %v5107_v29 = vld [vmem:[%s6098_s1 + $0x80] ss:$16 sps:$4 sm:$0xff]   ;;  %vm2509_vm1 = vcmask 130048  }
 0x147   :  { %v4882_v56 = vunpack.i.h.bf16 %v4880_v52  ;;  %v4881_v21 = vunpack.i.l.bf16 %v4880_v52  ;;  %v4885_v57 = vpop.permute.xlu1 %4884  ;;  %2611 = vmatmul.mubr.bf16.gmra.mrb[8].mxu0 %v5101_v46  ;;  %2997 = vmatmul.mubr.bf16.gmra.mrb[8].mxu1 %v5101_v46  ;;  %v5110_v48 = vld [vmem:[%s6098_s1 + $0xa0] ss:$16 sps:$4 sm:$0xff]   ;;  %v5111_v52 = vld [vmem:[%s6098_s1 + $0xc4] ss:$16 sps:$4 sm:$0xff]  }
 0x148   :  { %v4887_v58 = vunpack.i.h.bf16 %v4885_v57  ;;  %v4886_v59 = vunpack.i.l.bf16 %v4885_v57  ;;  %3139 = vmatprep.subr.bf16.mxu1 %v2112_v53  ;;  %2620 = vmatprep.mubr.bf16.mxu0 %v5102_v50 }
 0x149   :  { %v682_v60 = vsel %vm681_vm2, %v4881_v21, %v4861_v37  ;;  %v1583_v61 = vsel %vm681_vm2, %v4882_v56, %v4871_v14  ;;  %3006 = vmatprep.mubr.bf16.mxu1 %v5102_v50 }
 0x14a   :  { %v2109_v62 = vpack.c.bf16 %v682_v60, %v663_v54  ;;  %v2111_v63 = vpack.c.bf16 %v1583_v61, %v1565_v55  ;;  %v4890_v0 = vpop.permute.xlu0 %4889  ;;  %v702_v6 = vsel %vm700_vm3, %v4886_v59, %v4887_v58 }
 0x14b   :  { %v4892_v1 = vunpack.i.h.bf16 %v4890_v0  ;;  %v4891_v2 = vunpack.i.l.bf16 %v4890_v0  ;;  %v4895_v4 = vpop.permute.xlu1 %4894 }
 0x14c   :  { %v4897_v7 = vunpack.i.h.bf16 %v4895_v4  ;;  %v4896_v10 = vunpack.i.l.bf16 %v4895_v4  ;;  %2754 = vmatpush1.bf16.msra.mxu0 %v2109_v62  ;;  %3140 = vmatpush1.bf16.msra.mxu1 %v2111_v63 }
 0x14d   :  { %v721_v12 = vsel %vm719_vm4, %v4891_v2, %v4892_v1 }
 0x14e   :  { %v4900_v13 = vpop.permute.xlu0 %4899  ;;  %v2114_v15 = vpack.c.bf16 %v721_v12, %v702_v6  ;;  %v1602_v19 = vsel %vm700_vm3, %v4896_v10, %v4897_v7  ;;  %v5113_v7 = vld [vmem:[%s6098_s1 + $0xc0] ss:$16 sps:$4 sm:$0xff]  }
 0x14f   :  { %v4902_v17 = vunpack.i.h.bf16 %v4900_v13  ;;  %v4901_v16 = vunpack.i.l.bf16 %v4900_v13  ;;  %v4905_v18 = vpop.permute.xlu1 %4904  ;;  %2621 = vmatmul.mubr.bf16.gmra.mrb[12].mxu0 %v5104_v5  ;;  %3007 = vmatmul.mubr.bf16.gmra.mrb[12].mxu1 %v5104_v5  ;;  %v5114_v13 = vld [vmem:[%s6098_s1 + $0xe4] ss:$16 sps:$4 sm:$0xff]  }
 0x150   :  { %v4907_v3 = vunpack.i.h.bf16 %v4905_v18  ;;  %v4906_v20 = vunpack.i.l.bf16 %v4905_v18  ;;  %2755 = vmatprep.subr.bf16.mxu0 %v2114_v15  ;;  %2630 = vmatprep.mubr.bf16.mxu0 %v5105_v11 }
 0x151   :  { %3016 = vmatprep.mubr.bf16.mxu1 %v5105_v11  ;;  %v1620_v22 = vsel %vm719_vm4, %v4901_v16, %v4902_v17 }
 0x152   :  { %v4910_v23 = vpop.permute.xlu0 %4909  ;;  %v2116_v24 = vpack.c.bf16 %v1620_v22, %v1602_v19  ;;  %v701_v25 = vsel %vm700_vm3, %v4906_v20, %v4886_v59  ;;  %v1601_v26 = vsel %vm700_vm3, %v4907_v3, %v4896_v10 }
 0x153   :  { %v4912_v27 = vunpack.i.h.bf16 %v4910_v23  ;;  %v4911_v28 = vunpack.i.l.bf16 %v4910_v23  ;;  %v4915_v8 = vpop.permute.xlu1 %4914 }
 0x154   :  { %v4917_v30 = vunpack.i.h.bf16 %v4915_v8  ;;  %v4916_v32 = vunpack.i.l.bf16 %v4915_v8  ;;  %3141 = vmatprep.subr.bf16.mxu1 %v2116_v24  ;;  %v5116_v8 = vld [vmem:[%s6098_s1 + $0xe0] ss:$16 sps:$4 sm:$0xff]  }
 0x155   :  { %v720_v33 = vsel %vm719_vm4, %v4911_v28, %v4891_v2  ;;  %v1619_v31 = vsel %vm719_vm4, %v4912_v27, %v4901_v16 }
 0x156   :  { %v2113_v35 = vpack.c.bf16 %v720_v33, %v701_v25  ;;  %v2115_v36 = vpack.c.bf16 %v1619_v31, %v1601_v26  ;;  %v4920_v37 = vpop.permute.xlu0 %4919  ;;  %v740_v41 = vsel %vm738_vm5, %v4916_v32, %v4917_v30 }
 0x157   :  { %v4922_v38 = vunpack.i.h.bf16 %v4920_v37  ;;  %v4921_v39 = vunpack.i.l.bf16 %v4920_v37  ;;  %2631 = vmatmul.mubr.bf16.gmra.mrb[16].mxu0 %v5107_v29  ;;  %3017 = vmatmul.mubr.bf16.gmra.mrb[16].mxu1 %v5107_v29  ;;  %v4925_v40 = vpop.permute.xlu1 %4924 }
 0x158   :  { %2756 = vmatpush1.bf16.msra.mxu0 %v2113_v35  ;;  %v4927_v42 = vunpack.i.h.bf16 %v4925_v40  ;;  %v4926_v9 = vunpack.i.l.bf16 %v4925_v40  ;;  %3142 = vmatpush1.bf16.msra.mxu1 %v2115_v36 }
 0x159   :  { %2640 = vmatprep.mubr.bf16.mxu0 %v5108_v34  ;;  %3026 = vmatprep.mubr.bf16.mxu1 %v5108_v34  ;;  %v759_v43 = vsel %vm757_vm6, %v4921_v39, %v4922_v38  ;;  %v5117_v34 = vld [vmem:[%s6098_s1 + $0x104] ss:$16 sps:$4 sm:$0xff]  }
 0x15a   :  { %v4930_v44 = vpop.permute.xlu0 %4929  ;;  %v2118_v14 = vpack.c.bf16 %v759_v43, %v740_v41  ;;  %v1638_v49 = vsel %vm738_vm5, %v4926_v9, %v4927_v42 }
 0x15b   :  { %v4932_v45 = vunpack.i.h.bf16 %v4930_v44  ;;  %v4931_v46 = vunpack.i.l.bf16 %v4930_v44  ;;  %v4935_v47 = vpop.permute.xlu1 %4934 }
 0x15c   :  { %v4937_v50 = vunpack.i.h.bf16 %v4935_v47  ;;  %v4936_v51 = vunpack.i.l.bf16 %v4935_v47  ;;  %2757 = vmatprep.subr.bf16.mxu0 %v2118_v14 }
 0x15d   :  { %v1656_v53 = vsel %vm757_vm6, %v4931_v46, %v4932_v45 }
 0x15e   :  { %v4940_v54 = vpop.permute.xlu0 %4939  ;;  %v2120_v55 = vpack.c.bf16 %v1656_v53, %v1638_v49  ;;  %v739_v56 = vsel %vm738_vm5, %v4936_v51, %v4916_v32  ;;  %v1637_v21 = vsel %vm738_vm5, %v4937_v50, %v4926_v9 }
 0x15f   :  { %v4942_v57 = vunpack.i.h.bf16 %v4940_v54  ;;  %v4941_v58 = vunpack.i.l.bf16 %v4940_v54  ;;  %2641 = vmatmul.mubr.bf16.gmra.mrb[20].mxu0 %v5110_v48  ;;  %3027 = vmatmul.mubr.bf16.gmra.mrb[20].mxu1 %v5110_v48  ;;  %v4945_v59 = vpop.permute.xlu1 %4944  ;;  %v5120_v54 = vld [vmem:[%s6098_s1 + $0x124] ss:$16 sps:$4 sm:$0xff]  }
 0x160   :  { %v4947_v60 = vunpack.i.h.bf16 %v4945_v59  ;;  %v4946_v61 = vunpack.i.l.bf16 %v4945_v59  ;;  %2650 = vmatprep.mubr.bf16.mxu0 %v5111_v52  ;;  %3036 = vmatprep.mubr.bf16.mxu1 %v5111_v52 }
 0x161   :  { %v758_v62 = vsel %vm757_vm6, %v4941_v58, %v4921_v39  ;;  %v1655_v63 = vsel %vm757_vm6, %v4942_v57, %v4931_v46  ;;  %3143 = vmatprep.subr.bf16.mxu1 %v2120_v55  ;;  %v5119_v46 = vld [vmem:[%s6098_s1 + $0x100] ss:$16 sps:$4 sm:$0xff]  }
 0x162   :  { %v2117_v0 = vpack.c.bf16 %v758_v62, %v739_v56  ;;  %v2119_v1 = vpack.c.bf16 %v1655_v63, %v1637_v21  ;;  %v4950_v2 = vpop.permute.xlu0 %4949  ;;  %v778_v10 = vsel %vm776_vm7, %v4946_v61, %v4947_v60 }
 0x163   :  { %v4952_v4 = vunpack.i.h.bf16 %v4950_v2  ;;  %v4951_v5 = vunpack.i.l.bf16 %v4950_v2  ;;  %v4955_v6 = vpop.permute.xlu1 %4954 }
 0x164   :  { %2758 = vmatpush1.bf16.msra.mxu0 %v2117_v0  ;;  %v4957_v11 = vunpack.i.h.bf16 %v4955_v6  ;;  %v4956_v12 = vunpack.i.l.bf16 %v4955_v6  ;;  %3144 = vmatpush1.bf16.msra.mxu1 %v2119_v1 }
 0x165   :  { %v797_v15 = vsel %vm795_vm8, %v4951_v5, %v4952_v4 }
 0x166   :  { %v4960_v17 = vpop.permute.xlu0 %4959  ;;  %v2122_v16 = vpack.c.bf16 %v797_v15, %v778_v10  ;;  %v1674_v20 = vsel %vm776_vm7, %v4956_v12, %v4957_v11 }
 0x167   :  { %v4962_v18 = vunpack.i.h.bf16 %v4960_v17  ;;  %v4961_v19 = vunpack.i.l.bf16 %v4960_v17  ;;  %2651 = vmatmul.mubr.bf16.gmra.mrb[24].mxu0 %v5113_v7  ;;  %3037 = vmatmul.mubr.bf16.gmra.mrb[24].mxu1 %v5113_v7  ;;  %v4965_v3 = vpop.permute.xlu1 %4964  ;;  %v5123_v17 = vld [vmem:[%s6098_s1 + $0x144] ss:$16 sps:$4 sm:$0xff]  }
 0x168   :  { %v4967_v22 = vunpack.i.h.bf16 %v4965_v3  ;;  %v4966_v23 = vunpack.i.l.bf16 %v4965_v3  ;;  %2660 = vmatprep.mubr.bf16.mxu0 %v5114_v13  ;;  %3046 = vmatprep.mubr.bf16.mxu1 %v5114_v13 }
 0x169   :  { %2759 = vmatprep.subr.bf16.mxu0 %v2122_v16  ;;  %v1692_v24 = vsel %vm795_vm8, %v4961_v19, %v4962_v18 }
 0x16a   :  { %v2124_v25 = vpack.c.bf16 %v1692_v24, %v1674_v20  ;;  %v777_v27 = vsel %vm776_vm7, %v4966_v23, %v4946_v61  ;;  %v1673_v28 = vsel %vm776_vm7, %v4967_v22, %v4956_v12 }
 0x16b   :  { %v4970_v26 = vpop.permute.xlu0 %4969  ;;  %v4975_v29 = vpop.permute.xlu1 %4974 }
 0x16c   :  { %v4972_v30 = vunpack.i.h.bf16 %v4970_v26  ;;  %v4971_v32 = vunpack.i.l.bf16 %v4970_v26  ;;  %v4977_v33 = vunpack.i.h.bf16 %v4975_v29  ;;  %v4976_v31 = vunpack.i.l.bf16 %v4975_v29  ;;  %3145 = vmatprep.subr.bf16.mxu1 %v2124_v25 }
 0x16e   :  { %v796_v35 = vsel %vm795_vm8, %v4971_v32, %v4951_v5  ;;  %v1691_v36 = vsel %vm795_vm8, %v4972_v30, %v4961_v19  ;;  %v816_v41 = vsel %vm814_vm9, %v4976_v31, %v4977_v33  ;;  %v5122_v5 = vld [vmem:[%s6098_s1 + $0x120] ss:$16 sps:$4 sm:$0xff]  }
 0x16f   :  { %v2121_v37 = vpack.c.bf16 %v796_v35, %v777_v27  ;;  %v2123_v38 = vpack.c.bf16 %v1691_v36, %v1673_v28  ;;  %2661 = vmatmul.mubr.bf16.gmra.mrb[28].mxu0 %v5116_v8  ;;  %3047 = vmatmul.mubr.bf16.gmra.mrb[28].mxu1 %v5116_v8  ;;  %v4980_v39 = vpop.permute.xlu0 %4979  ;;  %v4985_v40 = vpop.permute.xlu1 %4984  ;;  %v5125_v27 = vld [vmem:[%s6098_s1 + $0x140] ss:$16 sps:$4 sm:$0xff]   ;;  %v5126_v36 = vld [vmem:[%s6098_s1 + $0x164] ss:$16 sps:$4 sm:$0xff]  }
 0x170   :  { %v4982_v42 = vunpack.i.h.bf16 %v4980_v39  ;;  %v4981_v9 = vunpack.i.l.bf16 %v4980_v39  ;;  %v4987_v43 = vunpack.i.h.bf16 %v4985_v40  ;;  %v4986_v44 = vunpack.i.l.bf16 %v4985_v40  ;;  %2670 = vmatprep.mubr.bf16.mxu0 %v5117_v34  ;;  %3056 = vmatprep.mubr.bf16.mxu1 %v5117_v34 }
 0x171   :  { %2760 = vmatpush1.bf16.msra.mxu0 %v2121_v37  ;;  %3146 = vmatpush1.bf16.msra.mxu1 %v2123_v38 }
 0x172   :  { %v835_v14 = vsel %vm833_vm10, %v4981_v9, %v4982_v42  ;;  %v1710_v49 = vsel %vm814_vm9, %v4986_v44, %v4987_v43 }
 0x173   :  { %v4990_v45 = vpop.permute.xlu0 %4989  ;;  %v4995_v47 = vpop.permute.xlu1 %4994  ;;  %v2126_v48 = vpack.c.bf16 %v835_v14, %v816_v41 }
 0x174   :  { %v4992_v50 = vunpack.i.h.bf16 %v4990_v45  ;;  %v4991_v51 = vunpack.i.l.bf16 %v4990_v45  ;;  %v4997_v52 = vunpack.i.h.bf16 %v4995_v47  ;;  %v4996_v53 = vunpack.i.l.bf16 %v4995_v47  ;;  %v5128_v47 = vld [vmem:[%s6098_s1 + $0x160] ss:$16 sps:$4 sm:$0xff]  }
 0x175   :  { %2761 = vmatprep.subr.bf16.mxu0 %v2126_v48 }
 0x176   :  { %v1728_v55 = vsel %vm833_vm10, %v4991_v51, %v4992_v50  ;;  %v815_v21 = vsel %vm814_vm9, %v4996_v53, %v4976_v31  ;;  %v1709_v57 = vsel %vm814_vm9, %v4997_v52, %v4986_v44 }
 0x177   :  { %2671 = vmatmul.mubr.bf16.gmra.mrb[32].mxu0 %v5119_v46  ;;  %3057 = vmatmul.mubr.bf16.gmra.mrb[32].mxu1 %v5119_v46  ;;  %v5000_v56 = vpop.permute.xlu0 %4999  ;;  %v5005_v58 = vpop.permute.xlu1 %5004  ;;  %v2128_v59 = vpack.c.bf16 %v1728_v55, %v1710_v49 }
 0x178   :  { %v5002_v60 = vunpack.i.h.bf16 %v5000_v56  ;;  %v5001_v61 = vunpack.i.l.bf16 %v5000_v56  ;;  %2680 = vmatprep.mubr.bf16.mxu0 %v5120_v54  ;;  %3066 = vmatprep.mubr.bf16.mxu1 %v5120_v54  ;;  %v5007_v62 = vunpack.i.h.bf16 %v5005_v58  ;;  %v5006_v63 = vunpack.i.l.bf16 %v5005_v58  ;;  %v5129_v56 = vld [vmem:[%s6098_s1 + $0x184] ss:$16 sps:$4 sm:$0xff]  }
 0x179   :  { %3147 = vmatprep.subr.bf16.mxu1 %v2128_v59 }
 0x17a   :  { %v834_v0 = vsel %vm833_vm10, %v5001_v61, %v4981_v9  ;;  %v1727_v1 = vsel %vm833_vm10, %v5002_v60, %v4991_v51  ;;  %v854_v10 = vsel %vm852_vm11, %v5006_v63, %v5007_v62 }
 0x17b   :  { %v2125_v2 = vpack.c.bf16 %v834_v0, %v815_v21  ;;  %v2127_v4 = vpack.c.bf16 %v1727_v1, %v1709_v57  ;;  %v5010_v6 = vpop.permute.xlu0 %5009  ;;  %v5015_v7 = vpop.permute.xlu1 %5014 }
 0x17c   :  { %v5012_v11 = vunpack.i.h.bf16 %v5010_v6  ;;  %v5011_v12 = vunpack.i.l.bf16 %v5010_v6  ;;  %v5017_v13 = vunpack.i.h.bf16 %v5015_v7  ;;  %v5016_v15 = vunpack.i.l.bf16 %v5015_v7  ;;  %v5131_v7 = vld [vmem:[%s6098_s1 + $0x180] ss:$16 sps:$4 sm:$0xff]  }
 0x17d   :  { %2762 = vmatpush1.bf16.msra.mxu0 %v2125_v2  ;;  %3148 = vmatpush1.bf16.msra.mxu1 %v2127_v4 }
 0x17e   :  { %v873_v16 = vsel %vm871_vm12, %v5011_v12, %v5012_v11  ;;  %v1746_v20 = vsel %vm852_vm11, %v5016_v15, %v5017_v13 }
 0x17f   :  { %2681 = vmatmul.mubr.bf16.gmra.mrb[36].mxu0 %v5122_v5  ;;  %3067 = vmatmul.mubr.bf16.gmra.mrb[36].mxu1 %v5122_v5  ;;  %v5020_v18 = vpop.permute.xlu0 %5019  ;;  %v5025_v19 = vpop.permute.xlu1 %5024  ;;  %v2130_v3 = vpack.c.bf16 %v873_v16, %v854_v10 }
 0x180   :  { %v5022_v22 = vunpack.i.h.bf16 %v5020_v18  ;;  %v5021_v23 = vunpack.i.l.bf16 %v5020_v18  ;;  %2690 = vmatprep.mubr.bf16.mxu0 %v5123_v17  ;;  %3076 = vmatprep.mubr.bf16.mxu1 %v5123_v17  ;;  %v5027_v24 = vunpack.i.h.bf16 %v5025_v19  ;;  %v5026_v25 = vunpack.i.l.bf16 %v5025_v19  ;;  %v5132_v17 = vld [vmem:[%s6098_s1 + $0x1a4] ss:$16 sps:$4 sm:$0xff]  }
 0x181   :  { %2763 = vmatprep.subr.bf16.mxu0 %v2130_v3 }
 0x182   :  { %v1764_v26 = vsel %vm871_vm12, %v5021_v23, %v5022_v22  ;;  %v853_v8 = vsel %vm852_vm11, %v5026_v25, %v5006_v63  ;;  %v1745_v29 = vsel %vm852_vm11, %v5027_v24, %v5016_v15 }
 0x183   :  { %v5030_v28 = vpop.permute.xlu0 %5029  ;;  %v5035_v30 = vpop.permute.xlu1 %5034  ;;  %v2132_v32 = vpack.c.bf16 %v1764_v26, %v1746_v20 }
 0x184   :  { %v5032_v33 = vunpack.i.h.bf16 %v5030_v28  ;;  %v5031_v31 = vunpack.i.l.bf16 %v5030_v28  ;;  %v5037_v34 = vunpack.i.h.bf16 %v5035_v30  ;;  %v5036_v35 = vunpack.i.l.bf16 %v5035_v30 }
 0x185   :  { %3149 = vmatprep.subr.bf16.mxu1 %v2132_v32 }
 0x186   :  { %v872_v37 = vsel %vm871_vm12, %v5031_v31, %v5011_v12  ;;  %v1763_v38 = vsel %vm871_vm12, %v5032_v33, %v5021_v23  ;;  %v892_v9 = vsel %vm890_vm13, %v5036_v35, %v5037_v34 }
 0x187   :  { %2691 = vmatmul.mubr.bf16.gmra.mrb[40].mxu0 %v5125_v27  ;;  %3077 = vmatmul.mubr.bf16.gmra.mrb[40].mxu1 %v5125_v27  ;;  %v2129_v39 = vpack.c.bf16 %v872_v37, %v853_v8  ;;  %v2131_v40 = vpack.c.bf16 %v1763_v38, %v1745_v29  ;;  %v5040_v41 = vpop.permute.xlu0 %5039  ;;  %v5045_v42 = vpop.permute.xlu1 %5044  ;;  %v5134_v8 = vld [vmem:[%s6098_s1 + $0x1a0] ss:$16 sps:$4 sm:$0xff]  }
 0x188   :  { %v5042_v43 = vunpack.i.h.bf16 %v5040_v41  ;;  %v5041_v44 = vunpack.i.l.bf16 %v5040_v41  ;;  %2700 = vmatprep.mubr.bf16.mxu0 %v5126_v36  ;;  %3086 = vmatprep.mubr.bf16.mxu1 %v5126_v36  ;;  %v5047_v14 = vunpack.i.h.bf16 %v5045_v42  ;;  %v5046_v45 = vunpack.i.l.bf16 %v5045_v42  ;;  %v5138_v41 = vld [vmem:[%s6098_s1 + $0x1e4] ss:$16 sps:$4 sm:$0xff]   ;;  %v5140_v42 = vld [vmem:[%s6098_s1 + $0x1e0] ss:$16 sps:$4 sm:$0xff]  }
 0x189   :  { %2764 = vmatpush1.bf16.msra.mxu0 %v2129_v39  ;;  %3150 = vmatpush1.bf16.msra.mxu1 %v2131_v40  ;;  %v5137_v40 = vld [vmem:[%s6098_s1 + $0x1c0] ss:$16 sps:$4 sm:$0xff]  }
 0x18a   :  { %v911_v46 = vsel %vm909_vm14, %v5041_v44, %v5042_v43  ;;  %v1782_v51 = vsel %vm890_vm13, %v5046_v45, %v5047_v14  ;;  %v5141_v43 = vld [vmem:[%s6098_s1 + $0x8] ss:$16 sps:$4 sm:$0xff]  }
 0x18b   :  { %v5050_v48 = vpop.permute.xlu0 %5049  ;;  %v5055_v49 = vpop.permute.xlu1 %5054  ;;  %v2134_v50 = vpack.c.bf16 %v911_v46, %v892_v9  ;;  %v5143_v9 = vld [vmem:[%s6098_s1 + $0xc] ss:$16 sps:$4 sm:$0xff]   ;;  %v5146_v14 = vld [vmem:[%s6098_s1 + $0x28] ss:$16 sps:$4 sm:$0xff]  }
 0x18c   :  { %v5052_v52 = vunpack.i.h.bf16 %v5050_v48  ;;  %v5051_v53 = vunpack.i.l.bf16 %v5050_v48  ;;  %v5057_v54 = vunpack.i.h.bf16 %v5055_v49  ;;  %v5056_v55 = vunpack.i.l.bf16 %v5055_v49  ;;  %v5149_v46 = vld [vmem:[%s6098_s1 + $0x48] ss:$16 sps:$4 sm:$0xff]   ;;  %v5153_v49 = vld [vmem:[%s6098_s1 + $0x8c] ss:$16 sps:$4 sm:$0xff]  }
 0x18d   :  { %2765 = vmatprep.subr.bf16.mxu0 %v2134_v50  ;;  %v5152_v48 = vld [vmem:[%s6098_s1 + $0x68] ss:$16 sps:$4 sm:$0xff]  }
 0x18e   :  { %v1800_v21 = vsel %vm909_vm14, %v5051_v53, %v5052_v52  ;;  %v891_v58 = vsel %vm890_vm13, %v5056_v55, %v5036_v35  ;;  %v1781_v59 = vsel %vm890_vm13, %v5057_v54, %v5046_v45  ;;  %v5135_v35 = vld [vmem:[%s6098_s1 + $0x1c4] ss:$16 sps:$4 sm:$0xff]   ;;  %v5147_v45 = vld [vmem:[%s6098_s1 + $0x4c] ss:$16 sps:$4 sm:$0xff]   ;;  %v5155_v50 = vld [vmem:[%s6098_s1 + $0x88] ss:$16 sps:$4 sm:$0xff]  }
 0x18f   :  { %2701 = vmatmul.mubr.bf16.gmra.mrb[44].mxu0 %v5128_v47  ;;  %3087 = vmatmul.mubr.bf16.gmra.mrb[44].mxu1 %v5128_v47  ;;  %v5060_v57 = vpop.permute.xlu0 %5059  ;;  %v5065_v60 = vpop.permute.xlu1 %5064  ;;  %v2136_v61 = vpack.c.bf16 %v1800_v21, %v1782_v51  ;;  %v5150_v47 = vld [vmem:[%s6098_s1 + $0x6c] ss:$16 sps:$4 sm:$0xff]   ;;  %v5158_v52 = vld [vmem:[%s6098_s1 + $0xa8] ss:$16 sps:$4 sm:$0xff]  }
 0x190   :  { %v5062_v62 = vunpack.i.h.bf16 %v5060_v57  ;;  %v5061_v63 = vunpack.i.l.bf16 %v5060_v57  ;;  %2710 = vmatprep.mubr.bf16.mxu0 %v5129_v56  ;;  %3096 = vmatprep.mubr.bf16.mxu1 %v5129_v56  ;;  %v5067_v0 = vunpack.i.h.bf16 %v5065_v60  ;;  %v5066_v1 = vunpack.i.l.bf16 %v5065_v60  ;;  %v5156_v51 = vld [vmem:[%s6098_s1 + $0xac] ss:$16 sps:$4 sm:$0xff]   ;;  %v5161_v54 = vld [vmem:[%s6098_s1 + $0xc8] ss:$16 sps:$4 sm:$0xff]  }
 0x191   :  { %3151 = vmatprep.subr.bf16.mxu1 %v2136_v61  ;;  %v5162_v55 = vld [vmem:[%s6098_s1 + $0xec] ss:$16 sps:$4 sm:$0xff]   ;;  %v5164_v56 = vld [vmem:[%s6098_s1 + $0xe8] ss:$16 sps:$4 sm:$0xff]  }
 0x192   :  { %v910_v2 = vsel %vm909_vm14, %v5061_v63, %v5041_v44  ;;  %v1799_v4 = vsel %vm909_vm14, %v5062_v62, %v5051_v53  ;;  %v930_v12 = vsel %vm928_vm15, %v5066_v1, %v5067_v0  ;;  %v5144_v44 = vld [vmem:[%s6098_s1 + $0x2c] ss:$16 sps:$4 sm:$0xff]   ;;  %v5167_v57 = vld [vmem:[%s6098_s1 + $0x108] ss:$16 sps:$4 sm:$0xff]  }
 0x193   :  { %v2133_v5 = vpack.c.bf16 %v910_v2, %v891_v58  ;;  %v2135_v6 = vpack.c.bf16 %v1799_v4, %v1781_v59  ;;  %v5070_v10 = vpop.permute.xlu0 %5069  ;;  %v5075_v11 = vpop.permute.xlu1 %5074  ;;  %v5159_v53 = vld [vmem:[%s6098_s1 + $0xcc] ss:$16 sps:$4 sm:$0xff]   ;;  %v5170_v59 = vld [vmem:[%s6098_s1 + $0x128] ss:$16 sps:$4 sm:$0xff]  }
 0x194   :  { %v5072_v13 = vunpack.i.h.bf16 %v5070_v10  ;;  %v5071_v15 = vunpack.i.l.bf16 %v5070_v10  ;;  %v5077_v16 = vunpack.i.h.bf16 %v5075_v11  ;;  %v5076_v18 = vunpack.i.l.bf16 %v5075_v11  ;;  %v5165_v21 = vld [vmem:[%s6098_s1 + $0x10c] ss:$16 sps:$4 sm:$0xff]   ;;  %v5173_v61 = vld [vmem:[%s6098_s1 + $0x148] ss:$16 sps:$4 sm:$0xff]  }
 0x195   :  { %2766 = vmatpush1.bf16.msra.mxu0 %v2133_v5  ;;  %3152 = vmatpush1.bf16.msra.mxu1 %v2135_v6  ;;  %v5168_v58 = vld [vmem:[%s6098_s1 + $0x12c] ss:$16 sps:$4 sm:$0xff]   ;;  %v5176_v63 = vld [vmem:[%s6098_s1 + $0x168] ss:$16 sps:$4 sm:$0xff]  }
 0x196   :  { %v949_v19 = vsel %vm947_vm0, %v5071_v15, %v5072_v13  ;;  %v1818_v23 = vsel %vm928_vm15, %v5076_v18, %v5077_v16  ;;  %v5171_v60 = vld [vmem:[%s6098_s1 + $0x14c] ss:$16 sps:$4 sm:$0xff]   ;;  %v5182_v4 = vld [vmem:[%s6098_s1 + $0x1a8] ss:$16 sps:$4 sm:$0xff]  }
 0x197   :  { %2711 = vmatmul.mubr.bf16.gmra.mrb[48].mxu0 %v5131_v7  ;;  %3097 = vmatmul.mubr.bf16.gmra.mrb[48].mxu1 %v5131_v7  ;;  %v5080_v3 = vpop.permute.xlu0 %5079  ;;  %v5085_v20 = vpop.permute.xlu1 %5084  ;;  %v2138_v22 = vpack.c.bf16 %v949_v19, %v930_v12  ;;  %v5174_v62 = vld [vmem:[%s6098_s1 + $0x16c] ss:$16 sps:$4 sm:$0xff]   ;;  %v5185_v6 = vld [vmem:[%s6098_s1 + $0x1c8] ss:$16 sps:$4 sm:$0xff]  }
 0x198   :  { %2720 = vmatprep.mubr.bf16.mxu0 %v5132_v17  ;;  %3106 = vmatprep.mubr.bf16.mxu1 %v5132_v17  ;;  %v5082_v24 = vunpack.i.h.bf16 %v5080_v3  ;;  %v5081_v25 = vunpack.i.l.bf16 %v5080_v3  ;;  %v5087_v26 = vunpack.i.h.bf16 %v5085_v20  ;;  %v5086_v27 = vunpack.i.l.bf16 %v5085_v20  ;;  %v5177_v0 = vld [vmem:[%s6098_s1 + $0x18c] ss:$16 sps:$4 sm:$0xff]   ;;  %v5188_v10 = vld [vmem:[%s6098_s1 + $0x1e8] ss:$16 sps:$4 sm:$0xff]  }
 0x199   :  { %2767 = vmatprep.subr.bf16.mxu0 %v2138_v22  ;;  %v5180_v2 = vld [vmem:[%s6098_s1 + $0x1ac] ss:$16 sps:$4 sm:$0xff]  }
 0x19a   :  { %v1836_v28 = vsel %vm947_vm0, %v5081_v25, %v5082_v24  ;;  %v929_v31 = vsel %vm928_vm15, %v5086_v27, %v5066_v1  ;;  %v1817_v34 = vsel %vm928_vm15, %v5087_v26, %v5076_v18  ;;  %v5179_v1 = vld [vmem:[%s6098_s1 + $0x188] ss:$16 sps:$4 sm:$0xff]   ;;  %v5183_v5 = vld [vmem:[%s6098_s1 + $0x1cc] ss:$16 sps:$4 sm:$0xff]  }
 0x19b   :  { %v5090_v29 = vpop.permute.xlu0 %5089  ;;  %v2140_v30 = vpack.c.bf16 %v1836_v28, %v1818_v23  ;;  %v5186_v7 = vld [vmem:[%s6098_s1 + $0x1ec] ss:$16 sps:$4 sm:$0xff]  }
 0x19c   :  { %v5092_v32 = vunpack.i.h.bf16 %v5090_v29  ;;  %v5091_v33 = vunpack.i.l.bf16 %v5090_v29  ;;  %v5191_v17 = vld [vmem:[%s6099_s2 + $0x4] ss:$8 sps:$4 sm:$0xff]  }
 0x19d   :  { %3153 = vmatprep.subr.bf16.mxu1 %v2140_v30 }
 0x19e   :  { %v948_v36 = vsel %vm947_vm0, %v5091_v33, %v5071_v15  ;;  %v1835_v37 = vsel %vm947_vm0, %v5092_v32, %v5081_v25 }
 0x19f   :  { %2721 = vmatmul.mubr.bf16.gmra.mrb[52].mxu0 %v5134_v8  ;;  %3107 = vmatmul.mubr.bf16.gmra.mrb[52].mxu1 %v5134_v8  ;;  %v2137_v38 = vpack.c.bf16 %v948_v36, %v929_v31  ;;  %v2139_v39 = vpack.c.bf16 %v1835_v37, %v1817_v34 }
 0x1a0   :  { %2730 = vmatprep.mubr.bf16.mxu0 %v5135_v35  ;;  %3116 = vmatprep.mubr.bf16.mxu1 %v5135_v35 }
 0x1a1   :  { %2768 = vmatpush1.bf16.msra.mxu0 %v2137_v38  ;;  %3154 = vmatpush1.bf16.msra.mxu1 %v2139_v39 }
 0x1a7   :  { %2731 = vmatmul.mubr.bf16.gmra.mrb[56].mxu0 %v5137_v40  ;;  %3117 = vmatmul.mubr.bf16.gmra.mrb[56].mxu1 %v5137_v40 }
 0x1a8   :  { %2740 = vmatprep.mubr.bf16.mxu0 %v5138_v41  ;;  %3126 = vmatprep.mubr.bf16.mxu1 %v5138_v41 }
 0x1af   :  { %2741 = vmatmul.mubr.bf16.gmra.mrb[60].mxu0 %v5140_v42  ;;  %3127 = vmatmul.mubr.bf16.gmra.mrb[60].mxu1 %v5140_v42 }
 0x1b0   :  { %4084 = vmatprep.mubr.msk.bf16.mxu0 %vm2509_vm1, %v5143_v9  ;;  %4100 = vmatprep.mubr.msk.bf16.mxu1 %vm2509_vm1, %v5143_v9 }
 0x1b7   :  { %2784 = vmatmul.mubr.bf16.vlgmr.msra.gmra.mrb[0].mxu0 %v5141_v43  ;;  %3170 = vmatmul.mubr.bf16.vlgmr.msra.gmra.mrb[0].mxu1 %v5141_v43 }
 0x1b8   :  { %4085 = vmatprep.mubr.msk.bf16.mxu0 %vm2509_vm1, %v5144_v44  ;;  %4101 = vmatprep.mubr.msk.bf16.mxu1 %vm2509_vm1, %v5144_v44 }
 0x1bf   :  { %2794 = vmatmul.mubr.bf16.gmra.mrb[4].mxu0 %v5146_v14  ;;  %3180 = vmatmul.mubr.bf16.gmra.mrb[4].mxu1 %v5146_v14 }
 0x1c0   :  { %4086 = vmatprep.mubr.msk.bf16.mxu0 %vm2509_vm1, %v5147_v45  ;;  %4102 = vmatprep.mubr.msk.bf16.mxu1 %vm2509_vm1, %v5147_v45 }
 0x1c7   :  { %2804 = vmatmul.mubr.bf16.gmra.mrb[8].mxu0 %v5149_v46  ;;  %3190 = vmatmul.mubr.bf16.gmra.mrb[8].mxu1 %v5149_v46 }
 0x1c8   :  { %4087 = vmatprep.mubr.msk.bf16.mxu0 %vm2509_vm1, %v5150_v47  ;;  %4103 = vmatprep.mubr.msk.bf16.mxu1 %vm2509_vm1, %v5150_v47 }
 0x1cf   :  { %2814 = vmatmul.mubr.bf16.gmra.mrb[12].mxu0 %v5152_v48  ;;  %3200 = vmatmul.mubr.bf16.gmra.mrb[12].mxu1 %v5152_v48 }
 0x1d0   :  { %4088 = vmatprep.mubr.msk.bf16.mxu0 %vm2509_vm1, %v5153_v49  ;;  %4104 = vmatprep.mubr.msk.bf16.mxu1 %vm2509_vm1, %v5153_v49 }
 0x1d7   :  { %2824 = vmatmul.mubr.bf16.gmra.mrb[16].mxu0 %v5155_v50  ;;  %3210 = vmatmul.mubr.bf16.gmra.mrb[16].mxu1 %v5155_v50 }
 0x1d8   :  { %4089 = vmatprep.mubr.msk.bf16.mxu0 %vm2509_vm1, %v5156_v51  ;;  %4105 = vmatprep.mubr.msk.bf16.mxu1 %vm2509_vm1, %v5156_v51 }
 0x1df   :  { %2834 = vmatmul.mubr.bf16.gmra.mrb[20].mxu0 %v5158_v52  ;;  %3220 = vmatmul.mubr.bf16.gmra.mrb[20].mxu1 %v5158_v52 }
 0x1e0   :  { %4090 = vmatprep.mubr.msk.bf16.mxu0 %vm2509_vm1, %v5159_v53  ;;  %4106 = vmatprep.mubr.msk.bf16.mxu1 %vm2509_vm1, %v5159_v53 }
 0x1e7   :  { %2844 = vmatmul.mubr.bf16.gmra.mrb[24].mxu0 %v5161_v54  ;;  %3230 = vmatmul.mubr.bf16.gmra.mrb[24].mxu1 %v5161_v54 }
 0x1e8   :  { %4091 = vmatprep.mubr.msk.bf16.mxu0 %vm2509_vm1, %v5162_v55  ;;  %4107 = vmatprep.mubr.msk.bf16.mxu1 %vm2509_vm1, %v5162_v55 }
 0x1ef   :  { %2854 = vmatmul.mubr.bf16.gmra.mrb[28].mxu0 %v5164_v56  ;;  %3240 = vmatmul.mubr.bf16.gmra.mrb[28].mxu1 %v5164_v56 }
 0x1f0   :  { %4092 = vmatprep.mubr.msk.bf16.mxu0 %vm2509_vm1, %v5165_v21  ;;  %4108 = vmatprep.mubr.msk.bf16.mxu1 %vm2509_vm1, %v5165_v21 }
 0x1f7   :  { %2864 = vmatmul.mubr.bf16.gmra.mrb[32].mxu0 %v5167_v57  ;;  %3250 = vmatmul.mubr.bf16.gmra.mrb[32].mxu1 %v5167_v57 }
 0x1f8   :  { %4093 = vmatprep.mubr.msk.bf16.mxu0 %vm2509_vm1, %v5168_v58  ;;  %4109 = vmatprep.mubr.msk.bf16.mxu1 %vm2509_vm1, %v5168_v58 }
 0x1ff   :  { %2874 = vmatmul.mubr.bf16.gmra.mrb[36].mxu0 %v5170_v59  ;;  %3260 = vmatmul.mubr.bf16.gmra.mrb[36].mxu1 %v5170_v59 }
 0x200   :  { %4094 = vmatprep.mubr.msk.bf16.mxu0 %vm2509_vm1, %v5171_v60  ;;  %4110 = vmatprep.mubr.msk.bf16.mxu1 %vm2509_vm1, %v5171_v60 }
 0x207   :  { %2884 = vmatmul.mubr.bf16.gmra.mrb[40].mxu0 %v5173_v61  ;;  %3270 = vmatmul.mubr.bf16.gmra.mrb[40].mxu1 %v5173_v61 }
 0x208   :  { %4095 = vmatprep.mubr.msk.bf16.mxu0 %vm2509_vm1, %v5174_v62  ;;  %4111 = vmatprep.mubr.msk.bf16.mxu1 %vm2509_vm1, %v5174_v62 }
 0x20f   :  { %2894 = vmatmul.mubr.bf16.gmra.mrb[44].mxu0 %v5176_v63  ;;  %3280 = vmatmul.mubr.bf16.gmra.mrb[44].mxu1 %v5176_v63 }
 0x210   :  { %4096 = vmatprep.mubr.msk.bf16.mxu0 %vm2509_vm1, %v5177_v0  ;;  %4112 = vmatprep.mubr.msk.bf16.mxu1 %vm2509_vm1, %v5177_v0 }
 0x217   :  { %2904 = vmatmul.mubr.bf16.gmra.mrb[48].mxu0 %v5179_v1  ;;  %3290 = vmatmul.mubr.bf16.gmra.mrb[48].mxu1 %v5179_v1 }
 0x218   :  { %4097 = vmatprep.mubr.msk.bf16.mxu0 %vm2509_vm1, %v5180_v2  ;;  %4113 = vmatprep.mubr.msk.bf16.mxu1 %vm2509_vm1, %v5180_v2 }
 0x21f   :  { %2914 = vmatmul.mubr.bf16.gmra.mrb[52].mxu0 %v5182_v4  ;;  %3300 = vmatmul.mubr.bf16.gmra.mrb[52].mxu1 %v5182_v4 }
 0x220   :  { %4098 = vmatprep.mubr.msk.bf16.mxu0 %vm2509_vm1, %v5183_v5  ;;  %4114 = vmatprep.mubr.msk.bf16.mxu1 %vm2509_vm1, %v5183_v5 }
 0x227   :  { %2924 = vmatmul.mubr.bf16.gmra.mrb[56].mxu0 %v5185_v6  ;;  %3310 = vmatmul.mubr.bf16.gmra.mrb[56].mxu1 %v5185_v6 }
 0x228   :  { %4099 = vmatprep.mubr.msk.bf16.mxu0 %vm2509_vm1, %v5186_v7  ;;  %4115 = vmatprep.mubr.msk.bf16.mxu1 %vm2509_vm1, %v5186_v7 }
 0x22f   :  { %2934 = vmatmul.mubr.bf16.gmra.mrb[60].mxu0 %v5188_v10  ;;  %3320 = vmatmul.mubr.bf16.gmra.mrb[60].mxu1 %v5188_v10 }
 0x230   :  { %3566 = vmatprep.mubr.bf16.mxu0 %v5191_v17  ;;  %3609 = vmatprep.mubr.bf16.mxu1 %v5191_v17 }
 0x28a   :  { %v2785_v11 = vpop.f32.mrb[0].mxu0  ;;  %v3171_v12 = vpop.f32.mrb[0].mxu1 }
 0x28b   :  { %v2787_v13 = vpop.f32.mrb[1].mxu0  ;;  %v3173_v15 = vpop.f32.mrb[1].mxu1  ;;  %v3330_v16 = vmul.f32 %v2785_v11, %v2785_v11  ;;  %v3332_v3 = vmul.f32 %v3171_v12, %v3171_v12 }
 0x28c   :  { %v2789_v18 = vpop.f32.mrb[2].mxu0  ;;  %v3175_v19 = vpop.f32.mrb[2].mxu1  ;;  %v3331_v25 = vmul.f32 %v2787_v13, %v2787_v13  ;;  %v3333_v26 = vmul.f32 %v3173_v15, %v3173_v15 }
 0x28d   :  { %v3334_v20 = vmul.f32 %v2789_v18, %v2789_v18  ;;  %v3336_v22 = vmul.f32 %v3175_v19, %v3175_v19  ;;  %v2791_v23 = vpop.f32.mrb[3].mxu0  ;;  %v3177_v24 = vpop.f32.mrb[3].mxu1 }
 0x28e   :  { %v3335_v27 = vmul.f32 %v2791_v23, %v2791_v23  ;;  %v3337_v28 = vmul.f32 %v3177_v24, %v3177_v24 }
 0x28f   :  { %v3458_v8 = vpack.c.bf16 %v3334_v20, %v3330_v16  ;;  %v3460_v29 = vpack.c.bf16 %v3336_v22, %v3332_v3 }
 0x290   :  { %v3459_v30 = vpack.c.bf16 %v3335_v27, %v3331_v25  ;;  %v3461_v32 = vpack.c.bf16 %v3337_v28, %v3333_v26 }
 0x292   :  { %v2795_v33 = vpop.f32.mrb[4].mxu0  ;;  %v3181_v31 = vpop.f32.mrb[4].mxu1  ;;  %3534 = vmatprep.subr.bf16.mxu0 %v3459_v30  ;;  %3577 = vmatprep.subr.bf16.mxu1 %v3461_v32 }
 0x293   :  { %v2797_v34 = vpop.f32.mrb[5].mxu0  ;;  %v3183_v35 = vpop.f32.mrb[5].mxu1  ;;  %3535 = vmatpush1.bf16.msra.mxu0 %v3458_v8  ;;  %3578 = vmatpush1.bf16.msra.mxu1 %v3460_v29  ;;  %v3338_v38 = vmul.f32 %v2795_v33, %v2795_v33  ;;  %v3340_v39 = vmul.f32 %v3181_v31, %v3181_v31 }
 0x294   :  { %v2799_v36 = vpop.f32.mrb[6].mxu0  ;;  %v3185_v37 = vpop.f32.mrb[6].mxu1  ;;  %v3339_v43 = vmul.f32 %v2797_v34, %v2797_v34  ;;  %v3341_v44 = vmul.f32 %v3183_v35, %v3183_v35 }
 0x295   :  { %v3342_v40 = vmul.f32 %v2799_v36, %v2799_v36  ;;  %v3344_v41 = vmul.f32 %v3185_v37, %v3185_v37  ;;  %v2801_v42 = vpop.f32.mrb[7].mxu0  ;;  %v3187_v9 = vpop.f32.mrb[7].mxu1 }
 0x296   :  { %v3343_v14 = vmul.f32 %v2801_v42, %v2801_v42  ;;  %v3345_v45 = vmul.f32 %v3187_v9, %v3187_v9 }
 0x297   :  { %v3462_v46 = vpack.c.bf16 %v3342_v40, %v3338_v38  ;;  %v3464_v47 = vpack.c.bf16 %v3344_v41, %v3340_v39 }
 0x298   :  { %v3463_v48 = vpack.c.bf16 %v3343_v14, %v3339_v43  ;;  %v3465_v49 = vpack.c.bf16 %v3345_v45, %v3341_v44 }
 0x29a   :  { %v2805_v50 = vpop.f32.mrb[8].mxu0  ;;  %v3191_v51 = vpop.f32.mrb[8].mxu1  ;;  %3536 = vmatprep.subr.bf16.mxu0 %v3463_v48  ;;  %3579 = vmatprep.subr.bf16.mxu1 %v3465_v49 }
 0x29b   :  { %v2807_v52 = vpop.f32.mrb[9].mxu0  ;;  %v3193_v53 = vpop.f32.mrb[9].mxu1  ;;  %3537 = vmatpush1.bf16.msra.mxu0 %v3462_v46  ;;  %3580 = vmatpush1.bf16.msra.mxu1 %v3464_v47  ;;  %v3346_v56 = vmul.f32 %v2805_v50, %v2805_v50  ;;  %v3348_v21 = vmul.f32 %v3191_v51, %v3191_v51 }
 0x29c   :  { %v2809_v54 = vpop.f32.mrb[10].mxu0  ;;  %v3195_v55 = vpop.f32.mrb[10].mxu1  ;;  %v3347_v61 = vmul.f32 %v2807_v52, %v2807_v52  ;;  %v3349_v62 = vmul.f32 %v3193_v53, %v3193_v53 }
 0x29d   :  { %v3350_v57 = vmul.f32 %v2809_v54, %v2809_v54  ;;  %v3352_v58 = vmul.f32 %v3195_v55, %v3195_v55  ;;  %v2811_v59 = vpop.f32.mrb[11].mxu0  ;;  %v3197_v60 = vpop.f32.mrb[11].mxu1 }
 0x29e   :  { %v3351_v63 = vmul.f32 %v2811_v59, %v2811_v59  ;;  %v3353_v0 = vmul.f32 %v3197_v60, %v3197_v60 }
 0x29f   :  { %v3466_v1 = vpack.c.bf16 %v3350_v57, %v3346_v56  ;;  %v3468_v2 = vpack.c.bf16 %v3352_v58, %v3348_v21 }
 0x2a0   :  { %v3467_v4 = vpack.c.bf16 %v3351_v63, %v3347_v61  ;;  %v3469_v5 = vpack.c.bf16 %v3353_v0, %v3349_v62 }
 0x2a2   :  { %v2815_v6 = vpop.f32.mrb[12].mxu0  ;;  %v3201_v7 = vpop.f32.mrb[12].mxu1  ;;  %3538 = vmatprep.subr.bf16.mxu0 %v3467_v4  ;;  %3581 = vmatprep.subr.bf16.mxu1 %v3469_v5 }
 0x2a3   :  { %v2817_v10 = vpop.f32.mrb[13].mxu0  ;;  %v3203_v11 = vpop.f32.mrb[13].mxu1  ;;  %3539 = vmatpush1.bf16.msra.mxu0 %v3466_v1  ;;  %3582 = vmatpush1.bf16.msra.mxu1 %v3468_v2  ;;  %v3354_v15 = vmul.f32 %v2815_v6, %v2815_v6  ;;  %v3356_v17 = vmul.f32 %v3201_v7, %v3201_v7 }
 0x2a4   :  { %v2819_v12 = vpop.f32.mrb[14].mxu0  ;;  %v3205_v13 = vpop.f32.mrb[14].mxu1  ;;  %v3355_v20 = vmul.f32 %v2817_v10, %v2817_v10  ;;  %v3357_v22 = vmul.f32 %v3203_v11, %v3203_v11 }
 0x2a5   :  { %v3358_v16 = vmul.f32 %v2819_v12, %v2819_v12  ;;  %v3360_v18 = vmul.f32 %v3205_v13, %v3205_v13  ;;  %v2821_v19 = vpop.f32.mrb[15].mxu0  ;;  %v3207_v3 = vpop.f32.mrb[15].mxu1 }
 0x2a6   :  { %v3359_v23 = vmul.f32 %v2821_v19, %v2821_v19  ;;  %v3361_v24 = vmul.f32 %v3207_v3, %v3207_v3 }
 0x2a7   :  { %v3470_v25 = vpack.c.bf16 %v3358_v16, %v3354_v15  ;;  %v3472_v26 = vpack.c.bf16 %v3360_v18, %v3356_v17 }
 0x2a8   :  { %v3471_v27 = vpack.c.bf16 %v3359_v23, %v3355_v20  ;;  %v3473_v28 = vpack.c.bf16 %v3361_v24, %v3357_v22 }
 0x2aa   :  { %v2825_v8 = vpop.f32.mrb[16].mxu0  ;;  %v3211_v29 = vpop.f32.mrb[16].mxu1  ;;  %3540 = vmatprep.subr.bf16.mxu0 %v3471_v27  ;;  %3583 = vmatprep.subr.bf16.mxu1 %v3473_v28 }
 0x2ab   :  { %v2827_v30 = vpop.f32.mrb[17].mxu0  ;;  %v3213_v32 = vpop.f32.mrb[17].mxu1  ;;  %3541 = vmatpush1.bf16.msra.mxu0 %v3470_v25  ;;  %3584 = vmatpush1.bf16.msra.mxu1 %v3472_v26  ;;  %v3362_v34 = vmul.f32 %v2825_v8, %v2825_v8  ;;  %v3364_v35 = vmul.f32 %v3211_v29, %v3211_v29 }
 0x2ac   :  { %v2829_v33 = vpop.f32.mrb[18].mxu0  ;;  %v3215_v31 = vpop.f32.mrb[18].mxu1  ;;  %v3363_v40 = vmul.f32 %v2827_v30, %v2827_v30  ;;  %v3365_v41 = vmul.f32 %v3213_v32, %v3213_v32 }
 0x2ad   :  { %v3366_v36 = vmul.f32 %v2829_v33, %v2829_v33  ;;  %v3368_v37 = vmul.f32 %v3215_v31, %v3215_v31  ;;  %v2831_v38 = vpop.f32.mrb[19].mxu0  ;;  %v3217_v39 = vpop.f32.mrb[19].mxu1 }
 0x2ae   :  { %v3367_v42 = vmul.f32 %v2831_v38, %v2831_v38  ;;  %v3369_v9 = vmul.f32 %v3217_v39, %v3217_v39 }
 0x2af   :  { %v3474_v43 = vpack.c.bf16 %v3366_v36, %v3362_v34  ;;  %v3476_v44 = vpack.c.bf16 %v3368_v37, %v3364_v35 }
 0x2b0   :  { %v3475_v14 = vpack.c.bf16 %v3367_v42, %v3363_v40  ;;  %v3477_v45 = vpack.c.bf16 %v3369_v9, %v3365_v41 }
 0x2b2   :  { %v2835_v46 = vpop.f32.mrb[20].mxu0  ;;  %v3221_v47 = vpop.f32.mrb[20].mxu1  ;;  %3542 = vmatprep.subr.bf16.mxu0 %v3475_v14  ;;  %3585 = vmatprep.subr.bf16.mxu1 %v3477_v45 }
 0x2b3   :  { %v2837_v48 = vpop.f32.mrb[21].mxu0  ;;  %v3223_v49 = vpop.f32.mrb[21].mxu1  ;;  %3543 = vmatpush1.bf16.msra.mxu0 %v3474_v43  ;;  %3586 = vmatpush1.bf16.msra.mxu1 %v3476_v44  ;;  %v3370_v52 = vmul.f32 %v2835_v46, %v2835_v46  ;;  %v3372_v53 = vmul.f32 %v3221_v47, %v3221_v47 }
 0x2b4   :  { %v2839_v50 = vpop.f32.mrb[22].mxu0  ;;  %v3225_v51 = vpop.f32.mrb[22].mxu1  ;;  %v3371_v57 = vmul.f32 %v2837_v48, %v2837_v48  ;;  %v3373_v58 = vmul.f32 %v3223_v49, %v3223_v49 }
 0x2b5   :  { %v3374_v54 = vmul.f32 %v2839_v50, %v2839_v50  ;;  %v3376_v55 = vmul.f32 %v3225_v51, %v3225_v51  ;;  %v2841_v56 = vpop.f32.mrb[23].mxu0  ;;  %v3227_v21 = vpop.f32.mrb[23].mxu1 }
 0x2b6   :  { %v3375_v59 = vmul.f32 %v2841_v56, %v2841_v56  ;;  %v3377_v60 = vmul.f32 %v3227_v21, %v3227_v21 }
 0x2b7   :  { %v3478_v61 = vpack.c.bf16 %v3374_v54, %v3370_v52  ;;  %v3480_v62 = vpack.c.bf16 %v3376_v55, %v3372_v53 }
 0x2b8   :  { %v3479_v63 = vpack.c.bf16 %v3375_v59, %v3371_v57  ;;  %v3481_v0 = vpack.c.bf16 %v3377_v60, %v3373_v58 }
 0x2ba   :  { %v2845_v1 = vpop.f32.mrb[24].mxu0  ;;  %v3231_v2 = vpop.f32.mrb[24].mxu1  ;;  %3544 = vmatprep.subr.bf16.mxu0 %v3479_v63  ;;  %3587 = vmatprep.subr.bf16.mxu1 %v3481_v0 }
 0x2bb   :  { %v2847_v4 = vpop.f32.mrb[25].mxu0  ;;  %v3233_v5 = vpop.f32.mrb[25].mxu1  ;;  %3545 = vmatpush1.bf16.msra.mxu0 %v3478_v61  ;;  %3588 = vmatpush1.bf16.msra.mxu1 %v3480_v62  ;;  %v3378_v10 = vmul.f32 %v2845_v1, %v2845_v1  ;;  %v3380_v11 = vmul.f32 %v3231_v2, %v3231_v2 }
 0x2bc   :  { %v2849_v6 = vpop.f32.mrb[26].mxu0  ;;  %v3235_v7 = vpop.f32.mrb[26].mxu1  ;;  %v3379_v16 = vmul.f32 %v2847_v4, %v2847_v4  ;;  %v3381_v18 = vmul.f32 %v3233_v5, %v3233_v5 }
 0x2bd   :  { %v3382_v12 = vmul.f32 %v2849_v6, %v2849_v6  ;;  %v3384_v13 = vmul.f32 %v3235_v7, %v3235_v7  ;;  %v2851_v15 = vpop.f32.mrb[27].mxu0  ;;  %v3237_v17 = vpop.f32.mrb[27].mxu1 }
 0x2be   :  { %v3383_v19 = vmul.f32 %v2851_v15, %v2851_v15  ;;  %v3385_v3 = vmul.f32 %v3237_v17, %v3237_v17 }
 0x2bf   :  { %v3482_v20 = vpack.c.bf16 %v3382_v12, %v3378_v10  ;;  %v3484_v22 = vpack.c.bf16 %v3384_v13, %v3380_v11 }
 0x2c0   :  { %v3483_v23 = vpack.c.bf16 %v3383_v19, %v3379_v16  ;;  %v3485_v24 = vpack.c.bf16 %v3385_v3, %v3381_v18 }
 0x2c2   :  { %v2855_v25 = vpop.f32.mrb[28].mxu0  ;;  %v3241_v26 = vpop.f32.mrb[28].mxu1  ;;  %3546 = vmatprep.subr.bf16.mxu0 %v3483_v23  ;;  %3589 = vmatprep.subr.bf16.mxu1 %v3485_v24 }
 0x2c3   :  { %v2857_v27 = vpop.f32.mrb[29].mxu0  ;;  %v3243_v28 = vpop.f32.mrb[29].mxu1  ;;  %3547 = vmatpush1.bf16.msra.mxu0 %v3482_v20  ;;  %3590 = vmatpush1.bf16.msra.mxu1 %v3484_v22  ;;  %v3386_v30 = vmul.f32 %v2855_v25, %v2855_v25  ;;  %v3388_v32 = vmul.f32 %v3241_v26, %v3241_v26 }
 0x2c4   :  { %v2859_v8 = vpop.f32.mrb[30].mxu0  ;;  %v3245_v29 = vpop.f32.mrb[30].mxu1  ;;  %v3387_v36 = vmul.f32 %v2857_v27, %v2857_v27  ;;  %v3389_v37 = vmul.f32 %v3243_v28, %v3243_v28 }
 0x2c5   :  { %v3390_v33 = vmul.f32 %v2859_v8, %v2859_v8  ;;  %v3392_v31 = vmul.f32 %v3245_v29, %v3245_v29  ;;  %v2861_v34 = vpop.f32.mrb[31].mxu0  ;;  %v3247_v35 = vpop.f32.mrb[31].mxu1 }
 0x2c6   :  { %v3391_v38 = vmul.f32 %v2861_v34, %v2861_v34  ;;  %v3393_v39 = vmul.f32 %v3247_v35, %v3247_v35 }
 0x2c7   :  { %v3486_v40 = vpack.c.bf16 %v3390_v33, %v3386_v30  ;;  %v3488_v41 = vpack.c.bf16 %v3392_v31, %v3388_v32 }
 0x2c8   :  { %v3487_v42 = vpack.c.bf16 %v3391_v38, %v3387_v36  ;;  %v3489_v9 = vpack.c.bf16 %v3393_v39, %v3389_v37 }
 0x2ca   :  { %v2865_v43 = vpop.f32.mrb[32].mxu0  ;;  %v3251_v44 = vpop.f32.mrb[32].mxu1  ;;  %3548 = vmatprep.subr.bf16.mxu0 %v3487_v42  ;;  %3591 = vmatprep.subr.bf16.mxu1 %v3489_v9 }
 0x2cb   :  { %v2867_v14 = vpop.f32.mrb[33].mxu0  ;;  %v3253_v45 = vpop.f32.mrb[33].mxu1  ;;  %3549 = vmatpush1.bf16.msra.mxu0 %v3486_v40  ;;  %3592 = vmatpush1.bf16.msra.mxu1 %v3488_v41  ;;  %v3394_v48 = vmul.f32 %v2865_v43, %v2865_v43  ;;  %v3396_v49 = vmul.f32 %v3251_v44, %v3251_v44 }
 0x2cc   :  { %v2869_v46 = vpop.f32.mrb[34].mxu0  ;;  %v3255_v47 = vpop.f32.mrb[34].mxu1  ;;  %v3395_v54 = vmul.f32 %v2867_v14, %v2867_v14  ;;  %v3397_v55 = vmul.f32 %v3253_v45, %v3253_v45 }
 0x2cd   :  { %v3398_v50 = vmul.f32 %v2869_v46, %v2869_v46  ;;  %v3400_v51 = vmul.f32 %v3255_v47, %v3255_v47  ;;  %v2871_v52 = vpop.f32.mrb[35].mxu0  ;;  %v3257_v53 = vpop.f32.mrb[35].mxu1 }
 0x2ce   :  { %v3399_v56 = vmul.f32 %v2871_v52, %v2871_v52  ;;  %v3401_v21 = vmul.f32 %v3257_v53, %v3257_v53 }
 0x2cf   :  { %v3490_v57 = vpack.c.bf16 %v3398_v50, %v3394_v48  ;;  %v3492_v58 = vpack.c.bf16 %v3400_v51, %v3396_v49 }
 0x2d0   :  { %v3491_v59 = vpack.c.bf16 %v3399_v56, %v3395_v54  ;;  %v3493_v60 = vpack.c.bf16 %v3401_v21, %v3397_v55 }
 0x2d2   :  { %v2875_v61 = vpop.f32.mrb[36].mxu0  ;;  %v3261_v62 = vpop.f32.mrb[36].mxu1  ;;  %3550 = vmatprep.subr.bf16.mxu0 %v3491_v59  ;;  %3593 = vmatprep.subr.bf16.mxu1 %v3493_v60 }
 0x2d3   :  { %v2877_v63 = vpop.f32.mrb[37].mxu0  ;;  %v3263_v0 = vpop.f32.mrb[37].mxu1  ;;  %3551 = vmatpush1.bf16.msra.mxu0 %v3490_v57  ;;  %3594 = vmatpush1.bf16.msra.mxu1 %v3492_v58  ;;  %v3402_v4 = vmul.f32 %v2875_v61, %v2875_v61  ;;  %v3404_v5 = vmul.f32 %v3261_v62, %v3261_v62 }
 0x2d4   :  { %v2879_v1 = vpop.f32.mrb[38].mxu0  ;;  %v3265_v2 = vpop.f32.mrb[38].mxu1  ;;  %v3403_v12 = vmul.f32 %v2877_v63, %v2877_v63  ;;  %v3405_v13 = vmul.f32 %v3263_v0, %v3263_v0 }
 0x2d5   :  { %v3406_v6 = vmul.f32 %v2879_v1, %v2879_v1  ;;  %v3408_v7 = vmul.f32 %v3265_v2, %v3265_v2  ;;  %v2881_v10 = vpop.f32.mrb[39].mxu0  ;;  %v3267_v11 = vpop.f32.mrb[39].mxu1 }
 0x2d6   :  { %v3407_v15 = vmul.f32 %v2881_v10, %v2881_v10  ;;  %v3409_v17 = vmul.f32 %v3267_v11, %v3267_v11 }
 0x2d7   :  { %v3494_v16 = vpack.c.bf16 %v3406_v6, %v3402_v4  ;;  %v3496_v18 = vpack.c.bf16 %v3408_v7, %v3404_v5 }
 0x2d8   :  { %v3495_v19 = vpack.c.bf16 %v3407_v15, %v3403_v12  ;;  %v3497_v3 = vpack.c.bf16 %v3409_v17, %v3405_v13 }
 0x2da   :  { %v2885_v20 = vpop.f32.mrb[40].mxu0  ;;  %v3271_v22 = vpop.f32.mrb[40].mxu1  ;;  %3552 = vmatprep.subr.bf16.mxu0 %v3495_v19  ;;  %3595 = vmatprep.subr.bf16.mxu1 %v3497_v3 }
 0x2db   :  { %v2887_v23 = vpop.f32.mrb[41].mxu0  ;;  %v3273_v24 = vpop.f32.mrb[41].mxu1  ;;  %3553 = vmatpush1.bf16.msra.mxu0 %v3494_v16  ;;  %3596 = vmatpush1.bf16.msra.mxu1 %v3496_v18  ;;  %v3410_v27 = vmul.f32 %v2885_v20, %v2885_v20  ;;  %v3412_v28 = vmul.f32 %v3271_v22, %v3271_v22 }
 0x2dc   :  { %v2889_v25 = vpop.f32.mrb[42].mxu0  ;;  %v3275_v26 = vpop.f32.mrb[42].mxu1  ;;  %v3411_v33 = vmul.f32 %v2887_v23, %v2887_v23  ;;  %v3413_v31 = vmul.f32 %v3273_v24, %v3273_v24 }
 0x2dd   :  { %v3414_v8 = vmul.f32 %v2889_v25, %v2889_v25  ;;  %v3416_v29 = vmul.f32 %v3275_v26, %v3275_v26  ;;  %v2891_v30 = vpop.f32.mrb[43].mxu0  ;;  %v3277_v32 = vpop.f32.mrb[43].mxu1 }
 0x2de   :  { %v3415_v34 = vmul.f32 %v2891_v30, %v2891_v30  ;;  %v3417_v35 = vmul.f32 %v3277_v32, %v3277_v32 }
 0x2df   :  { %v3498_v36 = vpack.c.bf16 %v3414_v8, %v3410_v27  ;;  %v3500_v37 = vpack.c.bf16 %v3416_v29, %v3412_v28 }
 0x2e0   :  { %v3499_v38 = vpack.c.bf16 %v3415_v34, %v3411_v33  ;;  %v3501_v39 = vpack.c.bf16 %v3417_v35, %v3413_v31 }
 0x2e2   :  { %v2895_v40 = vpop.f32.mrb[44].mxu0  ;;  %v3281_v41 = vpop.f32.mrb[44].mxu1  ;;  %3554 = vmatprep.subr.bf16.mxu0 %v3499_v38  ;;  %3597 = vmatprep.subr.bf16.mxu1 %v3501_v39 }
 0x2e3   :  { %v2897_v42 = vpop.f32.mrb[45].mxu0  ;;  %v3283_v9 = vpop.f32.mrb[45].mxu1  ;;  %3555 = vmatpush1.bf16.msra.mxu0 %v3498_v36  ;;  %3598 = vmatpush1.bf16.msra.mxu1 %v3500_v37  ;;  %v3418_v14 = vmul.f32 %v2895_v40, %v2895_v40  ;;  %v3420_v45 = vmul.f32 %v3281_v41, %v3281_v41 }
 0x2e4   :  { %v2899_v43 = vpop.f32.mrb[46].mxu0  ;;  %v3285_v44 = vpop.f32.mrb[46].mxu1  ;;  %v3419_v50 = vmul.f32 %v2897_v42, %v2897_v42  ;;  %v3421_v51 = vmul.f32 %v3283_v9, %v3283_v9 }
 0x2e5   :  { %v3422_v46 = vmul.f32 %v2899_v43, %v2899_v43  ;;  %v3424_v47 = vmul.f32 %v3285_v44, %v3285_v44  ;;  %v2901_v48 = vpop.f32.mrb[47].mxu0  ;;  %v3287_v49 = vpop.f32.mrb[47].mxu1 }
 0x2e6   :  { %v3423_v52 = vmul.f32 %v2901_v48, %v2901_v48  ;;  %v3425_v53 = vmul.f32 %v3287_v49, %v3287_v49 }
 0x2e7   :  { %v3502_v54 = vpack.c.bf16 %v3422_v46, %v3418_v14  ;;  %v3504_v55 = vpack.c.bf16 %v3424_v47, %v3420_v45 }
 0x2e8   :  { %v3503_v56 = vpack.c.bf16 %v3423_v52, %v3419_v50  ;;  %v3505_v21 = vpack.c.bf16 %v3425_v53, %v3421_v51 }
 0x2ea   :  { %v2905_v57 = vpop.f32.mrb[48].mxu0  ;;  %v3291_v58 = vpop.f32.mrb[48].mxu1  ;;  %3556 = vmatprep.subr.bf16.mxu0 %v3503_v56  ;;  %3599 = vmatprep.subr.bf16.mxu1 %v3505_v21 }
 0x2eb   :  { %v2907_v59 = vpop.f32.mrb[49].mxu0  ;;  %v3293_v60 = vpop.f32.mrb[49].mxu1  ;;  %3557 = vmatpush1.bf16.msra.mxu0 %v3502_v54  ;;  %3600 = vmatpush1.bf16.msra.mxu1 %v3504_v55  ;;  %v3426_v63 = vmul.f32 %v2905_v57, %v2905_v57  ;;  %v3428_v0 = vmul.f32 %v3291_v58, %v3291_v58 }
 0x2ec   :  { %v2909_v61 = vpop.f32.mrb[50].mxu0  ;;  %v3295_v62 = vpop.f32.mrb[50].mxu1  ;;  %v3427_v6 = vmul.f32 %v2907_v59, %v2907_v59  ;;  %v3429_v7 = vmul.f32 %v3293_v60, %v3293_v60 }
 0x2ed   :  { %v3430_v1 = vmul.f32 %v2909_v61, %v2909_v61  ;;  %v3432_v2 = vmul.f32 %v3295_v62, %v3295_v62  ;;  %v2911_v4 = vpop.f32.mrb[51].mxu0  ;;  %v3297_v5 = vpop.f32.mrb[51].mxu1 }
 0x2ee   :  { %v3431_v10 = vmul.f32 %v2911_v4, %v2911_v4  ;;  %v3433_v11 = vmul.f32 %v3297_v5, %v3297_v5 }
 0x2ef   :  { %v3506_v12 = vpack.c.bf16 %v3430_v1, %v3426_v63  ;;  %v3508_v13 = vpack.c.bf16 %v3432_v2, %v3428_v0 }
 0x2f0   :  { %v3507_v15 = vpack.c.bf16 %v3431_v10, %v3427_v6  ;;  %v3509_v17 = vpack.c.bf16 %v3433_v11, %v3429_v7 }
 0x2f2   :  { %v2915_v16 = vpop.f32.mrb[52].mxu0  ;;  %v3301_v18 = vpop.f32.mrb[52].mxu1  ;;  %3558 = vmatprep.subr.bf16.mxu0 %v3507_v15  ;;  %3601 = vmatprep.subr.bf16.mxu1 %v3509_v17  ;;  %v5193_v15 = vld [vmem:[%s6100_s3] sm:$0xff]   ;;  %v5194_v17 = vld [vmem:[%s6100_s3 + $0x48] sm:$0xff]  }
 0x2f3   :  { %v2917_v19 = vpop.f32.mrb[53].mxu0  ;;  %v3303_v3 = vpop.f32.mrb[53].mxu1  ;;  %3559 = vmatpush1.bf16.msra.mxu0 %v3506_v12  ;;  %3602 = vmatpush1.bf16.msra.mxu1 %v3508_v13  ;;  %v3434_v23 = vmul.f32 %v2915_v16, %v2915_v16  ;;  %v3436_v24 = vmul.f32 %v3301_v18, %v3301_v18  ;;  %v5192_v12 = vld [vmem:[%s6100_s3 + $0x40] sm:$0xff]   ;;  %v5195_v16 = vld [vmem:[%s6100_s3 + $0x8] sm:$0xff]   ;;  %v5196_v18 = vld [vmem:[%s6100_s3 + $0x50] sm:$0xff]  }
 0x2f4   :  { %v2919_v20 = vpop.f32.mrb[54].mxu0  ;;  %v3305_v22 = vpop.f32.mrb[54].mxu1  ;;  %v3435_v8 = vmul.f32 %v2917_v19, %v2917_v19  ;;  %v3437_v29 = vmul.f32 %v3303_v3, %v3303_v3  ;;  %v5189_v13 = vld [vmem:[%s6099_s2] ss:$8 sps:$4 sm:$0xff]   ;;  %v5197_v19 = vld [vmem:[%s6100_s3 + $0x10] sm:$0xff]   ;;  %v5198_v3 = vld [vmem:[%s6100_s3 + $0x58] sm:$0xff]  }
 0x2f5   :  { %v3438_v25 = vmul.f32 %v2919_v20, %v2919_v20  ;;  %v3440_v26 = vmul.f32 %v3305_v22, %v3305_v22  ;;  %v2921_v27 = vpop.f32.mrb[55].mxu0  ;;  %v3307_v28 = vpop.f32.mrb[55].mxu1  ;;  %v5199_v20 = vld [vmem:[%s6100_s3 + $0x18] sm:$0xff]   ;;  %v5200_v22 = vld [vmem:[%s6100_s3 + $0x60] sm:$0xff]  }
 0x2f6   :  { %v3439_v30 = vmul.f32 %v2921_v27, %v2921_v27  ;;  %v3441_v32 = vmul.f32 %v3307_v28, %v3307_v28  ;;  %v5205_v27 = vld [vmem:[%s6100_s3 + $0x30] sm:$0xff]   ;;  %v5206_v28 = vld [vmem:[%s6100_s3 + $0x78] sm:$0xff]  }
 0x2f7   :  { %v3510_v33 = vpack.c.bf16 %v3438_v25, %v3434_v23  ;;  %v3512_v31 = vpack.c.bf16 %v3440_v26, %v3436_v24  ;;  %v5201_v23 = vld [vmem:[%s6100_s3 + $0x20] sm:$0xff]   ;;  %v5202_v24 = vld [vmem:[%s6100_s3 + $0x68] sm:$0xff]   ;;  %v5204_v26 = vld [vmem:[%s6100_s3 + $0x70] sm:$0xff]  }
 0x2f8   :  { %v3511_v34 = vpack.c.bf16 %v3439_v30, %v3435_v8  ;;  %v3513_v35 = vpack.c.bf16 %v3441_v32, %v3437_v29  ;;  %v5203_v25 = vld [vmem:[%s6100_s3 + $0x28] sm:$0xff]   ;;  %v5207_v8 = vld [vmem:[%s6100_s3 + $0x38] sm:$0xff]   ;;  %s5297_s3 = smov [#allocation3]  }
 0x2f9   :  { %s3860_s20 = sshll.u32 %s5297_s3, 4  ;;  %s3861_s20 = int_to_ptr.vmem [resolvable:$true] %s3860_s20 }
 0x2fa   :  { %v2925_v36 = vpop.f32.mrb[56].mxu0  ;;  %v3311_v37 = vpop.f32.mrb[56].mxu1  ;;  %3560 = vmatprep.subr.bf16.mxu0 %v3511_v34  ;;  %3603 = vmatprep.subr.bf16.mxu1 %v3513_v35  ;;  %s5224_s21 = scalar_lea.vmem %s3861_s20, 512  ;;  %p5229_p1 = scmp.lt.s32.totalorder %s3861_s20, %s3861_s20 }
 0x2fb   :  { %v2927_v38 = vpop.f32.mrb[57].mxu0  ;;  %v3313_v39 = vpop.f32.mrb[57].mxu1  ;;  %3561 = vmatpush1.bf16.msra.mxu0 %v3510_v33  ;;  %3604 = vmatpush1.bf16.msra.mxu1 %v3512_v31  ;;  %v3442_v42 = vmul.f32 %v2925_v36, %v2925_v36  ;;  %v3444_v9 = vmul.f32 %v3311_v37, %v3311_v37  ;;  %p5225_p0 = scmp.ne.s32.totalorder %s3861_s20, %s5224_s21  ;;  %p5230_p2 = scmp.lt.s32.totalorder %s5224_s21, %s5224_s21 }
 0x2fc   :  { %v2929_v40 = vpop.f32.mrb[58].mxu0  ;;  %v3315_v41 = vpop.f32.mrb[58].mxu1  ;;  %v3443_v46 = vmul.f32 %v2927_v38, %v2927_v38  ;;  %v3445_v47 = vmul.f32 %v3313_v39, %v3313_v39 }
 0x2fd   :  { %v3446_v43 = vmul.f32 %v2929_v40, %v2929_v40  ;;  %v3448_v44 = vmul.f32 %v3315_v41, %v3315_v41  ;;  %v2931_v14 = vpop.f32.mrb[59].mxu0  ;;  %v3317_v45 = vpop.f32.mrb[59].mxu1  ;;  %p5231_p3 = por %p5230_p2, %p5229_p1 }
 0x2fe   :  { %v3447_v48 = vmul.f32 %v2931_v14, %v2931_v14  ;;  %v3449_v49 = vmul.f32 %v3317_v45, %v3317_v45 }
 0x2ff   :  { %v3514_v50 = vpack.c.bf16 %v3446_v43, %v3442_v42  ;;  %v3516_v51 = vpack.c.bf16 %v3448_v44, %v3444_v9  ;;  %p5232_p4 = pnand %p5231_p3, %p5225_p0 }
 0x300   :  { %v3515_v52 = vpack.c.bf16 %v3447_v48, %v3443_v46  ;;  %v3517_v53 = vpack.c.bf16 %v3449_v49, %v3445_v47 }
 0x302   :  { %v2935_v54 = vpop.f32.mrb[60].mxu0  ;;  %v3321_v55 = vpop.f32.mrb[60].mxu1  ;;  %3562 = vmatprep.subr.bf16.mxu0 %v3515_v52  ;;  %3605 = vmatprep.subr.bf16.mxu1 %v3517_v53 }
 0x303   :  { %v2937_v56 = vpop.f32.mrb[61].mxu0  ;;  %v3323_v21 = vpop.f32.mrb[61].mxu1  ;;  %3563 = vmatpush1.bf16.msra.mxu0 %v3514_v50  ;;  %3606 = vmatpush1.bf16.msra.mxu1 %v3516_v51  ;;  %v3450_v59 = vmul.f32 %v2935_v54, %v2935_v54  ;;  %v3452_v60 = vmul.f32 %v3321_v55, %v3321_v55 }
 0x304   :  { %v2939_v57 = vpop.f32.mrb[62].mxu0  ;;  %v3325_v58 = vpop.f32.mrb[62].mxu1  ;;  %v3451_v1 = vmul.f32 %v2937_v56, %v2937_v56  ;;  %v3453_v2 = vmul.f32 %v3323_v21, %v3323_v21 }
 0x305   :  { %v3454_v61 = vmul.f32 %v2939_v57, %v2939_v57  ;;  %v3456_v62 = vmul.f32 %v3325_v58, %v3325_v58  ;;  %v2941_v63 = vpop.f32.mrb[63].mxu0  ;;  %v3327_v0 = vpop.f32.mrb[63].mxu1 }
 0x306   :  { %v3455_v4 = vmul.f32 %v2941_v63, %v2941_v63  ;;  %v3457_v5 = vmul.f32 %v3327_v0, %v3327_v0 }
 0x307   :  { %v3518_v6 = vpack.c.bf16 %v3454_v61, %v3450_v59  ;;  %v3520_v7 = vpack.c.bf16 %v3456_v62, %v3452_v60 }
 0x308   :  { %v3519_v10 = vpack.c.bf16 %v3455_v4, %v3451_v1  ;;  %v3521_v11 = vpack.c.bf16 %v3457_v5, %v3453_v2 }
 0x30a   :  { %3564 = vmatprep.subr.bf16.mxu0 %v3519_v10  ;;  %3607 = vmatprep.subr.bf16.mxu1 %v3521_v11 }
 0x30b   :  { %3565 = vmatpush1.bf16.msra.mxu0 %v3518_v6  ;;  %3608 = vmatpush1.bf16.msra.mxu1 %v3520_v7 }
 0x30c   :  { %4134 = vmatprep.subr.bf16.mxu0 %v5192_v12  ;;  %4156 = vmatprep.subr.bf16.mxu1 %v5192_v12 }
 0x30e   :  { %3567 = vmatmul.mubr.bf16.vlgmr.msra.gmra.mrb[64].mxu0 %v5189_v13  ;;  %3610 = vmatmul.mubr.bf16.vlgmr.msra.gmra.mrb[64].mxu1 %v5189_v13 }
 0x30f   :  { %4135 = vmatpush3.bf16.msra.mxu0 %v5193_v15  ;;  %4157 = vmatpush3.bf16.msra.mxu1 %v5193_v15 }
 0x310   :  { %4136 = vmatprep.subr.bf16.mxu0 %v5194_v17  ;;  %4158 = vmatprep.subr.bf16.mxu1 %v5194_v17 }
 0x313   :  { %4137 = vmatpush3.bf16.msra.mxu0 %v5195_v16  ;;  %4159 = vmatpush3.bf16.msra.mxu1 %v5195_v16 }
 0x314   :  { %4138 = vmatprep.subr.bf16.mxu0 %v5196_v18  ;;  %4160 = vmatprep.subr.bf16.mxu1 %v5196_v18 }
 0x317   :  { %4139 = vmatpush3.bf16.msra.mxu0 %v5197_v19  ;;  %4161 = vmatpush3.bf16.msra.mxu1 %v5197_v19 }
 0x318   :  { %4140 = vmatprep.subr.bf16.mxu0 %v5198_v3  ;;  %4162 = vmatprep.subr.bf16.mxu1 %v5198_v3 }
 0x31b   :  { %4141 = vmatpush3.bf16.msra.mxu0 %v5199_v20  ;;  %4163 = vmatpush3.bf16.msra.mxu1 %v5199_v20 }
 0x31c   :  { %4142 = vmatprep.subr.bf16.mxu0 %v5200_v22  ;;  %4164 = vmatprep.subr.bf16.mxu1 %v5200_v22 }
 0x31f   :  { %4143 = vmatpush3.bf16.msra.mxu0 %v5201_v23  ;;  %4165 = vmatpush3.bf16.msra.mxu1 %v5201_v23 }
 0x320   :  { %4144 = vmatprep.subr.bf16.mxu0 %v5202_v24  ;;  %4166 = vmatprep.subr.bf16.mxu1 %v5202_v24 }
 0x323   :  { %4145 = vmatpush3.bf16.msra.mxu0 %v5203_v25  ;;  %4167 = vmatpush3.bf16.msra.mxu1 %v5203_v25 }
 0x324   :  { %4146 = vmatprep.subr.bf16.mxu0 %v5204_v26  ;;  %4168 = vmatprep.subr.bf16.mxu1 %v5204_v26 }
 0x327   :  { %4147 = vmatpush3.bf16.msra.mxu0 %v5205_v27  ;;  %4169 = vmatpush3.bf16.msra.mxu1 %v5205_v27 }
 0x328   :  { %4148 = vmatprep.subr.bf16.mxu0 %v5206_v28  ;;  %4170 = vmatprep.subr.bf16.mxu1 %v5206_v28 }
 0x32b   :  { %4149 = vmatpush3.bf16.msra.mxu0 %v5207_v8  ;;  %4171 = vmatpush3.bf16.msra.mxu1 %v5207_v8 }
 0x3e1   :  { %v3568_v29 = vpop.f32.mrb[64].mxu0  ;;  %v3611_v30 = vpop.f32.mrb[64].mxu1 }
 0x3e2   :  { %v3569_v32 = vadd.f32 1e-06, %v3568_v29  ;;  %v3612_v33 = vadd.f32 1e-06, %v3611_v30  ;;  %v3570_v31 = vpop.f32.mrb[65].mxu0  ;;  %v3613_v34 = vpop.f32.mrb[65].mxu1 }
 0x3e3   :  { %v3571_v35 = vadd.f32 1e-06, %v3570_v31  ;;  %v3614_v36 = vadd.f32 1e-06, %v3613_v34  ;;  %v3572_v37 = vpop.f32.mrb[66].mxu0  ;;  %v3615_v38 = vpop.f32.mrb[66].mxu1 }
 0x3e4   :  { %5208 = vlog2.f32 %v3569_v32  ;;  %v3573_v39 = vadd.f32 1e-06, %v3572_v37  ;;  %v3574_v40 = vpop.f32.mrb[67].mxu0  ;;  %v3617_v41 = vpop.f32.mrb[67].mxu1  ;;  %v3616_v42 = vadd.f32 1e-06, %v3615_v38 }
 0x3e5   :  { %5210 = vlog2.f32 %v3612_v33  ;;  %v3575_v9 = vadd.f32 1e-06, %v3574_v40  ;;  %v3618_v43 = vadd.f32 1e-06, %v3617_v41 }
 0x3e6   :  { %5212 = vlog2.f32 %v3571_v35 }
 0x3e7   :  { %5214 = vlog2.f32 %v3614_v36 }
 0x3e8   :  { %5216 = vlog2.f32 %v3573_v39 }
 0x3e9   :  { %5218 = vlog2.f32 %v3616_v42 }
 0x3ea   :  { %5220 = vlog2.f32 %v3575_v9 }
 0x3eb   :  { %5222 = vlog2.f32 %v3618_v43 }
 0x3ee   :  { %v5209_v44 = vpop.eup %5208 }
 0x3ef   :  { %v5211_v14 = vpop.eup %5210  ;;  %v3621_v49 = vmul.f32 0.6931472, %v5209_v44 }
 0x3f0   :  { %v5213_v45 = vpop.eup %5212  ;;  %v3625_v52 = vmul.f32 0.6931472, %v5211_v14 }
 0x3f1   :  { %v5215_v46 = vpop.eup %5214  ;;  %v3623_v55 = vmul.f32 0.6931472, %v5213_v45 }
 0x3f2   :  { %v5217_v47 = vpop.eup %5216  ;;  %v3627_v57 = vmul.f32 0.6931472, %v5215_v46 }
 0x3f3   :  { %v5219_v48 = vpop.eup %5218  ;;  %v3629_v50 = vmul.f32 0.6931472, %v5217_v47 }
 0x3f4   :  { %v5221_v51 = vpop.eup %5220  ;;  %v3633_v53 = vmul.f32 0.6931472, %v5219_v48 }
 0x3f5   :  { %v5223_v54 = vpop.eup %5222  ;;  %v3636_v56 = vpack.c.bf16 %v3629_v50, %v3621_v49  ;;  %v3631_v21 = vmul.f32 0.6931472, %v5221_v51 }
 0x3f6   :  { %v3638_v58 = vpack.c.bf16 %v3633_v53, %v3625_v52  ;;  %v3635_v59 = vmul.f32 0.6931472, %v5223_v54 }
 0x3f7   :  { %v3637_v60 = vpack.c.bf16 %v3631_v21, %v3623_v55 }
 0x3f8   :  { %v3639_v61 = vpack.c.bf16 %v3635_v59, %v3627_v57 }
 0x3f9   :  { %3800 = vmatprep.mubr.bf16.mxu0 %v3637_v60 }
 0x3fa   :  { %3843 = vmatprep.mubr.bf16.mxu1 %v3639_v61  ;;  %3801 = vmatmul.mubr.bf16.vlgmr.msra.gmra.mrb[68].mxu0 %v3636_v56 }
 0x3fb   :  { %3844 = vmatmul.mubr.bf16.vlgmr.msra.gmra.mrb[68].mxu1 %v3638_v58 }
 0x4cd   :  { %v4150_v62 = vpop.f32.mrb[68].mxu0 }
 0x4ce   :  { %v4172_v63 = vpop.f32.mrb[68].mxu1  ;;  %v4151_v0 = vpop.f32.mrb[69].mxu0 }
 0x4cf   :  { %v4152_v1 = vadd.f32 %v4151_v0, %v4150_v62  ;;  %v4173_v2 = vpop.f32.mrb[69].mxu1  ;;  %v4153_v4 = vpop.f32.mrb[70].mxu0 }
 0x4d0   :  { %v4174_v5 = vadd.f32 %v4173_v2, %v4172_v63  ;;  %v4175_v6 = vpop.f32.mrb[70].mxu1  ;;  %v4154_v7 = vpop.f32.mrb[71].mxu0 }
 0x4d1   :  { %v3803_v10 = vadd.f32 0.9, %v4152_v1  ;;  %v4155_v11 = vadd.f32 %v4154_v7, %v4153_v4  ;;  %v4176_v12 = vpop.f32.mrb[71].mxu1 }
 0x4d2   :  { %v3846_v13 = vadd.f32 0.9, %v4174_v5  ;;  %v4177_v15 = vadd.f32 %v4176_v12, %v4175_v6 }
 0x4d3   :  { %3809 = vst [vmem:[#allocation3] sm:$0xff] %v3803_v10  ;;  %v3806_v17 = vadd.f32 0.9, %v4155_v11 }
 0x4d4   :  { %3853 = vst [vmem:[#allocation3 + $0x10] sm:$0xff] %v3846_v13  ;;  %v3849_v16 = vadd.f32 0.9, %v4177_v15 }
 0x4d5   :  { %3810 = vst [vmem:[#allocation3 + $0x8] sm:$0xff] %v3806_v17 }
 0x4d6   :  { %3854 = vst [vmem:[#allocation3 + $0x18] sm:$0xff] %v3849_v16 }
 0x4d7   :  { %5235 = shalt.err (!%p5232_p4)
}
 0x4d8   :  { %s5236_s24 = scalar_lea.hbm %s6101_s4, 512 }
 0x4d9   :  { %p5237_p5 = scmp.ne.s32.totalorder %s6101_s4, %s5236_s24  ;;  %p5240_p6 = scmp.lt.u32.totalorder %s5236_s24, %s6101_s4 }
 0x4db   :  { %p5242_p7 = pnand %p5240_p6, %p5237_p5 }
 0x4dd   :  { %5245 = shalt.err (!%p5242_p7)
}
 0x4de   :  { %s5298_s28 = smov 128   ;;  %s5299_s29 = smov 8  }
 0x4df   :  { %3866 = dma.vmem_to_hbm [thread:$0]  %s3861_s20, 512, %s6101_s4, [#allocation4], %s5298_s28, %s5298_s28, %s5299_s29  }
 0x4e0   :  { %5246 = dma.done.wait [#allocation4], 512  }
 0x4e1   :  { %5247 = vsyncadd [#allocation4], 4294966784 }
 0x4e2   :  { %3870 = vsyncpa [#allocation4], 1 }

</bundles_post_ra>
